<compile_context>
chip_gen: v6e
topology: v6e:2x2x1
jax: 0.10.0
libtpu: 0.0.40
codegen_flags: <defaults>
</compile_context>

<pallas_src>
import jax
import jax.numpy as jnp
from jax.experimental import pallas as pl


def _evaluator_kernel(x_ref, w1_ref, b1_ref, w2_ref, b2_ref,
                      w3_ref, b3_ref, w4_ref, b4_ref, o_ref):
    """All H MLPBlock heads on the full batch, in a single kernel invocation."""
    H = w2_ref.shape[0]
    D1 = w2_ref.shape[1]          # hidden width of layer 1 (=256)

    x = x_ref[...]                # (B, F) f32

    # ---- Layer 1, fused across all heads (they share the same input) ------
    # One lane-dense MXU matmul: (B, F) @ (F, H*D1) -> (B, H*D1).
    h1 = jnp.dot(x, w1_ref[...], preferred_element_type=jnp.float32) + b1_ref[...]
    h1 = jnp.maximum(h1, 0.0)     # (B, H*256)

    # ---- Layers 2-4 + softmax, per head (H static -> fully unrolled) ------
    probs = []
    for h in range(H):
        a = h1[:, h * D1:(h + 1) * D1]                        # (B, 256) static, lane-aligned
        a = jnp.dot(a, w2_ref[h], preferred_element_type=jnp.float32) + b2_ref[h]
        a = jnp.maximum(a, 0.0)                               # (B, 128)
        a = jnp.dot(a, w3_ref[h], preferred_element_type=jnp.float32) + b3_ref[h]
        a = jnp.maximum(a, 0.0)                               # (B, 64)
        logits = jnp.dot(a, w4_ref[h], preferred_element_type=jnp.float32) + b4_ref[h]

        # numerically stable softmax with an EXACT divide (rows must sum to 1)
        m = jnp.max(logits, axis=-1, keepdims=True)
        e = jnp.exp(logits - m)
        denom = jnp.sum(e, axis=-1, keepdims=True)
        probs.append(e / denom)                               # (B, out)

    # one combined, lane-denser store: (B, H*out)
    o_ref[...] = jnp.concatenate(probs, axis=-1).astype(o_ref.dtype)


@jax.jit
def evaluator_forward(feats_avg, packed_params):
    """Run all heads in one kernel call; returns stacked probs [H, B, out]."""
    w1c, b1c, w2, b2, w3, b3, w4, b4 = packed_params
    H = w2.shape[0]
    B = feats_avg.shape[0]
    out_dim = w4.shape[-1]

    # No grid: every operand is a whole-array VMEM block (default BlockSpecs);
    # total VMEM footprint is ~1.5 MiB, so no tiling is needed on v5e/v6e/v7x
    # and there is exactly one DMA per operand per call.
    packed_out = pl.pallas_call(
        _evaluator_kernel,
        out_shape=jax.ShapeDtypeStruct((B, H * out_dim), jnp.float32),
    )(feats_avg, w1c, b1c, w2, b2, w3, b3, w4, b4)

    # layout plumbing outside the kernel: (B, H*out) -> (H, B, out)
    return jnp.transpose(packed_out.reshape(B, H, out_dim), (1, 0, 2))


def init_evaluator_params(key, feature_dim, output_dim, num_subscores):
    """PyTorch-style (uniform +-1/sqrt(fan_in)) init, stacked over heads."""
    dims = [feature_dim, 256, 128, 64, output_dim]
    params = []
    for i in range(4):
        fan_in, fan_out = dims[i], dims[i + 1]
        key, kw, kb = jax.random.split(key, 3)
        bound = 1.0 / jnp.sqrt(fan_in)
        # weights stored as [H, in, out] (transposed vs. torch's [out, in])
        w = jax.random.uniform(kw, (num_subscores, fan_in, fan_out),
                               minval=-bound, maxval=bound, dtype=jnp.float32)
        b = jax.random.uniform(kb, (num_subscores, 1, fan_out),
                               minval=-bound, maxval=bound, dtype=jnp.float32)
        params += [w, b]
    return tuple(params)


def pack_params(params):
    """One-time packing: layer-1 weights/bias concatenated head-major along lanes."""
    w1, b1, w2, b2, w3, b3, w4, b4 = params
    H, F, D1 = w1.shape
    w1_cat = jnp.transpose(w1, (1, 0, 2)).reshape(F, H * D1)   # (F, H*256)
    b1_cat = b1.reshape(1, H * D1)                             # (1, H*256)
    return (w1_cat, b1_cat, w2, b2, w3, b3, w4, b4)


def _reference_forward(feats_avg, params):
    """Pure-JAX reference matching the PyTorch module semantics."""
    w1, b1, w2, b2, w3, b3, w4, b4 = params
    outs = []
    for h in range(w1.shape[0]):
        x = jnp.maximum(feats_avg @ w1[h] + b1[h], 0.0)
        x = jnp.maximum(x @ w2[h] + b2[h], 0.0)
        x = jnp.maximum(x @ w3[h] + b3[h], 0.0)
        logits = x @ w4[h] + b4[h]
        outs.append(jax.nn.softmax(logits, axis=-1))
    return jnp.stack(outs, axis=0)


if __name__ == "__main__":
    feature_dim = 32     # feats_avg feature size
    output_dim = 4       # classes per subscore head
    num_subscores = 8    # number of MLPBlock heads
    batch = 8

    key = jax.random.PRNGKey(0)
    k_x, k_p = jax.random.split(key)
    feats_avg = jax.random.normal(k_x, (batch, feature_dim), dtype=jnp.float32)
    params = init_evaluator_params(k_p, feature_dim, output_dim, num_subscores)
    packed = pack_params(params)   # packed once, outside the jitted forward

    probs_stacked = evaluator_forward(feats_avg, packed)
    probs_stacked = jax.block_until_ready(probs_stacked)

    # Evaluator.forward returns a Python list of per-head prob tensors.
    probs = [probs_stacked[h] for h in range(num_subscores)]

    ref = _reference_forward(feats_avg, params)
    assert probs_stacked.shape == (num_subscores, batch, output_dim)
    assert jnp.allclose(probs_stacked, ref, atol=1e-5, rtol=1e-5), "mismatch vs reference"
    # rows of each head sum to 1 (softmax with exact divide)
    assert jnp.allclose(jnp.sum(probs_stacked, axis=-1), 1.0, atol=1e-5)

    print("KERNEL_OK")
</pallas_src>

<mosaic_0001>
module attributes {stable_mosaic.version = 11 : i64} {
  func.func @_evaluator_kernel(%arg0: memref<8x32xf32, #tpu.memory_space<vmem>>, %arg1: memref<32x2048xf32, #tpu.memory_space<vmem>>, %arg2: memref<1x2048xf32, #tpu.memory_space<vmem>>, %arg3: memref<8x256x128xf32, #tpu.memory_space<vmem>>, %arg4: memref<8x1x128xf32, #tpu.memory_space<vmem>>, %arg5: memref<8x128x64xf32, #tpu.memory_space<vmem>>, %arg6: memref<8x1x64xf32, #tpu.memory_space<vmem>>, %arg7: memref<8x64x4xf32, #tpu.memory_space<vmem>>, %arg8: memref<8x1x4xf32, #tpu.memory_space<vmem>>, %arg9: memref<8x32xf32, #tpu.memory_space<vmem>>) attributes {dimension_semantics = [], scalar_prefetch = 0 : i64, scratch_operands = 0 : i64, tpu.core_type = #tpu.core_type<tc>} {
    %c0 = arith.constant 0 : index
    %c0_0 = arith.constant 0 : index
    %0 = vector.load %arg0[%c0, %c0_0] : memref<8x32xf32, #tpu.memory_space<vmem>>, vector<8x32xf32>
    %c0_1 = arith.constant 0 : index
    %c0_2 = arith.constant 0 : index
    %1 = vector.load %arg1[%c0_1, %c0_2] : memref<32x2048xf32, #tpu.memory_space<vmem>>, vector<32x2048xf32>
    %cst = arith.constant dense<0.000000e+00> : vector<8x2048xf32>
    %2 = tpu.matmul %0, %1, %cst {dimension_numbers = #tpu.dot_dimension_numbers<[1], [0], [0], [1], [0, 0, 1, 1], [], []>} : vector<8x32xf32>, vector<32x2048xf32>, vector<8x2048xf32> -> vector<8x2048xf32>
    %c0_3 = arith.constant 0 : index
    %c0_4 = arith.constant 0 : index
    %3 = vector.load %arg2[%c0_3, %c0_4] : memref<1x2048xf32, #tpu.memory_space<vmem>>, vector<1x2048xf32>
    %4 = vector.broadcast %3 : vector<1x2048xf32> to vector<8x2048xf32>
    %5 = arith.addf %2, %4 : vector<8x2048xf32>
    %cst_5 = arith.constant 0.000000e+00 : f32
    %6 = vector.broadcast %cst_5 : f32 to vector<8x2048xf32>
    %7 = arith.maximumf %5, %6 : vector<8x2048xf32>
    %8 = vector.extract_strided_slice %7 {offsets = [0, 0], sizes = [8, 256], strides = [1, 1]} : vector<8x2048xf32> to vector<8x256xf32>
    %c0_6 = arith.constant 0 : index
    %c0_7 = arith.constant 0 : index
    %c0_8 = arith.constant 0 : index
    %9 = vector.load %arg3[%c0_6, %c0_7, %c0_8] : memref<8x256x128xf32, #tpu.memory_space<vmem>>, vector<1x256x128xf32>
    %10 = vector.shape_cast %9 : vector<1x256x128xf32> to vector<256x128xf32>
    %cst_9 = arith.constant dense<0.000000e+00> : vector<8x128xf32>
    %11 = tpu.matmul %8, %10, %cst_9 {dimension_numbers = #tpu.dot_dimension_numbers<[1], [0], [0], [1], [0, 0, 1, 1], [], []>} : vector<8x256xf32>, vector<256x128xf32>, vector<8x128xf32> -> vector<8x128xf32>
    %c0_10 = arith.constant 0 : index
    %c0_11 = arith.constant 0 : index
    %c0_12 = arith.constant 0 : index
    %12 = vector.load %arg4[%c0_10, %c0_11, %c0_12] : memref<8x1x128xf32, #tpu.memory_space<vmem>>, vector<1x1x128xf32>
    %13 = vector.shape_cast %12 : vector<1x1x128xf32> to vector<1x128xf32>
    %14 = vector.broadcast %13 : vector<1x128xf32> to vector<8x128xf32>
    %15 = arith.addf %11, %14 : vector<8x128xf32>
    %cst_13 = arith.constant 0.000000e+00 : f32
    %16 = vector.broadcast %cst_13 : f32 to vector<8x128xf32>
    %17 = arith.maximumf %15, %16 : vector<8x128xf32>
    %c0_14 = arith.constant 0 : index
    %c0_15 = arith.constant 0 : index
    %c0_16 = arith.constant 0 : index
    %18 = vector.load %arg5[%c0_14, %c0_15, %c0_16] : memref<8x128x64xf32, #tpu.memory_space<vmem>>, vector<1x128x64xf32>
    %19 = vector.shape_cast %18 : vector<1x128x64xf32> to vector<128x64xf32>
    %cst_17 = arith.constant dense<0.000000e+00> : vector<8x64xf32>
    %20 = tpu.matmul %17, %19, %cst_17 {dimension_numbers = #tpu.dot_dimension_numbers<[1], [0], [0], [1], [0, 0, 1, 1], [], []>} : vector<8x128xf32>, vector<128x64xf32>, vector<8x64xf32> -> vector<8x64xf32>
    %c0_18 = arith.constant 0 : index
    %c0_19 = arith.constant 0 : index
    %c0_20 = arith.constant 0 : index
    %21 = vector.load %arg6[%c0_18, %c0_19, %c0_20] : memref<8x1x64xf32, #tpu.memory_space<vmem>>, vector<1x1x64xf32>
    %22 = vector.shape_cast %21 : vector<1x1x64xf32> to vector<1x64xf32>
    %23 = vector.broadcast %22 : vector<1x64xf32> to vector<8x64xf32>
    %24 = arith.addf %20, %23 : vector<8x64xf32>
    %cst_21 = arith.constant 0.000000e+00 : f32
    %25 = vector.broadcast %cst_21 : f32 to vector<8x64xf32>
    %26 = arith.maximumf %24, %25 : vector<8x64xf32>
    %c0_22 = arith.constant 0 : index
    %c0_23 = arith.constant 0 : index
    %c0_24 = arith.constant 0 : index
    %27 = vector.load %arg7[%c0_22, %c0_23, %c0_24] : memref<8x64x4xf32, #tpu.memory_space<vmem>>, vector<1x64x4xf32>
    %28 = vector.shape_cast %27 : vector<1x64x4xf32> to vector<64x4xf32>
    %cst_25 = arith.constant dense<0.000000e+00> : vector<8x4xf32>
    %29 = tpu.matmul %26, %28, %cst_25 {dimension_numbers = #tpu.dot_dimension_numbers<[1], [0], [0], [1], [0, 0, 1, 1], [], []>} : vector<8x64xf32>, vector<64x4xf32>, vector<8x4xf32> -> vector<8x4xf32>
    %c0_26 = arith.constant 0 : index
    %c0_27 = arith.constant 0 : index
    %c0_28 = arith.constant 0 : index
    %30 = vector.load %arg8[%c0_26, %c0_27, %c0_28] : memref<8x1x4xf32, #tpu.memory_space<vmem>>, vector<1x1x4xf32>
    %31 = vector.shape_cast %30 : vector<1x1x4xf32> to vector<1x4xf32>
    %32 = vector.broadcast %31 : vector<1x4xf32> to vector<8x4xf32>
    %33 = arith.addf %29, %32 : vector<8x4xf32>
    %cst_29 = arith.constant dense<0xFF800000> : vector<8xf32>
    %34 = vector.multi_reduction <maximumf>, %33, %cst_29 [1] : vector<8x4xf32> to vector<8xf32>
    %35 = vector.shape_cast %34 : vector<8xf32> to vector<8x1xf32>
    %36 = vector.broadcast %35 : vector<8x1xf32> to vector<8x4xf32>
    %37 = arith.subf %33, %36 : vector<8x4xf32>
    %38 = math.exp %37 : vector<8x4xf32>
    %cst_30 = arith.constant dense<0.000000e+00> : vector<8xf32>
    %39 = vector.multi_reduction <add>, %38, %cst_30 [1] : vector<8x4xf32> to vector<8xf32>
    %40 = vector.shape_cast %39 : vector<8xf32> to vector<8x1xf32>
    %41 = vector.broadcast %40 : vector<8x1xf32> to vector<8x4xf32>
    %42 = arith.divf %38, %41 : vector<8x4xf32>
    %43 = vector.extract_strided_slice %7 {offsets = [0, 256], sizes = [8, 256], strides = [1, 1]} : vector<8x2048xf32> to vector<8x256xf32>
    %c1 = arith.constant 1 : index
    %c0_31 = arith.constant 0 : index
    %c0_32 = arith.constant 0 : index
    %44 = vector.load %arg3[%c1, %c0_31, %c0_32] : memref<8x256x128xf32, #tpu.memory_space<vmem>>, vector<1x256x128xf32>
    %45 = vector.shape_cast %44 : vector<1x256x128xf32> to vector<256x128xf32>
    %cst_33 = arith.constant dense<0.000000e+00> : vector<8x128xf32>
    %46 = tpu.matmul %43, %45, %cst_33 {dimension_numbers = #tpu.dot_dimension_numbers<[1], [0], [0], [1], [0, 0, 1, 1], [], []>} : vector<8x256xf32>, vector<256x128xf32>, vector<8x128xf32> -> vector<8x128xf32>
    %c1_34 = arith.constant 1 : index
    %c0_35 = arith.constant 0 : index
    %c0_36 = arith.constant 0 : index
    %47 = vector.load %arg4[%c1_34, %c0_35, %c0_36] : memref<8x1x128xf32, #tpu.memory_space<vmem>>, vector<1x1x128xf32>
    %48 = vector.shape_cast %47 : vector<1x1x128xf32> to vector<1x128xf32>
    %49 = vector.broadcast %48 : vector<1x128xf32> to vector<8x128xf32>
    %50 = arith.addf %46, %49 : vector<8x128xf32>
    %cst_37 = arith.constant 0.000000e+00 : f32
    %51 = vector.broadcast %cst_37 : f32 to vector<8x128xf32>
    %52 = arith.maximumf %50, %51 : vector<8x128xf32>
    %c1_38 = arith.constant 1 : index
    %c0_39 = arith.constant 0 : index
    %c0_40 = arith.constant 0 : index
    %53 = vector.load %arg5[%c1_38, %c0_39, %c0_40] : memref<8x128x64xf32, #tpu.memory_space<vmem>>, vector<1x128x64xf32>
    %54 = vector.shape_cast %53 : vector<1x128x64xf32> to vector<128x64xf32>
    %cst_41 = arith.constant dense<0.000000e+00> : vector<8x64xf32>
    %55 = tpu.matmul %52, %54, %cst_41 {dimension_numbers = #tpu.dot_dimension_numbers<[1], [0], [0], [1], [0, 0, 1, 1], [], []>} : vector<8x128xf32>, vector<128x64xf32>, vector<8x64xf32> -> vector<8x64xf32>
    %c1_42 = arith.constant 1 : index
    %c0_43 = arith.constant 0 : index
    %c0_44 = arith.constant 0 : index
    %56 = vector.load %arg6[%c1_42, %c0_43, %c0_44] : memref<8x1x64xf32, #tpu.memory_space<vmem>>, vector<1x1x64xf32>
    %57 = vector.shape_cast %56 : vector<1x1x64xf32> to vector<1x64xf32>
    %58 = vector.broadcast %57 : vector<1x64xf32> to vector<8x64xf32>
    %59 = arith.addf %55, %58 : vector<8x64xf32>
    %cst_45 = arith.constant 0.000000e+00 : f32
    %60 = vector.broadcast %cst_45 : f32 to vector<8x64xf32>
    %61 = arith.maximumf %59, %60 : vector<8x64xf32>
    %c1_46 = arith.constant 1 : index
    %c0_47 = arith.constant 0 : index
    %c0_48 = arith.constant 0 : index
    %62 = vector.load %arg7[%c1_46, %c0_47, %c0_48] : memref<8x64x4xf32, #tpu.memory_space<vmem>>, vector<1x64x4xf32>
    %63 = vector.shape_cast %62 : vector<1x64x4xf32> to vector<64x4xf32>
    %cst_49 = arith.constant dense<0.000000e+00> : vector<8x4xf32>
    %64 = tpu.matmul %61, %63, %cst_49 {dimension_numbers = #tpu.dot_dimension_numbers<[1], [0], [0], [1], [0, 0, 1, 1], [], []>} : vector<8x64xf32>, vector<64x4xf32>, vector<8x4xf32> -> vector<8x4xf32>
    %c1_50 = arith.constant 1 : index
    %c0_51 = arith.constant 0 : index
    %c0_52 = arith.constant 0 : index
    %65 = vector.load %arg8[%c1_50, %c0_51, %c0_52] : memref<8x1x4xf32, #tpu.memory_space<vmem>>, vector<1x1x4xf32>
    %66 = vector.shape_cast %65 : vector<1x1x4xf32> to vector<1x4xf32>
    %67 = vector.broadcast %66 : vector<1x4xf32> to vector<8x4xf32>
    %68 = arith.addf %64, %67 : vector<8x4xf32>
    %cst_53 = arith.constant dense<0xFF800000> : vector<8xf32>
    %69 = vector.multi_reduction <maximumf>, %68, %cst_53 [1] : vector<8x4xf32> to vector<8xf32>
    %70 = vector.shape_cast %69 : vector<8xf32> to vector<8x1xf32>
    %71 = vector.broadcast %70 : vector<8x1xf32> to vector<8x4xf32>
    %72 = arith.subf %68, %71 : vector<8x4xf32>
    %73 = math.exp %72 : vector<8x4xf32>
    %cst_54 = arith.constant dense<0.000000e+00> : vector<8xf32>
    %74 = vector.multi_reduction <add>, %73, %cst_54 [1] : vector<8x4xf32> to vector<8xf32>
    %75 = vector.shape_cast %74 : vector<8xf32> to vector<8x1xf32>
    %76 = vector.broadcast %75 : vector<8x1xf32> to vector<8x4xf32>
    %77 = arith.divf %73, %76 : vector<8x4xf32>
    %78 = vector.extract_strided_slice %7 {offsets = [0, 512], sizes = [8, 256], strides = [1, 1]} : vector<8x2048xf32> to vector<8x256xf32>
    %c2 = arith.constant 2 : index
    %c0_55 = arith.constant 0 : index
    %c0_56 = arith.constant 0 : index
    %79 = vector.load %arg3[%c2, %c0_55, %c0_56] : memref<8x256x128xf32, #tpu.memory_space<vmem>>, vector<1x256x128xf32>
    %80 = vector.shape_cast %79 : vector<1x256x128xf32> to vector<256x128xf32>
    %cst_57 = arith.constant dense<0.000000e+00> : vector<8x128xf32>
    %81 = tpu.matmul %78, %80, %cst_57 {dimension_numbers = #tpu.dot_dimension_numbers<[1], [0], [0], [1], [0, 0, 1, 1], [], []>} : vector<8x256xf32>, vector<256x128xf32>, vector<8x128xf32> -> vector<8x128xf32>
    %c2_58 = arith.constant 2 : index
    %c0_59 = arith.constant 0 : index
    %c0_60 = arith.constant 0 : index
    %82 = vector.load %arg4[%c2_58, %c0_59, %c0_60] : memref<8x1x128xf32, #tpu.memory_space<vmem>>, vector<1x1x128xf32>
    %83 = vector.shape_cast %82 : vector<1x1x128xf32> to vector<1x128xf32>
    %84 = vector.broadcast %83 : vector<1x128xf32> to vector<8x128xf32>
    %85 = arith.addf %81, %84 : vector<8x128xf32>
    %cst_61 = arith.constant 0.000000e+00 : f32
    %86 = vector.broadcast %cst_61 : f32 to vector<8x128xf32>
    %87 = arith.maximumf %85, %86 : vector<8x128xf32>
    %c2_62 = arith.constant 2 : index
    %c0_63 = arith.constant 0 : index
    %c0_64 = arith.constant 0 : index
    %88 = vector.load %arg5[%c2_62, %c0_63, %c0_64] : memref<8x128x64xf32, #tpu.memory_space<vmem>>, vector<1x128x64xf32>
    %89 = vector.shape_cast %88 : vector<1x128x64xf32> to vector<128x64xf32>
    %cst_65 = arith.constant dense<0.000000e+00> : vector<8x64xf32>
    %90 = tpu.matmul %87, %89, %cst_65 {dimension_numbers = #tpu.dot_dimension_numbers<[1], [0], [0], [1], [0, 0, 1, 1], [], []>} : vector<8x128xf32>, vector<128x64xf32>, vector<8x64xf32> -> vector<8x64xf32>
    %c2_66 = arith.constant 2 : index
    %c0_67 = arith.constant 0 : index
    %c0_68 = arith.constant 0 : index
    %91 = vector.load %arg6[%c2_66, %c0_67, %c0_68] : memref<8x1x64xf32, #tpu.memory_space<vmem>>, vector<1x1x64xf32>
    %92 = vector.shape_cast %91 : vector<1x1x64xf32> to vector<1x64xf32>
    %93 = vector.broadcast %92 : vector<1x64xf32> to vector<8x64xf32>
    %94 = arith.addf %90, %93 : vector<8x64xf32>
    %cst_69 = arith.constant 0.000000e+00 : f32
    %95 = vector.broadcast %cst_69 : f32 to vector<8x64xf32>
    %96 = arith.maximumf %94, %95 : vector<8x64xf32>
    %c2_70 = arith.constant 2 : index
    %c0_71 = arith.constant 0 : index
    %c0_72 = arith.constant 0 : index
    %97 = vector.load %arg7[%c2_70, %c0_71, %c0_72] : memref<8x64x4xf32, #tpu.memory_space<vmem>>, vector<1x64x4xf32>
    %98 = vector.shape_cast %97 : vector<1x64x4xf32> to vector<64x4xf32>
    %cst_73 = arith.constant dense<0.000000e+00> : vector<8x4xf32>
    %99 = tpu.matmul %96, %98, %cst_73 {dimension_numbers = #tpu.dot_dimension_numbers<[1], [0], [0], [1], [0, 0, 1, 1], [], []>} : vector<8x64xf32>, vector<64x4xf32>, vector<8x4xf32> -> vector<8x4xf32>
    %c2_74 = arith.constant 2 : index
    %c0_75 = arith.constant 0 : index
    %c0_76 = arith.constant 0 : index
    %100 = vector.load %arg8[%c2_74, %c0_75, %c0_76] : memref<8x1x4xf32, #tpu.memory_space<vmem>>, vector<1x1x4xf32>
    %101 = vector.shape_cast %100 : vector<1x1x4xf32> to vector<1x4xf32>
    %102 = vector.broadcast %101 : vector<1x4xf32> to vector<8x4xf32>
    %103 = arith.addf %99, %102 : vector<8x4xf32>
    %cst_77 = arith.constant dense<0xFF800000> : vector<8xf32>
    %104 = vector.multi_reduction <maximumf>, %103, %cst_77 [1] : vector<8x4xf32> to vector<8xf32>
    %105 = vector.shape_cast %104 : vector<8xf32> to vector<8x1xf32>
    %106 = vector.broadcast %105 : vector<8x1xf32> to vector<8x4xf32>
    %107 = arith.subf %103, %106 : vector<8x4xf32>
    %108 = math.exp %107 : vector<8x4xf32>
    %cst_78 = arith.constant dense<0.000000e+00> : vector<8xf32>
    %109 = vector.multi_reduction <add>, %108, %cst_78 [1] : vector<8x4xf32> to vector<8xf32>
    %110 = vector.shape_cast %109 : vector<8xf32> to vector<8x1xf32>
    %111 = vector.broadcast %110 : vector<8x1xf32> to vector<8x4xf32>
    %112 = arith.divf %108, %111 : vector<8x4xf32>
    %113 = vector.extract_strided_slice %7 {offsets = [0, 768], sizes = [8, 256], strides = [1, 1]} : vector<8x2048xf32> to vector<8x256xf32>
    %c3 = arith.constant 3 : index
    %c0_79 = arith.constant 0 : index
    %c0_80 = arith.constant 0 : index
    %114 = vector.load %arg3[%c3, %c0_79, %c0_80] : memref<8x256x128xf32, #tpu.memory_space<vmem>>, vector<1x256x128xf32>
    %115 = vector.shape_cast %114 : vector<1x256x128xf32> to vector<256x128xf32>
    %cst_81 = arith.constant dense<0.000000e+00> : vector<8x128xf32>
    %116 = tpu.matmul %113, %115, %cst_81 {dimension_numbers = #tpu.dot_dimension_numbers<[1], [0], [0], [1], [0, 0, 1, 1], [], []>} : vector<8x256xf32>, vector<256x128xf32>, vector<8x128xf32> -> vector<8x128xf32>
    %c3_82 = arith.constant 3 : index
    %c0_83 = arith.constant 0 : index
    %c0_84 = arith.constant 0 : index
    %117 = vector.load %arg4[%c3_82, %c0_83, %c0_84] : memref<8x1x128xf32, #tpu.memory_space<vmem>>, vector<1x1x128xf32>
    %118 = vector.shape_cast %117 : vector<1x1x128xf32> to vector<1x128xf32>
    %119 = vector.broadcast %118 : vector<1x128xf32> to vector<8x128xf32>
    %120 = arith.addf %116, %119 : vector<8x128xf32>
    %cst_85 = arith.constant 0.000000e+00 : f32
    %121 = vector.broadcast %cst_85 : f32 to vector<8x128xf32>
    %122 = arith.maximumf %120, %121 : vector<8x128xf32>
    %c3_86 = arith.constant 3 : index
    %c0_87 = arith.constant 0 : index
    %c0_88 = arith.constant 0 : index
    %123 = vector.load %arg5[%c3_86, %c0_87, %c0_88] : memref<8x128x64xf32, #tpu.memory_space<vmem>>, vector<1x128x64xf32>
    %124 = vector.shape_cast %123 : vector<1x128x64xf32> to vector<128x64xf32>
    %cst_89 = arith.constant dense<0.000000e+00> : vector<8x64xf32>
    %125 = tpu.matmul %122, %124, %cst_89 {dimension_numbers = #tpu.dot_dimension_numbers<[1], [0], [0], [1], [0, 0, 1, 1], [], []>} : vector<8x128xf32>, vector<128x64xf32>, vector<8x64xf32> -> vector<8x64xf32>
    %c3_90 = arith.constant 3 : index
    %c0_91 = arith.constant 0 : index
    %c0_92 = arith.constant 0 : index
    %126 = vector.load %arg6[%c3_90, %c0_91, %c0_92] : memref<8x1x64xf32, #tpu.memory_space<vmem>>, vector<1x1x64xf32>
    %127 = vector.shape_cast %126 : vector<1x1x64xf32> to vector<1x64xf32>
    %128 = vector.broadcast %127 : vector<1x64xf32> to vector<8x64xf32>
    %129 = arith.addf %125, %128 : vector<8x64xf32>
    %cst_93 = arith.constant 0.000000e+00 : f32
    %130 = vector.broadcast %cst_93 : f32 to vector<8x64xf32>
    %131 = arith.maximumf %129, %130 : vector<8x64xf32>
    %c3_94 = arith.constant 3 : index
    %c0_95 = arith.constant 0 : index
    %c0_96 = arith.constant 0 : index
    %132 = vector.load %arg7[%c3_94, %c0_95, %c0_96] : memref<8x64x4xf32, #tpu.memory_space<vmem>>, vector<1x64x4xf32>
    %133 = vector.shape_cast %132 : vector<1x64x4xf32> to vector<64x4xf32>
    %cst_97 = arith.constant dense<0.000000e+00> : vector<8x4xf32>
    %134 = tpu.matmul %131, %133, %cst_97 {dimension_numbers = #tpu.dot_dimension_numbers<[1], [0], [0], [1], [0, 0, 1, 1], [], []>} : vector<8x64xf32>, vector<64x4xf32>, vector<8x4xf32> -> vector<8x4xf32>
    %c3_98 = arith.constant 3 : index
    %c0_99 = arith.constant 0 : index
    %c0_100 = arith.constant 0 : index
    %135 = vector.load %arg8[%c3_98, %c0_99, %c0_100] : memref<8x1x4xf32, #tpu.memory_space<vmem>>, vector<1x1x4xf32>
    %136 = vector.shape_cast %135 : vector<1x1x4xf32> to vector<1x4xf32>
    %137 = vector.broadcast %136 : vector<1x4xf32> to vector<8x4xf32>
    %138 = arith.addf %134, %137 : vector<8x4xf32>
    %cst_101 = arith.constant dense<0xFF800000> : vector<8xf32>
    %139 = vector.multi_reduction <maximumf>, %138, %cst_101 [1] : vector<8x4xf32> to vector<8xf32>
    %140 = vector.shape_cast %139 : vector<8xf32> to vector<8x1xf32>
    %141 = vector.broadcast %140 : vector<8x1xf32> to vector<8x4xf32>
    %142 = arith.subf %138, %141 : vector<8x4xf32>
    %143 = math.exp %142 : vector<8x4xf32>
    %cst_102 = arith.constant dense<0.000000e+00> : vector<8xf32>
    %144 = vector.multi_reduction <add>, %143, %cst_102 [1] : vector<8x4xf32> to vector<8xf32>
    %145 = vector.shape_cast %144 : vector<8xf32> to vector<8x1xf32>
    %146 = vector.broadcast %145 : vector<8x1xf32> to vector<8x4xf32>
    %147 = arith.divf %143, %146 : vector<8x4xf32>
    %148 = vector.extract_strided_slice %7 {offsets = [0, 1024], sizes = [8, 256], strides = [1, 1]} : vector<8x2048xf32> to vector<8x256xf32>
    %c4 = arith.constant 4 : index
    %c0_103 = arith.constant 0 : index
    %c0_104 = arith.constant 0 : index
    %149 = vector.load %arg3[%c4, %c0_103, %c0_104] : memref<8x256x128xf32, #tpu.memory_space<vmem>>, vector<1x256x128xf32>
    %150 = vector.shape_cast %149 : vector<1x256x128xf32> to vector<256x128xf32>
    %cst_105 = arith.constant dense<0.000000e+00> : vector<8x128xf32>
    %151 = tpu.matmul %148, %150, %cst_105 {dimension_numbers = #tpu.dot_dimension_numbers<[1], [0], [0], [1], [0, 0, 1, 1], [], []>} : vector<8x256xf32>, vector<256x128xf32>, vector<8x128xf32> -> vector<8x128xf32>
    %c4_106 = arith.constant 4 : index
    %c0_107 = arith.constant 0 : index
    %c0_108 = arith.constant 0 : index
    %152 = vector.load %arg4[%c4_106, %c0_107, %c0_108] : memref<8x1x128xf32, #tpu.memory_space<vmem>>, vector<1x1x128xf32>
    %153 = vector.shape_cast %152 : vector<1x1x128xf32> to vector<1x128xf32>
    %154 = vector.broadcast %153 : vector<1x128xf32> to vector<8x128xf32>
    %155 = arith.addf %151, %154 : vector<8x128xf32>
    %cst_109 = arith.constant 0.000000e+00 : f32
    %156 = vector.broadcast %cst_109 : f32 to vector<8x128xf32>
    %157 = arith.maximumf %155, %156 : vector<8x128xf32>
    %c4_110 = arith.constant 4 : index
    %c0_111 = arith.constant 0 : index
    %c0_112 = arith.constant 0 : index
    %158 = vector.load %arg5[%c4_110, %c0_111, %c0_112] : memref<8x128x64xf32, #tpu.memory_space<vmem>>, vector<1x128x64xf32>
    %159 = vector.shape_cast %158 : vector<1x128x64xf32> to vector<128x64xf32>
    %cst_113 = arith.constant dense<0.000000e+00> : vector<8x64xf32>
    %160 = tpu.matmul %157, %159, %cst_113 {dimension_numbers = #tpu.dot_dimension_numbers<[1], [0], [0], [1], [0, 0, 1, 1], [], []>} : vector<8x128xf32>, vector<128x64xf32>, vector<8x64xf32> -> vector<8x64xf32>
    %c4_114 = arith.constant 4 : index
    %c0_115 = arith.constant 0 : index
    %c0_116 = arith.constant 0 : index
    %161 = vector.load %arg6[%c4_114, %c0_115, %c0_116] : memref<8x1x64xf32, #tpu.memory_space<vmem>>, vector<1x1x64xf32>
    %162 = vector.shape_cast %161 : vector<1x1x64xf32> to vector<1x64xf32>
    %163 = vector.broadcast %162 : vector<1x64xf32> to vector<8x64xf32>
    %164 = arith.addf %160, %163 : vector<8x64xf32>
    %cst_117 = arith.constant 0.000000e+00 : f32
    %165 = vector.broadcast %cst_117 : f32 to vector<8x64xf32>
    %166 = arith.maximumf %164, %165 : vector<8x64xf32>
    %c4_118 = arith.constant 4 : index
    %c0_119 = arith.constant 0 : index
    %c0_120 = arith.constant 0 : index
    %167 = vector.load %arg7[%c4_118, %c0_119, %c0_120] : memref<8x64x4xf32, #tpu.memory_space<vmem>>, vector<1x64x4xf32>
    %168 = vector.shape_cast %167 : vector<1x64x4xf32> to vector<64x4xf32>
    %cst_121 = arith.constant dense<0.000000e+00> : vector<8x4xf32>
    %169 = tpu.matmul %166, %168, %cst_121 {dimension_numbers = #tpu.dot_dimension_numbers<[1], [0], [0], [1], [0, 0, 1, 1], [], []>} : vector<8x64xf32>, vector<64x4xf32>, vector<8x4xf32> -> vector<8x4xf32>
    %c4_122 = arith.constant 4 : index
    %c0_123 = arith.constant 0 : index
    %c0_124 = arith.constant 0 : index
    %170 = vector.load %arg8[%c4_122, %c0_123, %c0_124] : memref<8x1x4xf32, #tpu.memory_space<vmem>>, vector<1x1x4xf32>
    %171 = vector.shape_cast %170 : vector<1x1x4xf32> to vector<1x4xf32>
    %172 = vector.broadcast %171 : vector<1x4xf32> to vector<8x4xf32>
    %173 = arith.addf %169, %172 : vector<8x4xf32>
    %cst_125 = arith.constant dense<0xFF800000> : vector<8xf32>
    %174 = vector.multi_reduction <maximumf>, %173, %cst_125 [1] : vector<8x4xf32> to vector<8xf32>
    %175 = vector.shape_cast %174 : vector<8xf32> to vector<8x1xf32>
    %176 = vector.broadcast %175 : vector<8x1xf32> to vector<8x4xf32>
    %177 = arith.subf %173, %176 : vector<8x4xf32>
    %178 = math.exp %177 : vector<8x4xf32>
    %cst_126 = arith.constant dense<0.000000e+00> : vector<8xf32>
    %179 = vector.multi_reduction <add>, %178, %cst_126 [1] : vector<8x4xf32> to vector<8xf32>
    %180 = vector.shape_cast %179 : vector<8xf32> to vector<8x1xf32>
    %181 = vector.broadcast %180 : vector<8x1xf32> to vector<8x4xf32>
    %182 = arith.divf %178, %181 : vector<8x4xf32>
    %183 = vector.extract_strided_slice %7 {offsets = [0, 1280], sizes = [8, 256], strides = [1, 1]} : vector<8x2048xf32> to vector<8x256xf32>
    %c5 = arith.constant 5 : index
    %c0_127 = arith.constant 0 : index
    %c0_128 = arith.constant 0 : index
    %184 = vector.load %arg3[%c5, %c0_127, %c0_128] : memref<8x256x128xf32, #tpu.memory_space<vmem>>, vector<1x256x128xf32>
    %185 = vector.shape_cast %184 : vector<1x256x128xf32> to vector<256x128xf32>
    %cst_129 = arith.constant dense<0.000000e+00> : vector<8x128xf32>
    %186 = tpu.matmul %183, %185, %cst_129 {dimension_numbers = #tpu.dot_dimension_numbers<[1], [0], [0], [1], [0, 0, 1, 1], [], []>} : vector<8x256xf32>, vector<256x128xf32>, vector<8x128xf32> -> vector<8x128xf32>
    %c5_130 = arith.constant 5 : index
    %c0_131 = arith.constant 0 : index
    %c0_132 = arith.constant 0 : index
    %187 = vector.load %arg4[%c5_130, %c0_131, %c0_132] : memref<8x1x128xf32, #tpu.memory_space<vmem>>, vector<1x1x128xf32>
    %188 = vector.shape_cast %187 : vector<1x1x128xf32> to vector<1x128xf32>
    %189 = vector.broadcast %188 : vector<1x128xf32> to vector<8x128xf32>
    %190 = arith.addf %186, %189 : vector<8x128xf32>
    %cst_133 = arith.constant 0.000000e+00 : f32
    %191 = vector.broadcast %cst_133 : f32 to vector<8x128xf32>
    %192 = arith.maximumf %190, %191 : vector<8x128xf32>
    %c5_134 = arith.constant 5 : index
    %c0_135 = arith.constant 0 : index
    %c0_136 = arith.constant 0 : index
    %193 = vector.load %arg5[%c5_134, %c0_135, %c0_136] : memref<8x128x64xf32, #tpu.memory_space<vmem>>, vector<1x128x64xf32>
    %194 = vector.shape_cast %193 : vector<1x128x64xf32> to vector<128x64xf32>
    %cst_137 = arith.constant dense<0.000000e+00> : vector<8x64xf32>
    %195 = tpu.matmul %192, %194, %cst_137 {dimension_numbers = #tpu.dot_dimension_numbers<[1], [0], [0], [1], [0, 0, 1, 1], [], []>} : vector<8x128xf32>, vector<128x64xf32>, vector<8x64xf32> -> vector<8x64xf32>
    %c5_138 = arith.constant 5 : index
    %c0_139 = arith.constant 0 : index
    %c0_140 = arith.constant 0 : index
    %196 = vector.load %arg6[%c5_138, %c0_139, %c0_140] : memref<8x1x64xf32, #tpu.memory_space<vmem>>, vector<1x1x64xf32>
    %197 = vector.shape_cast %196 : vector<1x1x64xf32> to vector<1x64xf32>
    %198 = vector.broadcast %197 : vector<1x64xf32> to vector<8x64xf32>
    %199 = arith.addf %195, %198 : vector<8x64xf32>
    %cst_141 = arith.constant 0.000000e+00 : f32
    %200 = vector.broadcast %cst_141 : f32 to vector<8x64xf32>
    %201 = arith.maximumf %199, %200 : vector<8x64xf32>
    %c5_142 = arith.constant 5 : index
    %c0_143 = arith.constant 0 : index
    %c0_144 = arith.constant 0 : index
    %202 = vector.load %arg7[%c5_142, %c0_143, %c0_144] : memref<8x64x4xf32, #tpu.memory_space<vmem>>, vector<1x64x4xf32>
    %203 = vector.shape_cast %202 : vector<1x64x4xf32> to vector<64x4xf32>
    %cst_145 = arith.constant dense<0.000000e+00> : vector<8x4xf32>
    %204 = tpu.matmul %201, %203, %cst_145 {dimension_numbers = #tpu.dot_dimension_numbers<[1], [0], [0], [1], [0, 0, 1, 1], [], []>} : vector<8x64xf32>, vector<64x4xf32>, vector<8x4xf32> -> vector<8x4xf32>
    %c5_146 = arith.constant 5 : index
    %c0_147 = arith.constant 0 : index
    %c0_148 = arith.constant 0 : index
    %205 = vector.load %arg8[%c5_146, %c0_147, %c0_148] : memref<8x1x4xf32, #tpu.memory_space<vmem>>, vector<1x1x4xf32>
    %206 = vector.shape_cast %205 : vector<1x1x4xf32> to vector<1x4xf32>
    %207 = vector.broadcast %206 : vector<1x4xf32> to vector<8x4xf32>
    %208 = arith.addf %204, %207 : vector<8x4xf32>
    %cst_149 = arith.constant dense<0xFF800000> : vector<8xf32>
    %209 = vector.multi_reduction <maximumf>, %208, %cst_149 [1] : vector<8x4xf32> to vector<8xf32>
    %210 = vector.shape_cast %209 : vector<8xf32> to vector<8x1xf32>
    %211 = vector.broadcast %210 : vector<8x1xf32> to vector<8x4xf32>
    %212 = arith.subf %208, %211 : vector<8x4xf32>
    %213 = math.exp %212 : vector<8x4xf32>
    %cst_150 = arith.constant dense<0.000000e+00> : vector<8xf32>
    %214 = vector.multi_reduction <add>, %213, %cst_150 [1] : vector<8x4xf32> to vector<8xf32>
    %215 = vector.shape_cast %214 : vector<8xf32> to vector<8x1xf32>
    %216 = vector.broadcast %215 : vector<8x1xf32> to vector<8x4xf32>
    %217 = arith.divf %213, %216 : vector<8x4xf32>
    %218 = vector.extract_strided_slice %7 {offsets = [0, 1536], sizes = [8, 256], strides = [1, 1]} : vector<8x2048xf32> to vector<8x256xf32>
    %c6 = arith.constant 6 : index
    %c0_151 = arith.constant 0 : index
    %c0_152 = arith.constant 0 : index
    %219 = vector.load %arg3[%c6, %c0_151, %c0_152] : memref<8x256x128xf32, #tpu.memory_space<vmem>>, vector<1x256x128xf32>
    %220 = vector.shape_cast %219 : vector<1x256x128xf32> to vector<256x128xf32>
    %cst_153 = arith.constant dense<0.000000e+00> : vector<8x128xf32>
    %221 = tpu.matmul %218, %220, %cst_153 {dimension_numbers = #tpu.dot_dimension_numbers<[1], [0], [0], [1], [0, 0, 1, 1], [], []>} : vector<8x256xf32>, vector<256x128xf32>, vector<8x128xf32> -> vector<8x128xf32>
    %c6_154 = arith.constant 6 : index
    %c0_155 = arith.constant 0 : index
    %c0_156 = arith.constant 0 : index
    %222 = vector.load %arg4[%c6_154, %c0_155, %c0_156] : memref<8x1x128xf32, #tpu.memory_space<vmem>>, vector<1x1x128xf32>
    %223 = vector.shape_cast %222 : vector<1x1x128xf32> to vector<1x128xf32>
    %224 = vector.broadcast %223 : vector<1x128xf32> to vector<8x128xf32>
    %225 = arith.addf %221, %224 : vector<8x128xf32>
    %cst_157 = arith.constant 0.000000e+00 : f32
    %226 = vector.broadcast %cst_157 : f32 to vector<8x128xf32>
    %227 = arith.maximumf %225, %226 : vector<8x128xf32>
    %c6_158 = arith.constant 6 : index
    %c0_159 = arith.constant 0 : index
    %c0_160 = arith.constant 0 : index
    %228 = vector.load %arg5[%c6_158, %c0_159, %c0_160] : memref<8x128x64xf32, #tpu.memory_space<vmem>>, vector<1x128x64xf32>
    %229 = vector.shape_cast %228 : vector<1x128x64xf32> to vector<128x64xf32>
    %cst_161 = arith.constant dense<0.000000e+00> : vector<8x64xf32>
    %230 = tpu.matmul %227, %229, %cst_161 {dimension_numbers = #tpu.dot_dimension_numbers<[1], [0], [0], [1], [0, 0, 1, 1], [], []>} : vector<8x128xf32>, vector<128x64xf32>, vector<8x64xf32> -> vector<8x64xf32>
    %c6_162 = arith.constant 6 : index
    %c0_163 = arith.constant 0 : index
    %c0_164 = arith.constant 0 : index
    %231 = vector.load %arg6[%c6_162, %c0_163, %c0_164] : memref<8x1x64xf32, #tpu.memory_space<vmem>>, vector<1x1x64xf32>
    %232 = vector.shape_cast %231 : vector<1x1x64xf32> to vector<1x64xf32>
    %233 = vector.broadcast %232 : vector<1x64xf32> to vector<8x64xf32>
    %234 = arith.addf %230, %233 : vector<8x64xf32>
    %cst_165 = arith.constant 0.000000e+00 : f32
    %235 = vector.broadcast %cst_165 : f32 to vector<8x64xf32>
    %236 = arith.maximumf %234, %235 : vector<8x64xf32>
    %c6_166 = arith.constant 6 : index
    %c0_167 = arith.constant 0 : index
    %c0_168 = arith.constant 0 : index
    %237 = vector.load %arg7[%c6_166, %c0_167, %c0_168] : memref<8x64x4xf32, #tpu.memory_space<vmem>>, vector<1x64x4xf32>
    %238 = vector.shape_cast %237 : vector<1x64x4xf32> to vector<64x4xf32>
    %cst_169 = arith.constant dense<0.000000e+00> : vector<8x4xf32>
    %239 = tpu.matmul %236, %238, %cst_169 {dimension_numbers = #tpu.dot_dimension_numbers<[1], [0], [0], [1], [0, 0, 1, 1], [], []>} : vector<8x64xf32>, vector<64x4xf32>, vector<8x4xf32> -> vector<8x4xf32>
    %c6_170 = arith.constant 6 : index
    %c0_171 = arith.constant 0 : index
    %c0_172 = arith.constant 0 : index
    %240 = vector.load %arg8[%c6_170, %c0_171, %c0_172] : memref<8x1x4xf32, #tpu.memory_space<vmem>>, vector<1x1x4xf32>
    %241 = vector.shape_cast %240 : vector<1x1x4xf32> to vector<1x4xf32>
    %242 = vector.broadcast %241 : vector<1x4xf32> to vector<8x4xf32>
    %243 = arith.addf %239, %242 : vector<8x4xf32>
    %cst_173 = arith.constant dense<0xFF800000> : vector<8xf32>
    %244 = vector.multi_reduction <maximumf>, %243, %cst_173 [1] : vector<8x4xf32> to vector<8xf32>
    %245 = vector.shape_cast %244 : vector<8xf32> to vector<8x1xf32>
    %246 = vector.broadcast %245 : vector<8x1xf32> to vector<8x4xf32>
    %247 = arith.subf %243, %246 : vector<8x4xf32>
    %248 = math.exp %247 : vector<8x4xf32>
    %cst_174 = arith.constant dense<0.000000e+00> : vector<8xf32>
    %249 = vector.multi_reduction <add>, %248, %cst_174 [1] : vector<8x4xf32> to vector<8xf32>
    %250 = vector.shape_cast %249 : vector<8xf32> to vector<8x1xf32>
    %251 = vector.broadcast %250 : vector<8x1xf32> to vector<8x4xf32>
    %252 = arith.divf %248, %251 : vector<8x4xf32>
    %253 = vector.extract_strided_slice %7 {offsets = [0, 1792], sizes = [8, 256], strides = [1, 1]} : vector<8x2048xf32> to vector<8x256xf32>
    %c7 = arith.constant 7 : index
    %c0_175 = arith.constant 0 : index
    %c0_176 = arith.constant 0 : index
    %254 = vector.load %arg3[%c7, %c0_175, %c0_176] : memref<8x256x128xf32, #tpu.memory_space<vmem>>, vector<1x256x128xf32>
    %255 = vector.shape_cast %254 : vector<1x256x128xf32> to vector<256x128xf32>
    %cst_177 = arith.constant dense<0.000000e+00> : vector<8x128xf32>
    %256 = tpu.matmul %253, %255, %cst_177 {dimension_numbers = #tpu.dot_dimension_numbers<[1], [0], [0], [1], [0, 0, 1, 1], [], []>} : vector<8x256xf32>, vector<256x128xf32>, vector<8x128xf32> -> vector<8x128xf32>
    %c7_178 = arith.constant 7 : index
    %c0_179 = arith.constant 0 : index
    %c0_180 = arith.constant 0 : index
    %257 = vector.load %arg4[%c7_178, %c0_179, %c0_180] : memref<8x1x128xf32, #tpu.memory_space<vmem>>, vector<1x1x128xf32>
    %258 = vector.shape_cast %257 : vector<1x1x128xf32> to vector<1x128xf32>
    %259 = vector.broadcast %258 : vector<1x128xf32> to vector<8x128xf32>
    %260 = arith.addf %256, %259 : vector<8x128xf32>
    %cst_181 = arith.constant 0.000000e+00 : f32
    %261 = vector.broadcast %cst_181 : f32 to vector<8x128xf32>
    %262 = arith.maximumf %260, %261 : vector<8x128xf32>
    %c7_182 = arith.constant 7 : index
    %c0_183 = arith.constant 0 : index
    %c0_184 = arith.constant 0 : index
    %263 = vector.load %arg5[%c7_182, %c0_183, %c0_184] : memref<8x128x64xf32, #tpu.memory_space<vmem>>, vector<1x128x64xf32>
    %264 = vector.shape_cast %263 : vector<1x128x64xf32> to vector<128x64xf32>
    %cst_185 = arith.constant dense<0.000000e+00> : vector<8x64xf32>
    %265 = tpu.matmul %262, %264, %cst_185 {dimension_numbers = #tpu.dot_dimension_numbers<[1], [0], [0], [1], [0, 0, 1, 1], [], []>} : vector<8x128xf32>, vector<128x64xf32>, vector<8x64xf32> -> vector<8x64xf32>
    %c7_186 = arith.constant 7 : index
    %c0_187 = arith.constant 0 : index
    %c0_188 = arith.constant 0 : index
    %266 = vector.load %arg6[%c7_186, %c0_187, %c0_188] : memref<8x1x64xf32, #tpu.memory_space<vmem>>, vector<1x1x64xf32>
    %267 = vector.shape_cast %266 : vector<1x1x64xf32> to vector<1x64xf32>
    %268 = vector.broadcast %267 : vector<1x64xf32> to vector<8x64xf32>
    %269 = arith.addf %265, %268 : vector<8x64xf32>
    %cst_189 = arith.constant 0.000000e+00 : f32
    %270 = vector.broadcast %cst_189 : f32 to vector<8x64xf32>
    %271 = arith.maximumf %269, %270 : vector<8x64xf32>
    %c7_190 = arith.constant 7 : index
    %c0_191 = arith.constant 0 : index
    %c0_192 = arith.constant 0 : index
    %272 = vector.load %arg7[%c7_190, %c0_191, %c0_192] : memref<8x64x4xf32, #tpu.memory_space<vmem>>, vector<1x64x4xf32>
    %273 = vector.shape_cast %272 : vector<1x64x4xf32> to vector<64x4xf32>
    %cst_193 = arith.constant dense<0.000000e+00> : vector<8x4xf32>
    %274 = tpu.matmul %271, %273, %cst_193 {dimension_numbers = #tpu.dot_dimension_numbers<[1], [0], [0], [1], [0, 0, 1, 1], [], []>} : vector<8x64xf32>, vector<64x4xf32>, vector<8x4xf32> -> vector<8x4xf32>
    %c7_194 = arith.constant 7 : index
    %c0_195 = arith.constant 0 : index
    %c0_196 = arith.constant 0 : index
    %275 = vector.load %arg8[%c7_194, %c0_195, %c0_196] : memref<8x1x4xf32, #tpu.memory_space<vmem>>, vector<1x1x4xf32>
    %276 = vector.shape_cast %275 : vector<1x1x4xf32> to vector<1x4xf32>
    %277 = vector.broadcast %276 : vector<1x4xf32> to vector<8x4xf32>
    %278 = arith.addf %274, %277 : vector<8x4xf32>
    %cst_197 = arith.constant dense<0xFF800000> : vector<8xf32>
    %279 = vector.multi_reduction <maximumf>, %278, %cst_197 [1] : vector<8x4xf32> to vector<8xf32>
    %280 = vector.shape_cast %279 : vector<8xf32> to vector<8x1xf32>
    %281 = vector.broadcast %280 : vector<8x1xf32> to vector<8x4xf32>
    %282 = arith.subf %278, %281 : vector<8x4xf32>
    %283 = math.exp %282 : vector<8x4xf32>
    %cst_198 = arith.constant dense<0.000000e+00> : vector<8xf32>
    %284 = vector.multi_reduction <add>, %283, %cst_198 [1] : vector<8x4xf32> to vector<8xf32>
    %285 = vector.shape_cast %284 : vector<8xf32> to vector<8x1xf32>
    %286 = vector.broadcast %285 : vector<8x1xf32> to vector<8x4xf32>
    %287 = arith.divf %283, %286 : vector<8x4xf32>
    %288 = tpu.concatenate %42, %77, %112, %147, %182, %217, %252, %287 in 1 : vector<8x4xf32>, vector<8x4xf32>, vector<8x4xf32>, vector<8x4xf32>, vector<8x4xf32>, vector<8x4xf32>, vector<8x4xf32>, vector<8x4xf32> -> vector<8x32xf32>
    %c0_199 = arith.constant 0 : index
    %c0_200 = arith.constant 0 : index
    %289 = vector.load %arg9[%c0_199, %c0_200] : memref<8x32xf32, #tpu.memory_space<vmem>>, vector<8x32xf32>
    tpu.vector_store %arg9[%c0_199, %c0_200], %288 {strides = array<i32>} : memref<8x32xf32, #tpu.memory_space<vmem>>, vector<8x32xf32>,
    return
  }
}

</mosaic_0001>

<bundles_post_ra>
// kernel: evaluator_forward.1
= control target key start
LH: loop header
LB: loop body
LE: loop exit
PB: predicated region body
PF: predicated region fallthrough
CT: control target
= control target key end

     0   :  { %14 = vsyncpa [#allocation3], 0  ;;  %s4738_s30 = smov [#allocation2]   ;;  %s6633_s0 = inlined_call_operand.vmem [shape: f32[8,32], index: 0, kind: input, shape index: {}]   ;;  %s6634_s1 = inlined_call_operand.hbm [shape: f32[32,2048], index: 1, kind: input, shape index: {}]   ;;  %s6635_s2 = inlined_call_operand.vmem [shape: f32[1,2048], index: 2, kind: input, shape index: {}]   ;;  %s6636_s3 = inlined_call_operand.vmem [shape: f32[8,256,128], index: 3, kind: input, shape index: {}]   ;;  %s6637_s4 = inlined_call_operand.vmem [shape: f32[8,1,128], index: 4, kind: input, shape index: {}]   ;;  %s6638_s5 = inlined_call_operand.vmem [shape: f32[8,128,64], index: 5, kind: input, shape index: {}]   ;;  %s6639_s6 = inlined_call_operand.vmem [shape: f32[8,1,64], index: 6, kind: input, shape index: {}]   ;;  %s6640_s7 = inlined_call_operand.vmem [shape: f32[8,64,4], index: 7, kind: input, shape index: {}]   ;;  %s6641_s8 = inlined_call_operand.vmem [shape: f32[8,1,4], index: 8, kind: input, shape index: {}]   ;;  %s6642_s9 = inlined_call_operand.vmem [shape: f32[8,32], index: 9, kind: output, shape index: {}]  }
   0x1   :  { %s22_s10 = sshll.u32 %s4738_s30, 4  ;;  %s23_s10 = int_to_ptr.vmem [resolvable:$true] %s22_s10 }
   0x2   :  { %s4724_s11 = scalar_lea.vmem %s23_s10, 8192  ;;  %p4729_p1 = scmp.lt.s32.totalorder %s23_s10, %s23_s10 }
   0x3   :  { %p4725_p0 = scmp.ne.s32.totalorder %s23_s10, %s4724_s11  ;;  %p4730_p2 = scmp.lt.s32.totalorder %s4724_s11, %s4724_s11 }
   0x5   :  { %p4731_p3 = por %p4730_p2, %p4729_p1 }
   0x7   :  { %p4732_p4 = pnand %p4731_p3, %p4725_p0 }
   0x9   :  { %4735 = shalt.err (!%p4732_p4)
}
   0xa   :  { %s4739_s12 = smov 2048   ;;  %s4740_s13 = smov 128  }
   0xb   :  { %28 = dma.hbm_to_vmem [thread:$0]  %s6634_s1, 8192, %s23_s10, [#allocation3], %s4739_s12, %s4739_s12, %s4740_s13  }
   0xc   :  { %4736 = dma.done.wait [#allocation3], 8192  }
   0xd   :  { %4737 = vsyncadd [#allocation3], 4294959104  ;;  %v4741_v0 = vmov 0.0   ;;  %v96_v1 = vld [vmem:[#allocation2 + $0x188] sm:$0xff]  ;;  %v95_v2 = vld [vmem:[#allocation2 + $0x180] sm:$0xff]  ;;  %vm195_vm0 = vcmask 261120  }
   0xe   :  { %263 = vmatprep.mubr.f32.mxu0 %v4741_v0  ;;  %334 = vmatprep.mubr.f32.mxu1 %v4741_v0  ;;  %v80_v3 = vld [vmem:[#allocation2 + $0x108] sm:$0xff]  ;;  %v79_v4 = vld [vmem:[#allocation2 + $0x100] sm:$0xff]  ;;  %v814_v34 = vld [vmem:[%s6636_s3 + $0xf8] sm:$0xff]  ;;  %vm4742_vm1 = vmmov 0   ;;  %vm1002_vm2 = vcmask 523264   ;;  %vm1076_vm3 = vcmask 31744  }
   0xf   :  { %223 = vmatprep.subr.mxu0 %v96_v1  ;;  %v64_v5 = vld [vmem:[#allocation2 + $0x88] sm:$0xff]  ;;  %v63_v6 = vld [vmem:[#allocation2 + $0x80] sm:$0xff]  ;;  %v798_v35 = vld [vmem:[%s6636_s3 + $0x78] sm:$0xff]  ;;  %s4745_s21 = smov 16   ;;  %s4746_s22 = smov 24   ;;  %vm3280_vm4 = vcmask 64512  }
  0x10   :  { %224 = vmatpush1.msra.mxu0 %v95_v2  ;;  %v48_v7 = vld [vmem:[#allocation2 + $0x8] sm:$0xff]  ;;  %v47_v8 = vld [vmem:[#allocation2] sm:$0xff]  ;;  %v813_v36 = vld [vmem:[%s6636_s3 + $0xf0] sm:$0xff]  ;;  %s4747_s23 = smov 4   ;;  %s4748_s24 = smov 20   ;;  %vm3282_vm5 = vcmask 97280  }
  0x11   :  { %225 = vmatprep.subr.mxu0 %v80_v3  ;;  %v4808_v9 = vld [vmem:[%s6633_s0] sm:$0xff]  ;;  %v100_v10 = vld [vmem:[#allocation2 + $0x1a8] sm:$0xff]  ;;  %v797_v37 = vld [vmem:[%s6636_s3 + $0x70] sm:$0xff]  ;;  %vm3284_vm6 = vcmask 130048   ;;  %vm3286_vm7 = vcmask 162816   ;;  %vm3288_vm8 = vcmask 195584  }
  0x12   :  { %226 = vmatpush1.msra.mxu0 %v79_v4  ;;  %v99_v11 = vld [vmem:[#allocation2 + $0x1a0] sm:$0xff]  ;;  %v84_v12 = vld [vmem:[#allocation2 + $0x128] sm:$0xff]  ;;  %v810_v42 = vld [vmem:[%s6636_s3 + $0xd8] sm:$0xff]  ;;  %vm3290_vm9 = vcmask 228352  }
  0x13   :  { %227 = vmatprep.subr.mxu0 %v64_v5  ;;  %v83_v13 = vld [vmem:[#allocation2 + $0x120] sm:$0xff]  ;;  %v68_v14 = vld [vmem:[#allocation2 + $0xa8] sm:$0xff]  ;;  %v794_v43 = vld [vmem:[%s6636_s3 + $0x58] sm:$0xff] }
  0x14   :  { %228 = vmatpush1.msra.mxu0 %v63_v6  ;;  %v67_v15 = vld [vmem:[#allocation2 + $0xa0] sm:$0xff]  ;;  %v52_v16 = vld [vmem:[#allocation2 + $0x28] sm:$0xff]  ;;  %v809_v44 = vld [vmem:[%s6636_s3 + $0xd0] sm:$0xff] }
  0x15   :  { %229 = vmatprep.subr.mxu0 %v48_v7  ;;  %v51_v17 = vld [vmem:[#allocation2 + $0x20] sm:$0xff]  ;;  %v104_v18 = vld [vmem:[#allocation2 + $0x1c8] sm:$0xff]  ;;  %v793_v45 = vld [vmem:[%s6636_s3 + $0x50] sm:$0xff] }
  0x16   :  { %230 = vmatpush1.msra.mxu0 %v47_v8  ;;  %v103_v19 = vld [vmem:[#allocation2 + $0x1c0] sm:$0xff]  ;;  %v88_v20 = vld [vmem:[#allocation2 + $0x148] sm:$0xff]  ;;  %v806_v50 = vld [vmem:[%s6636_s3 + $0xb8] sm:$0xff] }
  0x17   :  { %3298 = vmatmul.mubr.msk.f32.vlgmr.msra.gmra.mxu0 %vm195_vm0, %v4808_v9  ;;  %365 = vmatprep.subr.mxu0 %v100_v10  ;;  %v87_v21 = vld [vmem:[#allocation2 + $0x140] sm:$0xff]  ;;  %v72_v22 = vld [vmem:[#allocation2 + $0xc8] sm:$0xff]  ;;  %v790_v51 = vld [vmem:[%s6636_s3 + $0x38] sm:$0xff] }
  0x18   :  { %366 = vmatpush1.msra.mxu0 %v99_v11  ;;  %405 = vmatprep.mubr.f32.mxu0 %v4741_v0  ;;  %v71_v23 = vld [vmem:[#allocation2 + $0xc0] sm:$0xff]  ;;  %v56_v24 = vld [vmem:[#allocation2 + $0x48] sm:$0xff]  ;;  %v805_v52 = vld [vmem:[%s6636_s3 + $0xb0] sm:$0xff] }
  0x19   :  { %367 = vmatprep.subr.mxu0 %v84_v12  ;;  %v55_v25 = vld [vmem:[#allocation2 + $0x40] sm:$0xff]  ;;  %v108_v26 = vld [vmem:[#allocation2 + $0x1e8] sm:$0xff]  ;;  %v789_v53 = vld [vmem:[%s6636_s3 + $0x30] sm:$0xff] }
  0x1a   :  { %368 = vmatpush1.msra.mxu0 %v83_v13  ;;  %v107_v27 = vld [vmem:[#allocation2 + $0x1e0] sm:$0xff]  ;;  %v92_v28 = vld [vmem:[#allocation2 + $0x168] sm:$0xff]  ;;  %v802_v58 = vld [vmem:[%s6636_s3 + $0x98] sm:$0xff] }
  0x1b   :  { %369 = vmatprep.subr.mxu0 %v68_v14  ;;  %v91_v29 = vld [vmem:[#allocation2 + $0x160] sm:$0xff]  ;;  %v76_v30 = vld [vmem:[#allocation2 + $0xe8] sm:$0xff]  ;;  %v786_v59 = vld [vmem:[%s6636_s3 + $0x18] sm:$0xff] }
  0x1c   :  { %370 = vmatpush1.msra.mxu0 %v67_v15  ;;  %v75_v31 = vld [vmem:[#allocation2 + $0xe0] sm:$0xff]  ;;  %v60_v32 = vld [vmem:[#allocation2 + $0x68] sm:$0xff]  ;;  %v801_v60 = vld [vmem:[%s6636_s3 + $0x90] sm:$0xff] }
  0x1d   :  { %371 = vmatprep.subr.mxu0 %v52_v16  ;;  %v59_v33 = vld [vmem:[#allocation2 + $0x60] sm:$0xff]  ;;  %v812_v38 = vld [vmem:[%s6636_s3 + $0xe8] sm:$0xff]  ;;  %v785_v61 = vld [vmem:[%s6636_s3 + $0x10] sm:$0xff] }
  0x1e   :  { %372 = vmatpush1.msra.mxu0 %v51_v17  ;;  %v796_v39 = vld [vmem:[%s6636_s3 + $0x68] sm:$0xff]  ;;  %v811_v40 = vld [vmem:[%s6636_s3 + $0xe0] sm:$0xff]  ;;  %v98_v3 = vld [vmem:[#allocation2 + $0x198] sm:$0xff] }
  0x1f   :  { %3300 = vmatmul.mubr.msk.f32.vlgmr.msra.gmra.mxu0 %vm195_vm0, %v4808_v9  ;;  %507 = vmatprep.subr.mxu0 %v104_v18  ;;  %v795_v41 = vld [vmem:[%s6636_s3 + $0x60] sm:$0xff]  ;;  %v808_v46 = vld [vmem:[%s6636_s3 + $0xc8] sm:$0xff]  ;;  %v97_v4 = vld [vmem:[#allocation2 + $0x190] sm:$0xff] }
  0x20   :  { %508 = vmatpush1.msra.mxu0 %v103_v19  ;;  %547 = vmatprep.mubr.f32.mxu0 %v4741_v0  ;;  %v792_v47 = vld [vmem:[%s6636_s3 + $0x48] sm:$0xff]  ;;  %v807_v48 = vld [vmem:[%s6636_s3 + $0xc0] sm:$0xff]  ;;  %v82_v5 = vld [vmem:[#allocation2 + $0x118] sm:$0xff] }
  0x21   :  { %509 = vmatprep.subr.mxu0 %v88_v20  ;;  %v791_v49 = vld [vmem:[%s6636_s3 + $0x40] sm:$0xff]  ;;  %v804_v54 = vld [vmem:[%s6636_s3 + $0xa8] sm:$0xff]  ;;  %294 = vmatprep.subr.mxu1 %v98_v3  ;;  %v81_v6 = vld [vmem:[#allocation2 + $0x110] sm:$0xff] }
  0x22   :  { %510 = vmatpush1.msra.mxu0 %v87_v21  ;;  %v788_v55 = vld [vmem:[%s6636_s3 + $0x28] sm:$0xff]  ;;  %v803_v56 = vld [vmem:[%s6636_s3 + $0xa0] sm:$0xff]  ;;  %295 = vmatpush1.msra.mxu1 %v97_v4  ;;  %v66_v7 = vld [vmem:[#allocation2 + $0x98] sm:$0xff] }
  0x23   :  { %511 = vmatprep.subr.mxu0 %v72_v22  ;;  %v787_v57 = vld [vmem:[%s6636_s3 + $0x20] sm:$0xff]  ;;  %v800_v62 = vld [vmem:[%s6636_s3 + $0x88] sm:$0xff]  ;;  %296 = vmatprep.subr.mxu1 %v82_v5  ;;  %v65_v8 = vld [vmem:[#allocation2 + $0x90] sm:$0xff] }
  0x24   :  { %512 = vmatpush1.msra.mxu0 %v71_v23  ;;  %v784_v63 = vld [vmem:[%s6636_s3 + $0x8] sm:$0xff]  ;;  %v799_v1 = vld [vmem:[%s6636_s3 + $0x80] sm:$0xff]  ;;  %297 = vmatpush1.msra.mxu1 %v81_v6  ;;  %v50_v10 = vld [vmem:[#allocation2 + $0x18] sm:$0xff] }
  0x25   :  { %513 = vmatprep.subr.mxu0 %v56_v24  ;;  %v783_v2 = vld [vmem:[%s6636_s3] sm:$0xff]  ;;  %298 = vmatprep.subr.mxu1 %v66_v7  ;;  %v49_v11 = vld [vmem:[#allocation2 + $0x10] sm:$0xff]  ;;  %v102_v12 = vld [vmem:[#allocation2 + $0x1b8] sm:$0xff] }
  0x26   :  { %514 = vmatpush1.msra.mxu0 %v55_v25  ;;  %299 = vmatpush1.msra.mxu1 %v65_v8  ;;  %v101_v13 = vld [vmem:[#allocation2 + $0x1b0] sm:$0xff]  ;;  %v86_v14 = vld [vmem:[#allocation2 + $0x138] sm:$0xff] }
  0x27   :  { %3302 = vmatmul.mubr.msk.f32.vlgmr.msra.gmra.mxu0 %vm195_vm0, %v4808_v9  ;;  %649 = vmatprep.subr.mxu0 %v108_v26  ;;  %v85_v15 = vld [vmem:[#allocation2 + $0x130] sm:$0xff]  ;;  %v70_v16 = vld [vmem:[#allocation2 + $0xb8] sm:$0xff] }
  0x28   :  { %650 = vmatpush1.msra.mxu0 %v107_v27  ;;  %689 = vmatprep.mubr.f32.mxu0 %v4741_v0  ;;  %v69_v17 = vld [vmem:[#allocation2 + $0xb0] sm:$0xff]  ;;  %v54_v18 = vld [vmem:[#allocation2 + $0x38] sm:$0xff] }
  0x29   :  { %651 = vmatprep.subr.mxu0 %v92_v28  ;;  %300 = vmatprep.subr.mxu1 %v50_v10  ;;  %v53_v19 = vld [vmem:[#allocation2 + $0x30] sm:$0xff]  ;;  %v106_v20 = vld [vmem:[#allocation2 + $0x1d8] sm:$0xff] }
  0x2a   :  { %652 = vmatpush1.msra.mxu0 %v91_v29  ;;  %301 = vmatpush1.msra.mxu1 %v49_v11  ;;  %v105_v21 = vld [vmem:[#allocation2 + $0x1d0] sm:$0xff]  ;;  %v90_v22 = vld [vmem:[#allocation2 + $0x158] sm:$0xff]  ;;  %v894_v11 = vld [vmem:[%s6638_s5 + $0x8] sm:$0xff] }
  0x2b   :  { %653 = vmatprep.subr.mxu0 %v76_v30  ;;  %3299 = vmatmul.mubr.msk.f32.vlgmr.msra.gmra.mxu1 %vm195_vm0, %v4808_v9  ;;  %v89_v23 = vld [vmem:[#allocation2 + $0x150] sm:$0xff]  ;;  %v74_v24 = vld [vmem:[#allocation2 + $0xd8] sm:$0xff] }
  0x2c   :  { %654 = vmatpush1.msra.mxu0 %v75_v31  ;;  %436 = vmatprep.subr.mxu1 %v102_v12  ;;  %v73_v25 = vld [vmem:[#allocation2 + $0xd0] sm:$0xff]  ;;  %v58_v26 = vld [vmem:[#allocation2 + $0x58] sm:$0xff]  ;;  %v893_v12 = vld [vmem:[%s6638_s5] sm:$0xff] }
  0x2d   :  { %655 = vmatprep.subr.mxu0 %v60_v32  ;;  %437 = vmatpush1.msra.mxu1 %v101_v13  ;;  %v57_v27 = vld [vmem:[#allocation2 + $0x50] sm:$0xff]  ;;  %v110_v28 = vld [vmem:[#allocation2 + $0x1f8] sm:$0xff] }
  0x2e   :  { %656 = vmatpush1.msra.mxu0 %v59_v33  ;;  %476 = vmatprep.mubr.f32.mxu1 %v4741_v0  ;;  %v109_v29 = vld [vmem:[#allocation2 + $0x1f0] sm:$0xff]  ;;  %v94_v30 = vld [vmem:[#allocation2 + $0x178] sm:$0xff] }
  0x2f   :  { %3304 = vmatmul.mubr.msk.f32.vlgmr.msra.gmra.mxu0 %vm195_vm0, %v4808_v9  ;;  %3751 = vmatprep.subr.mxu0 %v814_v34  ;;  %v93_v31 = vld [vmem:[#allocation2 + $0x170] sm:$0xff]  ;;  %v78_v32 = vld [vmem:[#allocation2 + $0xf8] sm:$0xff] }
  0x30   :  { %3752 = vmatpush3.msra.mxu0 %v798_v35  ;;  %438 = vmatprep.subr.mxu1 %v86_v14  ;;  %v77_v33 = vld [vmem:[#allocation2 + $0xf0] sm:$0xff]  ;;  %v62_v34 = vld [vmem:[#allocation2 + $0x78] sm:$0xff] }
  0x31   :  { %3753 = vmatprep.subr.mxu0 %v813_v36  ;;  %439 = vmatpush1.msra.mxu1 %v85_v15  ;;  %v61_v35 = vld [vmem:[#allocation2 + $0x70] sm:$0xff]  ;;  %v908_v36 = vld [vmem:[%s6638_s5 + $0x78] sm:$0xff] }
  0x32   :  { %3754 = vmatpush3.msra.mxu0 %v797_v37  ;;  %440 = vmatprep.subr.mxu1 %v70_v16  ;;  %v907_v37 = vld [vmem:[%s6638_s5 + $0x70] sm:$0xff]  ;;  %v896_v8 = vld [vmem:[%s6638_s5 + $0x18] sm:$0xff] }
  0x33   :  { %3755 = vmatprep.subr.mxu0 %v812_v38  ;;  %441 = vmatpush1.msra.mxu1 %v69_v17  ;;  %v906_v38 = vld [vmem:[%s6638_s5 + $0x68] sm:$0xff]  ;;  %v895_v10 = vld [vmem:[%s6638_s5 + $0x10] sm:$0xff]  ;;  %v3341_v13 = vld [vmem:[%s6636_s3 + $0x1f8] sm:$0xff] }
  0x34   :  { %3756 = vmatpush3.msra.mxu0 %v796_v39  ;;  %442 = vmatprep.subr.mxu1 %v54_v18  ;;  %v904_v39 = vld [vmem:[%s6638_s5 + $0x58] sm:$0xff] }
  0x35   :  { %3757 = vmatprep.subr.mxu0 %v811_v40  ;;  %443 = vmatpush1.msra.mxu1 %v53_v19  ;;  %v903_v40 = vld [vmem:[%s6638_s5 + $0x50] sm:$0xff]  ;;  %v994_v18 = vld [vmem:[%s6640_s7 + $0x38] sm:$0xff] }
  0x36   :  { %3758 = vmatpush3.msra.mxu0 %v795_v41  ;;  %3301 = vmatmul.mubr.msk.f32.vlgmr.msra.gmra.mxu1 %vm195_vm0, %v4808_v9  ;;  %v902_v41 = vld [vmem:[%s6638_s5 + $0x48] sm:$0xff]  ;;  %v993_v19 = vld [vmem:[%s6640_s7 + $0x30] sm:$0xff] }
  0x37   :  { %3759 = vmatprep.subr.mxu0 %v810_v42  ;;  %578 = vmatprep.subr.mxu1 %v106_v20  ;;  %v901_v42 = vld [vmem:[%s6638_s5 + $0x40] sm:$0xff] }
  0x38   :  { %3760 = vmatpush3.msra.mxu0 %v794_v43  ;;  %579 = vmatpush1.msra.mxu1 %v105_v21  ;;  %v900_v43 = vld [vmem:[%s6638_s5 + $0x38] sm:$0xff] }
  0x39   :  { %3761 = vmatprep.subr.mxu0 %v809_v44  ;;  %618 = vmatprep.mubr.f32.mxu1 %v4741_v0  ;;  %v899_v44 = vld [vmem:[%s6638_s5 + $0x30] sm:$0xff] }
  0x3a   :  { %3762 = vmatpush3.msra.mxu0 %v793_v45  ;;  %580 = vmatprep.subr.mxu1 %v90_v22  ;;  %v898_v45 = vld [vmem:[%s6638_s5 + $0x28] sm:$0xff] }
  0x3b   :  { %3763 = vmatprep.subr.mxu0 %v808_v46  ;;  %581 = vmatpush1.msra.mxu1 %v89_v23  ;;  %v897_v46 = vld [vmem:[%s6638_s5 + $0x20] sm:$0xff]  ;;  %v992_v23 = vld [vmem:[%s6640_s7 + $0x28] sm:$0xff] }
  0x3c   :  { %3764 = vmatpush3.msra.mxu0 %v792_v47  ;;  %582 = vmatprep.subr.mxu1 %v74_v24  ;;  %v115_v47 = vlaneseq }
  0x3d   :  { %3765 = vmatprep.subr.mxu0 %v807_v48  ;;  %583 = vmatpush1.msra.mxu1 %v73_v25 }
  0x3e   :  { %3766 = vmatpush3.msra.mxu0 %v791_v49  ;;  %584 = vmatprep.subr.mxu1 %v58_v26  ;;  %v4978_v48 = vshrl.u32 %v115_v47, 7  ;;  %v3339_v47 = vld [vmem:[%s6636_s3 + $0x1e8] sm:$0xff] }
  0x3f   :  { %3767 = vmatprep.subr.mxu0 %v806_v50  ;;  %585 = vmatpush1.msra.mxu1 %v57_v27  ;;  %v4984_v50 = vld [vmem:[%s6635_s2] sm:$0xff] }
  0x40   :  { %3768 = vmatpush3.msra.mxu0 %v790_v51  ;;  %3303 = vmatmul.mubr.msk.f32.vlgmr.msra.gmra.mxu1 %vm195_vm0, %v4808_v9  ;;  %v117_v49 = vsub.s32 0, %v4978_v48  ;;  %v121_v51 = vsub.s32 1, %v4978_v48  ;;  %v133_v3 = vsub.s32 4, %v4978_v48  ;;  %v125_v16 = vsub.s32 2, %v4978_v48  ;;  %v991_v27 = vld [vmem:[%s6640_s7 + $0x20] sm:$0xff] }
  0x41   :  { %3769 = vmatprep.subr.mxu0 %v805_v52  ;;  %720 = vmatprep.subr.mxu1 %v110_v28  ;;  %v129_v20 = vsub.s32 3, %v4978_v48  ;;  %v141_v24 = vsub.s32 6, %v4978_v48 }
  0x42   :  { %3770 = vmatpush3.msra.mxu0 %v789_v53  ;;  %721 = vmatpush1.msra.mxu1 %v109_v29  ;;  %v118_v52 = vrot.slane %v4984_v50, %v117_v49  ;;  %v122_v53 = vrot.slane %v4984_v50, %v121_v51 }
  0x43   :  { %3771 = vmatprep.subr.mxu0 %v804_v54  ;;  %760 = vmatprep.mubr.f32.mxu1 %v4741_v0 }
  0x44   :  { %3772 = vmatpush3.msra.mxu0 %v788_v55  ;;  %722 = vmatprep.subr.mxu1 %v94_v30 }
  0x45   :  { %3773 = vmatprep.subr.mxu0 %v803_v56  ;;  %723 = vmatpush1.msra.mxu1 %v93_v31  ;;  %v990_v31 = vld [vmem:[%s6640_s7 + $0x18] sm:$0xff] }
  0x46   :  { %3774 = vmatpush3.msra.mxu0 %v787_v57  ;;  %724 = vmatprep.subr.mxu1 %v78_v32 }
  0x47   :  { %3775 = vmatprep.subr.mxu0 %v802_v58  ;;  %725 = vmatpush1.msra.mxu1 %v77_v33 }
  0x48   :  { %3776 = vmatpush3.msra.mxu0 %v786_v59  ;;  %726 = vmatprep.subr.mxu1 %v62_v34 }
  0x49   :  { %3777 = vmatprep.subr.mxu0 %v801_v60  ;;  %727 = vmatpush1.msra.mxu1 %v61_v35 }
  0x4a   :  { %3778 = vmatpush3.msra.mxu0 %v785_v61  ;;  %3305 = vmatmul.mubr.msk.f32.vlgmr.msra.gmra.mxu1 %vm195_vm0, %v4808_v9  ;;  %v905_v9 = vld [vmem:[%s6638_s5 + $0x60] sm:$0xff]  ;;  %v112_v61 = vld [vmem:[%s6635_s2 + $0x8] sm:$0xff] }
  0x4b   :  { %3779 = vmatprep.subr.mxu0 %v800_v62  ;;  %4239 = vmatprep.subr.mxu1 %v4741_v0  ;;  %v166_v5 = vrot.slane %v112_v61, %v133_v3  ;;  %v158_v21 = vrot.slane %v112_v61, %v125_v16  ;;  %v162_v25 = vrot.slane %v112_v61, %v129_v20 }
  0x4c   :  { %3780 = vmatpush3.msra.mxu0 %v784_v63  ;;  %4240 = vmatpush3.msra.mxu1 %v908_v36  ;;  %v154_v63 = vrot.slane %v112_v61, %v121_v51  ;;  %v174_v29 = vrot.slane %v112_v61, %v141_v24  ;;  %v130_v36 = vrot.slane %v4984_v50, %v129_v20  ;;  %v3323_v51 = vld [vmem:[%s6636_s3 + $0x168] sm:$0xff]  ;;  %v3334_v61 = vld [vmem:[%s6636_s3 + $0x1c0] sm:$0xff]  ;;  %v3328_v20 = vld [vmem:[%s6636_s3 + $0x190] sm:$0xff] }
  0x4d   :  { %3781 = vmatprep.subr.mxu0 %v799_v1  ;;  %4241 = vmatprep.subr.mxu1 %v4741_v0 }
  0x4e   :  { %3782 = vmatpush3.msra.mxu0 %v783_v2  ;;  %4242 = vmatpush3.msra.mxu1 %v907_v37 }
  0x4f   :  { %4274 = vmatprep.subr.mxu0 %v4741_v0  ;;  %4243 = vmatprep.subr.mxu1 %v4741_v0 }
  0x50   :  { %4244 = vmatpush3.msra.mxu1 %v906_v38  ;;  %4271 = vmatprep.mubr.msk.f32.mxu1 %vm4742_vm1, %v4741_v0  ;;  %v3306_v38 = vld [vmem:[%s6637_s4] ss:$0 sm:$0xff] }
  0x51   :  { %4245 = vmatprep.subr.mxu1 %v4741_v0 }
  0x52   :  { %4246 = vmatpush3.msra.mxu1 %v905_v9 }
  0x53   :  { %4247 = vmatprep.subr.mxu1 %v4741_v0 }
  0x54   :  { %4248 = vmatpush3.msra.mxu1 %v904_v39 }
  0x55   :  { %4249 = vmatprep.subr.mxu1 %v4741_v0 }
  0x56   :  { %4250 = vmatpush3.msra.mxu1 %v903_v40 }
  0x57   :  { %4251 = vmatprep.subr.mxu1 %v4741_v0 }
  0x58   :  { %4252 = vmatpush3.msra.mxu1 %v902_v41 }
  0x59   :  { %4253 = vmatprep.subr.mxu1 %v4741_v0 }
  0x5a   :  { %4254 = vmatpush3.msra.mxu1 %v901_v42 }
  0x5b   :  { %4255 = vmatprep.subr.mxu1 %v4741_v0 }
  0x5c   :  { %4256 = vmatpush3.msra.mxu1 %v900_v43 }
  0x5d   :  { %4257 = vmatprep.subr.mxu1 %v4741_v0 }
  0x5e   :  { %4258 = vmatpush3.msra.mxu1 %v899_v44  ;;  %v3325_v44 = vld [vmem:[%s6636_s3 + $0x178] sm:$0xff] }
  0x5f   :  { %4259 = vmatprep.subr.mxu1 %v4741_v0 }
  0x60   :  { %4260 = vmatpush3.msra.mxu1 %v898_v45  ;;  %v3340_v45 = vld [vmem:[%s6636_s3 + $0x1f0] sm:$0xff] }
  0x61   :  { %4261 = vmatprep.subr.mxu1 %v4741_v0 }
  0x62   :  { %4262 = vmatpush3.msra.mxu1 %v897_v46  ;;  %v3324_v46 = vld [vmem:[%s6636_s3 + $0x170] sm:$0xff] }
  0x63   :  { %4263 = vmatprep.subr.mxu1 %v4741_v0 }
  0x64   :  { %4264 = vmatpush3.msra.mxu1 %v896_v8  ;;  %v3316_v8 = vld [vmem:[%s6636_s3 + $0x130] sm:$0xff] }
  0x65   :  { %4265 = vmatprep.subr.mxu1 %v4741_v0 }
  0x66   :  { %4266 = vmatpush3.msra.mxu1 %v895_v10  ;;  %v3331_v10 = vld [vmem:[%s6636_s3 + $0x1a8] sm:$0xff] }
  0x67   :  { %4267 = vmatprep.subr.mxu1 %v4741_v0 }
  0x68   :  { %4268 = vmatpush3.msra.mxu1 %v894_v11  ;;  %v3315_v11 = vld [vmem:[%s6636_s3 + $0x128] sm:$0xff] }
  0x69   :  { %4269 = vmatprep.subr.mxu1 %v4741_v0 }
  0x6a   :  { %4270 = vmatpush3.msra.mxu1 %v893_v12  ;;  %v3330_v12 = vld [vmem:[%s6636_s3 + $0x1a0] sm:$0xff] }
  0x6b   :  { %3812 = vmatprep.subr.mxu1 %v3341_v13  ;;  %v3314_v13 = vld [vmem:[%s6636_s3 + $0x120] sm:$0xff] }
  0xd7   :  { %v265_v54 = vpop.f32.mrf.mxu0 }
  0xd8   :  { %v266_v55 = vadd.f32 %v265_v54, %v118_v52  ;;  %v3338_v52 = vld [vmem:[%s6636_s3 + $0x1e0] sm:$0xff]  ;;  %v3337_v54 = vld [vmem:[%s6636_s3 + $0x1d8] sm:$0xff] }
  0xd9   :  { %v267_v56 = vpop.f32.mrf.mxu0 }
  0xda   :  { %v268_v57 = vadd.f32 %v267_v56, %v122_v53  ;;  %v767_v59 = vmax.f32 %v266_v55, 0.0  ;;  %v3322_v53 = vld [vmem:[%s6636_s3 + $0x160] sm:$0xff]  ;;  %v3321_v55 = vld [vmem:[%s6636_s3 + $0x158] sm:$0xff]  ;;  %v3336_v56 = vld [vmem:[%s6636_s3 + $0x1d0] sm:$0xff] }
  0xdc   :  { %v768_v58 = vmax.f32 %v268_v57, 0.0  ;;  %v3320_v57 = vld [vmem:[%s6636_s3 + $0x150] sm:$0xff] }
  0xde   :  { %886 = vmatprep.mubr.f32.mxu0 %v768_v58  ;;  %v3335_v58 = vld [vmem:[%s6636_s3 + $0x1c8] sm:$0xff] }
  0xdf   :  { %887 = vmatmul.mubr.f32.vlgmr.msra.gmra.mxu0 %v767_v59  ;;  %v4991_v60 = vpop.f32.mrf.mxu0  ;;  %v3319_v59 = vld [vmem:[%s6636_s3 + $0x148] sm:$0xff] }
  0xe0   :  { %4290 = vmatprep.mubr.msk.f32.mxu0 %vm4742_vm1, %v4741_v0  ;;  %4275 = vmatpush3.msra.mxu0 %v994_v18  ;;  %v126_v18 = vrot.slane %v4984_v50, %v125_v16  ;;  %v3327_v16 = vld [vmem:[%s6636_s3 + $0x188] sm:$0xff] }
  0xe1   :  { %v4996_v62 = vpop.f32.mrf.mxu0  ;;  %4276 = vmatprep.subr.mxu0 %v4741_v0 }
  0xe2   :  { %4277 = vmatpush3.msra.mxu0 %v993_v19  ;;  %v3313_v19 = vld [vmem:[%s6636_s3 + $0x118] sm:$0xff] }
  0xe3   :  { %4278 = vmatprep.subr.mxu0 %v4741_v0 }
  0xe4   :  { %4279 = vmatpush3.msra.mxu0 %v992_v23 }
  0xe5   :  { %4280 = vmatprep.subr.mxu0 %v4741_v0 }
  0xe6   :  { %4281 = vmatpush3.msra.mxu0 %v991_v27  ;;  %v3310_v27 = vld [vmem:[%s6636_s3 + $0x100] sm:$0xff] }
  0xe7   :  { %v4998_v1 = vpop.f32.mrf.mxu0  ;;  %4282 = vmatprep.subr.mxu0 %v4741_v0 }
  0xe8   :  { %4283 = vmatpush3.msra.mxu0 %v990_v31  ;;  %v987_v31 = vld [vmem:[%s6640_s7] sm:$0xff] }
  0xe9   :  { %v551_v2 = vpop.f32.mrf.mxu0  ;;  %4284 = vmatprep.subr.mxu0 %v4741_v0 }
  0xea   :  { %v5001_v4 = vadd.f32 %v551_v2, %v154_v63  ;;  %v3318_v63 = vld [vmem:[%s6636_s3 + $0x140] sm:$0xff]  ;;  %v3333_v2 = vld [vmem:[%s6636_s3 + $0x1b8] sm:$0xff] }
  0xeb   :  { %v5029_v14 = vpop.f32.mrf.mxu1 }
  0xec   :  { %v337_v23 = vadd.f32 %v5029_v14, %v126_v18  ;;  %v989_v14 = vld [vmem:[%s6640_s7 + $0x10] sm:$0xff] }
  0xed   :  { %v338_v15 = vpop.f32.mrf.mxu1  ;;  %4285 = vmatpush3.msra.mxu0 %v989_v14  ;;  %v3403_v18 = vld [vmem:[%s6636_s3 + $0x2f0] sm:$0xff]  ;;  %v3382_v14 = vld [vmem:[%s6636_s3 + $0x248] sm:$0xff] }
  0xee   :  { %v339_v39 = vadd.f32 %v338_v15, %v130_v36  ;;  %v3329_v15 = vld [vmem:[%s6636_s3 + $0x198] sm:$0xff]  ;;  %4286 = vmatprep.subr.mxu0 %v4741_v0  ;;  %v3307_v36 = vld [vmem:[%s6639_s6] ss:$0 sm:$0xff] }
  0xef   :  { %v691_v6 = vpop.f32.mrf.mxu0 }
  0xf0   :  { %v5005_v7 = vadd.f32 %v691_v6, %v166_v5  ;;  %v770_v42 = vmax.f32 %v339_v39, 0.0  ;;  %v3317_v5 = vld [vmem:[%s6636_s3 + $0x138] sm:$0xff]  ;;  %v3332_v6 = vld [vmem:[%s6636_s3 + $0x1b0] sm:$0xff] }
  0xf1   :  { %v5068_v35 = vpop.f32.mrf.mxu0 }
  0xf6   :  { %v5032_v17 = vpop.f32.mrf.mxu1 }
  0xf8   :  { %v5043_v22 = vpop.f32.mrf.mxu1 }
 0x100   :  { %v620_v26 = vpop.f32.mrf.mxu1 }
 0x101   :  { %v5054_v28 = vadd.f32 %v620_v26, %v158_v21  ;;  %v3312_v21 = vld [vmem:[%s6636_s3 + $0x110] sm:$0xff]  ;;  %v3326_v26 = vld [vmem:[%s6636_s3 + $0x180] sm:$0xff] }
 0x102   :  { %v622_v30 = vpop.f32.mrf.mxu1 }
 0x103   :  { %v5062_v32 = vadd.f32 %v622_v30, %v162_v25  ;;  %v3311_v25 = vld [vmem:[%s6636_s3 + $0x108] sm:$0xff] }
 0x104   :  { %v988_v30 = vld [vmem:[%s6640_s7 + $0x8] sm:$0xff] }
 0x105   :  { %4287 = vmatpush3.msra.mxu0 %v988_v30  ;;  %v3397_v30 = vld [vmem:[%s6636_s3 + $0x2c0] sm:$0xff] }
 0x106   :  { %4288 = vmatprep.subr.mxu0 %v4741_v0 }
 0x107   :  { %4289 = vmatpush3.msra.mxu0 %v987_v31  ;;  %v3381_v31 = vld [vmem:[%s6636_s3 + $0x240] sm:$0xff] }
 0x108   :  { %4293 = vmatprep.subr.mxu0 %v4741_v0 }
 0x10a   :  { %v762_v33 = vpop.f32.mrf.mxu1 }
 0x10b   :  { %v5065_v34 = vadd.f32 %v762_v33, %v174_v29  ;;  %v769_v29 = vmax.f32 %v337_v23, 0.0  ;;  %v3400_v23 = vld [vmem:[%s6636_s3 + $0x2d8] sm:$0xff] }
 0x10c   :  { %v5186_v33 = vpop.f32.mrf.mxu1 }
 0x19f   :  { %v3783_v37 = vpop.f32.mrf.mxu0 }
 0x1a1   :  { %v3784_v9 = vpop.f32.mrf.mxu0 }
 0x1a2   :  { %v3785_v40 = vadd.f32 %v3784_v9, %v3783_v37 }
 0x1a4   :  { %v889_v41 = vadd.f32 %v3785_v40, %v3306_v38  ;;  %v3359_v40 = vld [vmem:[%s6638_s5 + $0xf8] sm:$0xff] }
 0x1a6   :  { %v892_v43 = vmax.f32 %v889_v41, 0.0  ;;  %v3358_v41 = vld [vmem:[%s6638_s5 + $0xf0] sm:$0xff] }
 0x1a8   :  { %4272 = vmatmul.mubr.f32.vlgmr.msra.gmra.mxu1 %v892_v43  ;;  %v3356_v43 = vld [vmem:[%s6638_s5 + $0xe0] sm:$0xff] }
 0x1a9   :  { %3813 = vmatpush3.msra.mxu1 %v3325_v44  ;;  %1193 = vmatprep.mubr.f32.mxu1 %v770_v42  ;;  %v3357_v42 = vld [vmem:[%s6638_s5 + $0xe8] sm:$0xff]  ;;  %v3355_v44 = vld [vmem:[%s6638_s5 + $0xd8] sm:$0xff] }
 0x1aa   :  { %3814 = vmatprep.subr.mxu1 %v3340_v45  ;;  %v3354_v45 = vld [vmem:[%s6638_s5 + $0xd0] sm:$0xff] }
 0x1ab   :  { %3815 = vmatpush3.msra.mxu1 %v3324_v46  ;;  %v3353_v46 = vld [vmem:[%s6638_s5 + $0xc8] sm:$0xff] }
 0x1ac   :  { %3816 = vmatprep.subr.mxu1 %v3339_v47  ;;  %v3352_v47 = vld [vmem:[%s6638_s5 + $0xc0] sm:$0xff] }
 0x1ad   :  { %3817 = vmatpush3.msra.mxu1 %v3323_v51  ;;  %v3351_v51 = vld [vmem:[%s6638_s5 + $0xb8] sm:$0xff] }
 0x1ae   :  { %3818 = vmatprep.subr.mxu1 %v3338_v52  ;;  %v3350_v52 = vld [vmem:[%s6638_s5 + $0xb0] sm:$0xff] }
 0x1af   :  { %3819 = vmatpush3.msra.mxu1 %v3322_v53  ;;  %v3349_v53 = vld [vmem:[%s6638_s5 + $0xa8] sm:$0xff] }
 0x1b0   :  { %3820 = vmatprep.subr.mxu1 %v3337_v54  ;;  %v3348_v54 = vld [vmem:[%s6638_s5 + $0xa0] sm:$0xff] }
 0x1b1   :  { %3821 = vmatpush3.msra.mxu1 %v3321_v55  ;;  %v3347_v55 = vld [vmem:[%s6638_s5 + $0x98] sm:$0xff] }
 0x1b2   :  { %3822 = vmatprep.subr.mxu1 %v3336_v56  ;;  %v137_v56 = vsub.s32 5, %v4978_v48 }
 0x1b3   :  { %3823 = vmatpush3.msra.mxu1 %v3320_v57  ;;  %v3346_v57 = vld [vmem:[%s6638_s5 + $0x90] sm:$0xff] }
 0x1b4   :  { %3824 = vmatprep.subr.mxu1 %v3335_v58  ;;  %v3345_v58 = vld [vmem:[%s6638_s5 + $0x88] sm:$0xff] }
 0x1b5   :  { %3825 = vmatpush3.msra.mxu1 %v3319_v59  ;;  %v138_v59 = vrot.slane %v4984_v50, %v137_v56 }
 0x1b6   :  { %3826 = vmatprep.subr.mxu1 %v3334_v61 }
 0x1b7   :  { %3827 = vmatpush3.msra.mxu1 %v3318_v63  ;;  %v3344_v63 = vld [vmem:[%s6638_s5 + $0x80] sm:$0xff] }
 0x1b8   :  { %3828 = vmatprep.subr.mxu1 %v3333_v2  ;;  %v3343_v2 = vld [vmem:[%s6637_s4 + $0x1] ss:$0 sm:$0xff] }
 0x1b9   :  { %3829 = vmatpush3.msra.mxu1 %v3317_v5 }
 0x1ba   :  { %3830 = vmatprep.subr.mxu1 %v3332_v6  ;;  %v3404_v6 = vld [vmem:[%s6636_s3 + $0x2f8] sm:$0xff] }
 0x1bb   :  { %3831 = vmatpush3.msra.mxu1 %v3316_v8 }
 0x1bc   :  { %3832 = vmatprep.subr.mxu1 %v3331_v10  ;;  %v410_v10 = vadd.f32 %v4996_v62, %v138_v59  ;;  %v3402_v62 = vld [vmem:[%s6636_s3 + $0x2e8] sm:$0xff]  ;;  %v3366_v59 = vld [vmem:[%s6640_s7 + $0x60] sm:$0xff] }
 0x1bd   :  { %3833 = vmatpush3.msra.mxu1 %v3315_v11 }
 0x1be   :  { %3834 = vmatprep.subr.mxu1 %v3330_v12 }
 0x1bf   :  { %3835 = vmatpush3.msra.mxu1 %v3314_v13  ;;  %v3388_v13 = vld [vmem:[%s6636_s3 + $0x278] sm:$0xff] }
 0x1c0   :  { %3836 = vmatprep.subr.mxu1 %v3329_v15  ;;  %v772_v15 = vmax.f32 %v410_v10, 0.0  ;;  %v3361_v10 = vld [vmem:[%s6639_s6 + $0x1] ss:$0 sm:$0xff] }
 0x1c1   :  { %3837 = vmatpush3.msra.mxu1 %v3313_v19  ;;  %v3387_v19 = vld [vmem:[%s6636_s3 + $0x270] sm:$0xff] }
 0x1c2   :  { %3838 = vmatprep.subr.mxu1 %v3328_v20  ;;  %v3386_v20 = vld [vmem:[%s6636_s3 + $0x268] sm:$0xff] }
 0x1c3   :  { %3839 = vmatpush3.msra.mxu1 %v3312_v21  ;;  %v3401_v21 = vld [vmem:[%s6636_s3 + $0x2e0] sm:$0xff] }
 0x1c4   :  { %3840 = vmatprep.subr.mxu1 %v3327_v16  ;;  %v3385_v16 = vld [vmem:[%s6636_s3 + $0x260] sm:$0xff] }
 0x1c5   :  { %3841 = vmatpush3.msra.mxu1 %v3311_v25  ;;  %v3384_v25 = vld [vmem:[%s6636_s3 + $0x258] sm:$0xff] }
 0x1c6   :  { %3842 = vmatprep.subr.mxu1 %v3326_v26  ;;  %v3399_v26 = vld [vmem:[%s6636_s3 + $0x2d0] sm:$0xff] }
 0x1c7   :  { %3843 = vmatpush3.msra.mxu1 %v3310_v27  ;;  %v3383_v27 = vld [vmem:[%s6636_s3 + $0x250] sm:$0xff] }
 0x1c8   :  { %1194 = vmatmul.mubr.f32.vlgmr.msra.gmra.mxu1 %v769_v29  ;;  %4328 = vmatprep.subr.mxu1 %v4741_v0  ;;  %v3398_v29 = vld [vmem:[%s6636_s3 + $0x2c8] sm:$0xff] }
 0x1c9   :  { %4344 = vmatprep.mubr.msk.f32.mxu1 %vm4742_vm1, %v4741_v0 }
 0x268   :  { %v982_v37 = vpop.f32.mrf.mxu1 }
 0x269   :  { %v983_v38 = vadd.f32 %v3307_v36, %v982_v37  ;;  %v3396_v36 = vld [vmem:[%s6636_s3 + $0x2b8] sm:$0xff] }
 0x26a   :  { %v4273_v9 = vpop.f32.mrf.mxu1  ;;  %v3380_v37 = vld [vmem:[%s6636_s3 + $0x238] sm:$0xff] }
 0x26b   :  { %v986_v39 = vmax.f32 %v983_v38, 0.0  ;;  %v3395_v38 = vld [vmem:[%s6636_s3 + $0x2b0] sm:$0xff] }
 0x26c   :  { %v3379_v9 = vld [vmem:[%s6636_s3 + $0x230] sm:$0xff] }
 0x26d   :  { %4291 = vmatmul.mubr.msk.f32.vlgmr.msra.gmra.mxu0 %vm1002_vm2, %v986_v39  ;;  %v3394_v39 = vld [vmem:[%s6636_s3 + $0x2a8] sm:$0xff] }
 0x26e   :  { %4294 = vmatpush3.msra.mxu0 %v3359_v40  ;;  %4325 = vmatprep.mubr.msk.f32.mxu0 %vm4742_vm1, %v4741_v0  ;;  %v3378_v40 = vld [vmem:[%s6636_s3 + $0x228] sm:$0xff] }
 0x26f   :  { %4295 = vmatprep.subr.mxu0 %v4741_v0 }
 0x270   :  { %4296 = vmatpush3.msra.mxu0 %v3358_v41  ;;  %v3393_v41 = vld [vmem:[%s6636_s3 + $0x2a0] sm:$0xff] }
 0x271   :  { %4297 = vmatprep.subr.mxu0 %v4741_v0 }
 0x272   :  { %4298 = vmatpush3.msra.mxu0 %v3357_v42  ;;  %v3377_v42 = vld [vmem:[%s6636_s3 + $0x220] sm:$0xff] }
 0x273   :  { %4299 = vmatprep.subr.mxu0 %v4741_v0 }
 0x274   :  { %4300 = vmatpush3.msra.mxu0 %v3356_v43  ;;  %v3392_v43 = vld [vmem:[%s6636_s3 + $0x298] sm:$0xff] }
 0x275   :  { %4301 = vmatprep.subr.mxu0 %v4741_v0 }
 0x276   :  { %4302 = vmatpush3.msra.mxu0 %v3355_v44  ;;  %v134_v44 = vrot.slane %v4984_v50, %v133_v3  ;;  %v3390_v3 = vld [vmem:[%s6636_s3 + $0x288] sm:$0xff] }
 0x277   :  { %4303 = vmatprep.subr.mxu0 %v4741_v0 }
 0x278   :  { %4304 = vmatpush3.msra.mxu0 %v3354_v45  ;;  %v3376_v45 = vld [vmem:[%s6636_s3 + $0x218] sm:$0xff] }
 0x279   :  { %4305 = vmatprep.subr.mxu0 %v4741_v0 }
 0x27a   :  { %4306 = vmatpush3.msra.mxu0 %v3353_v46  ;;  %v3391_v46 = vld [vmem:[%s6636_s3 + $0x290] sm:$0xff] }
 0x27b   :  { %4307 = vmatprep.subr.mxu0 %v4741_v0 }
 0x27c   :  { %4308 = vmatpush3.msra.mxu0 %v3352_v47  ;;  %v3375_v47 = vld [vmem:[%s6636_s3 + $0x210] sm:$0xff] }
 0x27d   :  { %4309 = vmatprep.subr.mxu0 %v4741_v0 }
 0x27e   :  { %4310 = vmatpush3.msra.mxu0 %v3351_v51  ;;  %v408_v51 = vadd.f32 %v4991_v60, %v134_v44  ;;  %v3369_v60 = vld [vmem:[%s6640_s7 + $0x78] sm:$0xff] }
 0x27f   :  { %4311 = vmatprep.subr.mxu0 %v4741_v0  ;;  %4329 = vmatpush3.msra.mxu1 %v3369_v60  ;;  %v3463_v60 = vld [vmem:[%s6636_s3 + $0x3d8] sm:$0xff] }
 0x280   :  { %4312 = vmatpush3.msra.mxu0 %v3350_v52  ;;  %v3374_v52 = vld [vmem:[%s6636_s3 + $0x208] sm:$0xff]  ;;  %4330 = vmatprep.subr.mxu1 %v4741_v0 }
 0x281   :  { %4313 = vmatprep.subr.mxu0 %v4741_v0 }
 0x282   :  { %4314 = vmatpush3.msra.mxu0 %v3349_v53  ;;  %v3389_v53 = vld [vmem:[%s6636_s3 + $0x280] sm:$0xff] }
 0x283   :  { %4315 = vmatprep.subr.mxu0 %v4741_v0 }
 0x284   :  { %4316 = vmatpush3.msra.mxu0 %v3348_v54  ;;  %v3373_v54 = vld [vmem:[%s6636_s3 + $0x200] sm:$0xff] }
 0x285   :  { %4317 = vmatprep.subr.mxu0 %v4741_v0 }
 0x286   :  { %4318 = vmatpush3.msra.mxu0 %v3347_v55  ;;  %v771_v55 = vmax.f32 %v408_v51, 0.0  ;;  %v3466_v51 = vld [vmem:[%s6636_s3 + $0x3f0] sm:$0xff] }
 0x287   :  { %4319 = vmatprep.subr.mxu0 %v4741_v0 }
 0x288   :  { %v3844_v61 = vpop.f32.mrf.mxu1  ;;  %4320 = vmatpush3.msra.mxu0 %v3346_v57  ;;  %v3368_v57 = vld [vmem:[%s6640_s7 + $0x70] sm:$0xff] }
 0x289   :  { %4321 = vmatprep.subr.mxu0 %v4741_v0  ;;  %4331 = vmatpush3.msra.mxu1 %v3368_v57  ;;  %v3447_v57 = vld [vmem:[%s6636_s3 + $0x358] sm:$0xff] }
 0x28a   :  { %v3845_v5 = vpop.f32.mrf.mxu1  ;;  %4322 = vmatpush3.msra.mxu0 %v3345_v58  ;;  %v3367_v58 = vld [vmem:[%s6640_s7 + $0x68] sm:$0xff]  ;;  %4332 = vmatprep.subr.mxu1 %v4741_v0 }
 0x28b   :  { %v3846_v8 = vadd.f32 %v3845_v5, %v3844_v61  ;;  %4323 = vmatprep.subr.mxu0 %v4741_v0  ;;  %4333 = vmatpush3.msra.mxu1 %v3367_v58  ;;  %v3365_v61 = vld [vmem:[%s6640_s7 + $0x58] sm:$0xff]  ;;  %v3362_v5 = vld [vmem:[%s6640_s7 + $0x40] sm:$0xff]  ;;  %v3462_v58 = vld [vmem:[%s6636_s3 + $0x3d0] sm:$0xff] }
 0x28c   :  { %4324 = vmatpush3.msra.mxu0 %v3344_v63  ;;  %4334 = vmatprep.subr.mxu1 %v4741_v0  ;;  %v3364_v63 = vld [vmem:[%s6640_s7 + $0x50] sm:$0xff] }
 0x28d   :  { %v1196_v11 = vadd.f32 %v3846_v8, %v3343_v2  ;;  %3873 = vmatprep.subr.mxu0 %v3404_v6  ;;  %4335 = vmatpush3.msra.mxu1 %v3366_v59  ;;  %v3363_v2 = vld [vmem:[%s6640_s7 + $0x48] sm:$0xff]  ;;  %v3446_v59 = vld [vmem:[%s6636_s3 + $0x350] sm:$0xff] }
 0x28e   :  { %4336 = vmatprep.subr.mxu1 %v4741_v0 }
 0x28f   :  { %v1199_v12 = vmax.f32 %v1196_v11, 0.0  ;;  %4337 = vmatpush3.msra.mxu1 %v3365_v61  ;;  %v3461_v61 = vld [vmem:[%s6636_s3 + $0x3c8] sm:$0xff] }
 0x290   :  { %4338 = vmatprep.subr.mxu1 %v4741_v0 }
 0x291   :  { %4326 = vmatmul.mubr.f32.vlgmr.msra.gmra.mxu0 %v1199_v12  ;;  %4339 = vmatpush3.msra.mxu1 %v3364_v63  ;;  %v3445_v63 = vld [vmem:[%s6636_s3 + $0x348] sm:$0xff] }
 0x292   :  { %3874 = vmatpush3.msra.mxu0 %v3388_v13  ;;  %1502 = vmatprep.mubr.f32.mxu0 %v772_v15 }
 0x293   :  { %3875 = vmatprep.subr.mxu0 %v3403_v18  ;;  %4340 = vmatprep.subr.mxu1 %v4741_v0  ;;  %v3422_v18 = vld [vmem:[%s6638_s5 + $0x178] sm:$0xff] }
 0x294   :  { %3876 = vmatpush3.msra.mxu0 %v3387_v19  ;;  %4341 = vmatpush3.msra.mxu1 %v3363_v2  ;;  %v3421_v19 = vld [vmem:[%s6638_s5 + $0x170] sm:$0xff]  ;;  %v3460_v2 = vld [vmem:[%s6636_s3 + $0x3c0] sm:$0xff] }
 0x295   :  { %3877 = vmatprep.subr.mxu0 %v3402_v62  ;;  %4342 = vmatprep.subr.mxu1 %v4741_v0  ;;  %v3420_v62 = vld [vmem:[%s6638_s5 + $0x168] sm:$0xff] }
 0x296   :  { %3878 = vmatpush3.msra.mxu0 %v3386_v20  ;;  %4343 = vmatpush3.msra.mxu1 %v3362_v5  ;;  %v3419_v20 = vld [vmem:[%s6638_s5 + $0x160] sm:$0xff] }
 0x297   :  { %3879 = vmatprep.subr.mxu0 %v3401_v21  ;;  %4347 = vmatprep.subr.mxu1 %v4741_v0  ;;  %v3418_v21 = vld [vmem:[%s6638_s5 + $0x158] sm:$0xff]  ;;  %v3444_v5 = vld [vmem:[%s6636_s3 + $0x340] sm:$0xff] }
 0x298   :  { %3880 = vmatpush3.msra.mxu0 %v3385_v16  ;;  %v3417_v16 = vld [vmem:[%s6638_s5 + $0x150] sm:$0xff] }
 0x299   :  { %3881 = vmatprep.subr.mxu0 %v3400_v23  ;;  %v3416_v23 = vld [vmem:[%s6638_s5 + $0x148] sm:$0xff] }
 0x29a   :  { %3882 = vmatpush3.msra.mxu0 %v3384_v25  ;;  %v3415_v25 = vld [vmem:[%s6638_s5 + $0x140] sm:$0xff] }
 0x29b   :  { %3883 = vmatprep.subr.mxu0 %v3399_v26  ;;  %v3414_v26 = vld [vmem:[%s6638_s5 + $0x138] sm:$0xff] }
 0x29c   :  { %3884 = vmatpush3.msra.mxu0 %v3383_v27  ;;  %v3413_v27 = vld [vmem:[%s6638_s5 + $0x130] sm:$0xff] }
 0x29d   :  { %3885 = vmatprep.subr.mxu0 %v3398_v29  ;;  %v3412_v29 = vld [vmem:[%s6638_s5 + $0x128] sm:$0xff] }
 0x29e   :  { %3886 = vmatpush3.msra.mxu0 %v3382_v14  ;;  %v3411_v14 = vld [vmem:[%s6638_s5 + $0x120] sm:$0xff] }
 0x29f   :  { %3887 = vmatprep.subr.mxu0 %v3397_v30  ;;  %v3410_v30 = vld [vmem:[%s6638_s5 + $0x118] sm:$0xff] }
 0x2a0   :  { %3888 = vmatpush3.msra.mxu0 %v3381_v31  ;;  %v145_v31 = vsub.s32 7, %v4978_v48  ;;  %v3719_v48 = vld [vmem:[%s6636_s3 + $0x7f8] sm:$0xff] }
 0x2a1   :  { %3889 = vmatprep.subr.mxu0 %v3396_v36  ;;  %v3409_v36 = vld [vmem:[%s6638_s5 + $0x110] sm:$0xff] }
 0x2a2   :  { %3890 = vmatpush3.msra.mxu0 %v3380_v37  ;;  %v3408_v37 = vld [vmem:[%s6638_s5 + $0x108] sm:$0xff] }
 0x2a3   :  { %3891 = vmatprep.subr.mxu0 %v3395_v38  ;;  %v146_v38 = vrot.slane %v4984_v50, %v145_v31 }
 0x2a4   :  { %3892 = vmatpush3.msra.mxu0 %v3379_v9 }
 0x2a5   :  { %3893 = vmatprep.subr.mxu0 %v3394_v39  ;;  %v3407_v39 = vld [vmem:[%s6638_s5 + $0x100] sm:$0xff]  ;;  %v481_v44 = vadd.f32 %v5043_v22, %v146_v38  ;;  %v3465_v22 = vld [vmem:[%s6636_s3 + $0x3e8] sm:$0xff]  ;;  %v3427_v38 = vld [vmem:[%s6640_s7 + $0x90] sm:$0xff] }
 0x2a6   :  { %3894 = vmatpush3.msra.mxu0 %v3378_v40  ;;  %v3406_v40 = vld [vmem:[%s6637_s4 + $0x2] ss:$0 sm:$0xff] }
 0x2a7   :  { %3895 = vmatprep.subr.mxu0 %v3393_v41 }
 0x2a8   :  { %3896 = vmatpush3.msra.mxu0 %v3377_v42  ;;  %v3467_v42 = vld [vmem:[%s6636_s3 + $0x3f8] sm:$0xff] }
 0x2a9   :  { %3897 = vmatprep.subr.mxu0 %v3392_v43 }
 0x2aa   :  { %3898 = vmatpush3.msra.mxu0 %v3376_v45 }
 0x2ab   :  { %3899 = vmatprep.subr.mxu0 %v3391_v46 }
 0x2ac   :  { %3900 = vmatpush3.msra.mxu0 %v3375_v47  ;;  %v3451_v47 = vld [vmem:[%s6636_s3 + $0x378] sm:$0xff] }
 0x2ad   :  { %3901 = vmatprep.subr.mxu0 %v3390_v3  ;;  %v774_v3 = vmax.f32 %v481_v44, 0.0 }
 0x2ae   :  { %3902 = vmatpush3.msra.mxu0 %v3374_v52  ;;  %v3450_v52 = vld [vmem:[%s6636_s3 + $0x370] sm:$0xff] }
 0x2af   :  { %3903 = vmatprep.subr.mxu0 %v3389_v53  ;;  %v3449_v53 = vld [vmem:[%s6636_s3 + $0x368] sm:$0xff] }
 0x2b0   :  { %3904 = vmatpush3.msra.mxu0 %v3373_v54  ;;  %v3464_v54 = vld [vmem:[%s6636_s3 + $0x3e0] sm:$0xff] }
 0x2b1   :  { %1503 = vmatmul.mubr.f32.vlgmr.msra.gmra.mxu0 %v771_v55  ;;  %4382 = vmatprep.subr.mxu0 %v4741_v0  ;;  %v3448_v55 = vld [vmem:[%s6636_s3 + $0x360] sm:$0xff] }
 0x2b2   :  { %4398 = vmatprep.mubr.msk.f32.mxu0 %vm4742_vm1, %v4741_v0 }
 0x32d   :  { %v5400_v6 = vpop.f32.mrf.mxu0 }
 0x32f   :  { %v4292_v8 = vpop.f32.mrf.mxu0 }
 0x330   :  { %v3459_v8 = vld [vmem:[%s6636_s3 + $0x3b8] sm:$0xff] }
 0x351   :  { %v1291_v11 = vpop.f32.mrf.mxu0 }
 0x352   :  { %v1292_v12 = vadd.f32 %v3361_v10, %v1291_v11  ;;  %v3443_v10 = vld [vmem:[%s6636_s3 + $0x338] sm:$0xff]  ;;  %v3458_v11 = vld [vmem:[%s6636_s3 + $0x3b0] sm:$0xff] }
 0x353   :  { %v4327_v13 = vpop.f32.mrf.mxu0 }
 0x354   :  { %v1295_v15 = vmax.f32 %v1292_v12, 0.0  ;;  %v3442_v12 = vld [vmem:[%s6636_s3 + $0x330] sm:$0xff]  ;;  %v3457_v13 = vld [vmem:[%s6636_s3 + $0x3a8] sm:$0xff] }
 0x356   :  { %4345 = vmatmul.mubr.msk.f32.vlgmr.msra.gmra.mxu1 %vm1002_vm2, %v1295_v15  ;;  %v3441_v15 = vld [vmem:[%s6636_s3 + $0x328] sm:$0xff] }
 0x357   :  { %4348 = vmatpush3.msra.mxu1 %v3422_v18  ;;  %4379 = vmatprep.mubr.msk.f32.mxu1 %vm4742_vm1, %v4741_v0  ;;  %v3456_v18 = vld [vmem:[%s6636_s3 + $0x3a0] sm:$0xff] }
 0x358   :  { %4349 = vmatprep.subr.mxu1 %v4741_v0 }
 0x359   :  { %4350 = vmatpush3.msra.mxu1 %v3421_v19  ;;  %v3440_v19 = vld [vmem:[%s6636_s3 + $0x320] sm:$0xff] }
 0x35a   :  { %4351 = vmatprep.subr.mxu1 %v4741_v0 }
 0x35b   :  { %4352 = vmatpush3.msra.mxu1 %v3420_v62  ;;  %v3455_v62 = vld [vmem:[%s6636_s3 + $0x398] sm:$0xff] }
 0x35c   :  { %4353 = vmatprep.subr.mxu1 %v4741_v0 }
 0x35d   :  { %4354 = vmatpush3.msra.mxu1 %v3419_v20  ;;  %v142_v20 = vrot.slane %v4984_v50, %v141_v24  ;;  %v3453_v50 = vld [vmem:[%s6636_s3 + $0x388] sm:$0xff] }
 0x35e   :  { %4355 = vmatprep.subr.mxu1 %v4741_v0 }
 0x35f   :  { %4356 = vmatpush3.msra.mxu1 %v3418_v21  ;;  %v3439_v21 = vld [vmem:[%s6636_s3 + $0x318] sm:$0xff]  ;;  %v479_v24 = vadd.f32 %v5032_v17, %v142_v20 }
 0x360   :  { %4357 = vmatprep.subr.mxu1 %v4741_v0  ;;  %v3432_v17 = vld [vmem:[%s6640_s7 + $0xb8] sm:$0xff] }
 0x361   :  { %4358 = vmatpush3.msra.mxu1 %v3417_v16  ;;  %v3454_v16 = vld [vmem:[%s6636_s3 + $0x390] sm:$0xff]  ;;  %4383 = vmatpush3.msra.mxu0 %v3432_v17 }
 0x362   :  { %4359 = vmatprep.subr.mxu1 %v4741_v0  ;;  %4384 = vmatprep.subr.mxu0 %v4741_v0  ;;  %v3525_v17 = vld [vmem:[%s6636_s3 + $0x4d0] sm:$0xff] }
 0x363   :  { %4360 = vmatpush3.msra.mxu1 %v3416_v23  ;;  %v3438_v23 = vld [vmem:[%s6636_s3 + $0x310] sm:$0xff] }
 0x364   :  { %4361 = vmatprep.subr.mxu1 %v4741_v0 }
 0x365   :  { %4362 = vmatpush3.msra.mxu1 %v3415_v25  ;;  %v3437_v25 = vld [vmem:[%s6636_s3 + $0x308] sm:$0xff] }
 0x366   :  { %4363 = vmatprep.subr.mxu1 %v4741_v0 }
 0x367   :  { %4364 = vmatpush3.msra.mxu1 %v3414_v26  ;;  %v3452_v26 = vld [vmem:[%s6636_s3 + $0x380] sm:$0xff] }
 0x368   :  { %4365 = vmatprep.subr.mxu1 %v4741_v0 }
 0x369   :  { %4366 = vmatpush3.msra.mxu1 %v3413_v27  ;;  %v3436_v27 = vld [vmem:[%s6636_s3 + $0x300] sm:$0xff] }
 0x36a   :  { %4367 = vmatprep.subr.mxu1 %v4741_v0 }
 0x36b   :  { %4368 = vmatpush3.msra.mxu1 %v3412_v29  ;;  %v773_v29 = vmax.f32 %v479_v24, 0.0  ;;  %v3528_v24 = vld [vmem:[%s6636_s3 + $0x4e8] sm:$0xff] }
 0x36c   :  { %4369 = vmatprep.subr.mxu1 %v4741_v0 }
 0x36d   :  { %4370 = vmatpush3.msra.mxu1 %v3411_v14  ;;  %v3431_v14 = vld [vmem:[%s6640_s7 + $0xb0] sm:$0xff] }
 0x36e   :  { %4371 = vmatprep.subr.mxu1 %v4741_v0  ;;  %4385 = vmatpush3.msra.mxu0 %v3431_v14  ;;  %v3509_v14 = vld [vmem:[%s6636_s3 + $0x450] sm:$0xff] }
 0x36f   :  { %4372 = vmatpush3.msra.mxu1 %v3410_v30  ;;  %v3430_v30 = vld [vmem:[%s6640_s7 + $0xa8] sm:$0xff]  ;;  %4386 = vmatprep.subr.mxu0 %v4741_v0 }
 0x370   :  { %4373 = vmatprep.subr.mxu1 %v4741_v0  ;;  %4387 = vmatpush3.msra.mxu0 %v3430_v30  ;;  %v3524_v30 = vld [vmem:[%s6636_s3 + $0x4c8] sm:$0xff] }
 0x371   :  { %v3905_v9 = vpop.f32.mrf.mxu0  ;;  %4374 = vmatpush3.msra.mxu1 %v3409_v36  ;;  %v3429_v36 = vld [vmem:[%s6640_s7 + $0xa0] sm:$0xff]  ;;  %4388 = vmatprep.subr.mxu0 %v4741_v0 }
 0x372   :  { %4375 = vmatprep.subr.mxu1 %v4741_v0  ;;  %4389 = vmatpush3.msra.mxu0 %v3429_v36  ;;  %v3508_v36 = vld [vmem:[%s6636_s3 + $0x448] sm:$0xff] }
 0x373   :  { %v3906_v41 = vpop.f32.mrf.mxu0  ;;  %4376 = vmatpush3.msra.mxu1 %v3408_v37  ;;  %v3428_v37 = vld [vmem:[%s6640_s7 + $0x98] sm:$0xff]  ;;  %4390 = vmatprep.subr.mxu0 %v4741_v0 }
 0x374   :  { %v3907_v43 = vadd.f32 %v3906_v41, %v3905_v9  ;;  %4377 = vmatprep.subr.mxu1 %v4741_v0  ;;  %4391 = vmatpush3.msra.mxu0 %v3428_v37  ;;  %v3426_v9 = vld [vmem:[%s6640_s7 + $0x88] sm:$0xff]  ;;  %v3523_v37 = vld [vmem:[%s6636_s3 + $0x4c0] sm:$0xff] }
 0x375   :  { %4378 = vmatpush3.msra.mxu1 %v3407_v39  ;;  %4392 = vmatprep.subr.mxu0 %v4741_v0  ;;  %v3425_v39 = vld [vmem:[%s6640_s7 + $0x80] sm:$0xff] }
 0x376   :  { %v1505_v45 = vadd.f32 %v3907_v43, %v3406_v40  ;;  %3934 = vmatprep.subr.mxu1 %v3467_v42  ;;  %4393 = vmatpush3.msra.mxu0 %v3427_v38  ;;  %v3371_v40 = vld [vmem:[%s6641_s8 + $0x1] ss:$0 sm:$0xff] }
 0x377   :  { %4394 = vmatprep.subr.mxu0 %v4741_v0  ;;  %v3507_v38 = vld [vmem:[%s6636_s3 + $0x440] sm:$0xff] }
 0x378   :  { %v1508_v46 = vmax.f32 %v1505_v45, 0.0  ;;  %4395 = vmatpush3.msra.mxu0 %v3426_v9  ;;  %v3424_v45 = vld [vmem:[%s6639_s6 + $0x2] ss:$0 sm:$0xff]  ;;  %v3522_v9 = vld [vmem:[%s6636_s3 + $0x4b8] sm:$0xff] }
 0x379   :  { %4396 = vmatprep.subr.mxu0 %v4741_v0 }
 0x37a   :  { %4380 = vmatmul.mubr.f32.vlgmr.msra.gmra.mxu1 %v1508_v46  ;;  %4397 = vmatpush3.msra.mxu0 %v3425_v39  ;;  %v3506_v39 = vld [vmem:[%s6636_s3 + $0x438] sm:$0xff] }
 0x37b   :  { %3935 = vmatpush3.msra.mxu1 %v3451_v47  ;;  %1811 = vmatprep.mubr.f32.mxu1 %v774_v3 }
 0x37c   :  { %3936 = vmatprep.subr.mxu1 %v3466_v51  ;;  %4401 = vmatprep.subr.mxu0 %v4741_v0 }
 0x37d   :  { %3937 = vmatpush3.msra.mxu1 %v3450_v52  ;;  %v3485_v52 = vld [vmem:[%s6638_s5 + $0x1f8] sm:$0xff] }
 0x37e   :  { %3938 = vmatprep.subr.mxu1 %v3465_v22  ;;  %v3484_v22 = vld [vmem:[%s6638_s5 + $0x1f0] sm:$0xff] }
 0x37f   :  { %3939 = vmatpush3.msra.mxu1 %v3449_v53  ;;  %v3483_v53 = vld [vmem:[%s6638_s5 + $0x1e8] sm:$0xff] }
 0x380   :  { %3940 = vmatprep.subr.mxu1 %v3464_v54  ;;  %v3482_v54 = vld [vmem:[%s6638_s5 + $0x1e0] sm:$0xff] }
 0x381   :  { %3941 = vmatpush3.msra.mxu1 %v3448_v55  ;;  %v3481_v55 = vld [vmem:[%s6638_s5 + $0x1d8] sm:$0xff] }
 0x382   :  { %3942 = vmatprep.subr.mxu1 %v3463_v60  ;;  %v3480_v60 = vld [vmem:[%s6638_s5 + $0x1d0] sm:$0xff] }
 0x383   :  { %3943 = vmatpush3.msra.mxu1 %v3447_v57  ;;  %v3479_v57 = vld [vmem:[%s6638_s5 + $0x1c8] sm:$0xff] }
 0x384   :  { %3944 = vmatprep.subr.mxu1 %v3462_v58  ;;  %v3478_v58 = vld [vmem:[%s6638_s5 + $0x1c0] sm:$0xff] }
 0x385   :  { %3945 = vmatpush3.msra.mxu1 %v3446_v59  ;;  %v3477_v59 = vld [vmem:[%s6638_s5 + $0x1b8] sm:$0xff] }
 0x386   :  { %3946 = vmatprep.subr.mxu1 %v3461_v61  ;;  %v3476_v61 = vld [vmem:[%s6638_s5 + $0x1b0] sm:$0xff] }
 0x387   :  { %3947 = vmatpush3.msra.mxu1 %v3445_v63  ;;  %v3475_v63 = vld [vmem:[%s6638_s5 + $0x1a8] sm:$0xff] }
 0x388   :  { %3948 = vmatprep.subr.mxu1 %v3460_v2  ;;  %v3474_v2 = vld [vmem:[%s6638_s5 + $0x1a0] sm:$0xff] }
 0x389   :  { %3949 = vmatpush3.msra.mxu1 %v3444_v5  ;;  %v3473_v5 = vld [vmem:[%s6638_s5 + $0x198] sm:$0xff] }
 0x38a   :  { %3950 = vmatprep.subr.mxu1 %v3459_v8  ;;  %v3472_v8 = vld [vmem:[%s6638_s5 + $0x190] sm:$0xff] }
 0x38b   :  { %3951 = vmatpush3.msra.mxu1 %v3443_v10  ;;  %v3471_v10 = vld [vmem:[%s6638_s5 + $0x188] sm:$0xff] }
 0x38c   :  { %3952 = vmatprep.subr.mxu1 %v3458_v11 }
 0x38d   :  { %3953 = vmatpush3.msra.mxu1 %v3442_v12  ;;  %v3470_v12 = vld [vmem:[%s6638_s5 + $0x180] sm:$0xff] }
 0x38e   :  { %3954 = vmatprep.subr.mxu1 %v3457_v13  ;;  %v3469_v13 = vld [vmem:[%s6637_s4 + $0x3] ss:$0 sm:$0xff] }
 0x38f   :  { %3955 = vmatpush3.msra.mxu1 %v3441_v15 }
 0x390   :  { %3956 = vmatprep.subr.mxu1 %v3456_v18  ;;  %v3530_v18 = vld [vmem:[%s6636_s3 + $0x4f8] sm:$0xff] }
 0x391   :  { %3957 = vmatpush3.msra.mxu1 %v3440_v19 }
 0x392   :  { %3958 = vmatprep.subr.mxu1 %v3455_v62 }
 0x393   :  { %3959 = vmatpush3.msra.mxu1 %v3439_v21  ;;  %v3514_v21 = vld [vmem:[%s6636_s3 + $0x478] sm:$0xff] }
 0x394   :  { %3960 = vmatprep.subr.mxu1 %v3454_v16  ;;  %v776_v16 = vmax.f32 %v5001_v4, 0.0  ;;  %v3512_v4 = vld [vmem:[%s6636_s3 + $0x468] sm:$0xff] }
 0x395   :  { %3961 = vmatpush3.msra.mxu1 %v3438_v23  ;;  %v3529_v23 = vld [vmem:[%s6636_s3 + $0x4f0] sm:$0xff] }
 0x396   :  { %3962 = vmatprep.subr.mxu1 %v3453_v50  ;;  %v3513_v50 = vld [vmem:[%s6636_s3 + $0x470] sm:$0xff] }
 0x397   :  { %3963 = vmatpush3.msra.mxu1 %v3437_v25  ;;  %v3527_v25 = vld [vmem:[%s6636_s3 + $0x4e0] sm:$0xff] }
 0x398   :  { %3964 = vmatprep.subr.mxu1 %v3452_v26  ;;  %v3511_v26 = vld [vmem:[%s6636_s3 + $0x460] sm:$0xff] }
 0x399   :  { %3965 = vmatpush3.msra.mxu1 %v3436_v27  ;;  %v3526_v27 = vld [vmem:[%s6636_s3 + $0x4d8] sm:$0xff] }
 0x39a   :  { %1812 = vmatmul.mubr.f32.vlgmr.msra.gmra.mxu1 %v773_v29  ;;  %4436 = vmatprep.subr.mxu1 %v4741_v0  ;;  %v3510_v29 = vld [vmem:[%s6636_s3 + $0x458] sm:$0xff] }
 0x39b   :  { %4452 = vmatprep.mubr.msk.f32.mxu1 %vm4742_vm1, %v4741_v0 }
 0x416   :  { %v1382_v41 = vpop.f32.mrf.mxu1 }
 0x417   :  { %v5617_v42 = vadd.f32 %v3371_v40, %v1382_v41  ;;  %v3521_v40 = vld [vmem:[%s6636_s3 + $0x4b0] sm:$0xff] }
 0x418   :  { %v4346_v43 = vpop.f32.mrf.mxu1  ;;  %v3505_v41 = vld [vmem:[%s6636_s3 + $0x430] sm:$0xff] }
 0x419   :  { %v1386_v44 = vsel %vm1076_vm3, %v5617_v42, -inf  ;;  %v3520_v43 = vld [vmem:[%s6636_s3 + $0x4a8] sm:$0xff] }
 0x41a   :  { %1387 = vmax.xlane.f32.xlu0 %v1386_v44  ;;  %v3504_v44 = vld [vmem:[%s6636_s3 + $0x428] sm:$0xff] }
 0x43a   :  { %v1600_v46 = vpop.f32.mrf.mxu1 }
 0x43b   :  { %v1601_v47 = vadd.f32 %v3424_v45, %v1600_v46  ;;  %v3519_v45 = vld [vmem:[%s6636_s3 + $0x4a0] sm:$0xff] }
 0x43c   :  { %v4381_v3 = vpop.f32.mrf.mxu1  ;;  %v3503_v46 = vld [vmem:[%s6636_s3 + $0x420] sm:$0xff] }
 0x43d   :  { %v1604_v51 = vmax.f32 %v1601_v47, 0.0  ;;  %v3518_v47 = vld [vmem:[%s6636_s3 + $0x498] sm:$0xff]  ;;  %v5772_v3 = vld [vmem:[%s6635_s2 + $0x8] sm:$0xff] }
 0x43f   :  { %4399 = vmatmul.mubr.msk.f32.vlgmr.msra.gmra.mxu0 %vm1002_vm2, %v1604_v51  ;;  %v150_v51 = vrot.slane %v5772_v3, %v117_v49  ;;  %v3516_v49 = vld [vmem:[%s6636_s3 + $0x488] sm:$0xff] }
 0x440   :  { %4402 = vmatpush3.msra.mxu0 %v3485_v52  ;;  %4433 = vmatprep.mubr.msk.f32.mxu0 %vm4742_vm1, %v4741_v0  ;;  %v3502_v52 = vld [vmem:[%s6636_s3 + $0x418] sm:$0xff] }
 0x441   :  { %4403 = vmatprep.subr.mxu0 %v4741_v0 }
 0x442   :  { %4404 = vmatpush3.msra.mxu0 %v3484_v22  ;;  %v3517_v22 = vld [vmem:[%s6636_s3 + $0x490] sm:$0xff] }
 0x443   :  { %4405 = vmatprep.subr.mxu0 %v4741_v0 }
 0x444   :  { %4406 = vmatpush3.msra.mxu0 %v3483_v53  ;;  %v3501_v53 = vld [vmem:[%s6636_s3 + $0x410] sm:$0xff] }
 0x445   :  { %4407 = vmatprep.subr.mxu0 %v4741_v0 }
 0x446   :  { %4408 = vmatpush3.msra.mxu0 %v3482_v54  ;;  %v550_v54 = vadd.f32 %v4998_v1, %v150_v51  ;;  %v3495_v1 = vld [vmem:[%s6640_s7 + $0xf8] sm:$0xff] }
 0x447   :  { %4409 = vmatprep.subr.mxu0 %v4741_v0  ;;  %4437 = vmatpush3.msra.mxu1 %v3495_v1  ;;  %v3577_v51 = vld [vmem:[%s6636_s3 + $0x578] sm:$0xff]  ;;  %v3572_v1 = vld [vmem:[%s6636_s3 + $0x550] sm:$0xff] }
 0x448   :  { %4410 = vmatpush3.msra.mxu0 %v3481_v55  ;;  %v3500_v55 = vld [vmem:[%s6636_s3 + $0x408] sm:$0xff]  ;;  %4438 = vmatprep.subr.mxu1 %v4741_v0 }
 0x449   :  { %4411 = vmatprep.subr.mxu0 %v4741_v0 }
 0x44a   :  { %4412 = vmatpush3.msra.mxu0 %v3480_v60  ;;  %v3515_v60 = vld [vmem:[%s6636_s3 + $0x480] sm:$0xff] }
 0x44b   :  { %4413 = vmatprep.subr.mxu0 %v4741_v0 }
 0x44c   :  { %4414 = vmatpush3.msra.mxu0 %v3479_v57  ;;  %v3499_v57 = vld [vmem:[%s6636_s3 + $0x400] sm:$0xff] }
 0x44d   :  { %4415 = vmatprep.subr.mxu0 %v4741_v0 }
 0x44e   :  { %4416 = vmatpush3.msra.mxu0 %v3478_v58  ;;  %v775_v58 = vmax.f32 %v550_v54, 0.0  ;;  %v3590_v54 = vld [vmem:[%s6636_s3 + $0x5e0] sm:$0xff] }
 0x44f   :  { %4417 = vmatprep.subr.mxu0 %v4741_v0 }
 0x450   :  { %4418 = vmatpush3.msra.mxu0 %v3477_v59  ;;  %v3494_v59 = vld [vmem:[%s6640_s7 + $0xf0] sm:$0xff] }
 0x451   :  { %4419 = vmatprep.subr.mxu0 %v4741_v0  ;;  %4439 = vmatpush3.msra.mxu1 %v3494_v59  ;;  %v3587_v59 = vld [vmem:[%s6636_s3 + $0x5c8] sm:$0xff] }
 0x452   :  { %4420 = vmatpush3.msra.mxu0 %v3476_v61  ;;  %v3493_v61 = vld [vmem:[%s6640_s7 + $0xe8] sm:$0xff]  ;;  %4440 = vmatprep.subr.mxu1 %v4741_v0 }
 0x453   :  { %4421 = vmatprep.subr.mxu0 %v4741_v0  ;;  %4441 = vmatpush3.msra.mxu1 %v3493_v61  ;;  %v3571_v61 = vld [vmem:[%s6636_s3 + $0x548] sm:$0xff] }
 0x454   :  { %4422 = vmatpush3.msra.mxu0 %v3475_v63  ;;  %v3492_v63 = vld [vmem:[%s6640_s7 + $0xe0] sm:$0xff]  ;;  %4442 = vmatprep.subr.mxu1 %v4741_v0 }
 0x455   :  { %4423 = vmatprep.subr.mxu0 %v4741_v0  ;;  %4443 = vmatpush3.msra.mxu1 %v3492_v63  ;;  %v3586_v63 = vld [vmem:[%s6636_s3 + $0x5c0] sm:$0xff] }
 0x456   :  { %4424 = vmatpush3.msra.mxu0 %v3474_v2  ;;  %v3491_v2 = vld [vmem:[%s6640_s7 + $0xd8] sm:$0xff]  ;;  %4444 = vmatprep.subr.mxu1 %v4741_v0 }
 0x457   :  { %4425 = vmatprep.subr.mxu0 %v4741_v0  ;;  %4445 = vmatpush3.msra.mxu1 %v3491_v2  ;;  %v3570_v2 = vld [vmem:[%s6636_s3 + $0x540] sm:$0xff] }
 0x458   :  { %4426 = vmatpush3.msra.mxu0 %v3473_v5  ;;  %4446 = vmatprep.subr.mxu1 %v4741_v0  ;;  %v3490_v5 = vld [vmem:[%s6640_s7 + $0xd0] sm:$0xff] }
 0x459   :  { %4427 = vmatprep.subr.mxu0 %v4741_v0  ;;  %4447 = vmatpush3.msra.mxu1 %v3490_v5  ;;  %v3585_v5 = vld [vmem:[%s6636_s3 + $0x5b8] sm:$0xff] }
 0x45a   :  { %v3966_v11 = vpop.f32.mrf.mxu1  ;;  %4428 = vmatpush3.msra.mxu0 %v3472_v8  ;;  %4448 = vmatprep.subr.mxu1 %v4741_v0  ;;  %v3489_v8 = vld [vmem:[%s6640_s7 + $0xc8] sm:$0xff] }
 0x45b   :  { %4429 = vmatprep.subr.mxu0 %v4741_v0  ;;  %4449 = vmatpush3.msra.mxu1 %v3489_v8  ;;  %v3569_v8 = vld [vmem:[%s6636_s3 + $0x538] sm:$0xff] }
 0x45c   :  { %v3967_v15 = vpop.f32.mrf.mxu1  ;;  %4430 = vmatpush3.msra.mxu0 %v3471_v10  ;;  %v3488_v10 = vld [vmem:[%s6640_s7 + $0xc0] sm:$0xff]  ;;  %4450 = vmatprep.subr.mxu1 %v4741_v0 }
 0x45d   :  { %v3968_v19 = vadd.f32 %v3967_v15, %v3966_v11  ;;  %4431 = vmatprep.subr.mxu0 %v4741_v0  ;;  %4451 = vmatpush3.msra.mxu1 %v3488_v10  ;;  %v3434_v11 = vld [vmem:[%s6641_s8 + $0x2] ss:$0 sm:$0xff]  ;;  %v3584_v10 = vld [vmem:[%s6636_s3 + $0x5b0] sm:$0xff] }
 0x45e   :  { %4432 = vmatpush3.msra.mxu0 %v3470_v12  ;;  %4455 = vmatprep.subr.mxu1 %v4741_v0 }
 0x45f   :  { %v1814_v62 = vadd.f32 %v3968_v19, %v3469_v13  ;;  %3995 = vmatprep.subr.mxu0 %v3530_v18  ;;  %v3487_v19 = vld [vmem:[%s6639_s6 + $0x3] ss:$0 sm:$0xff] }
 0x461   :  { %v1817_v20 = vmax.f32 %v1814_v62, 0.0 }
 0x463   :  { %4434 = vmatmul.mubr.f32.vlgmr.msra.gmra.mxu0 %v1817_v20 }
 0x464   :  { %3996 = vmatpush3.msra.mxu0 %v3514_v21  ;;  %2120 = vmatprep.mubr.f32.mxu0 %v776_v16 }
 0x465   :  { %3997 = vmatprep.subr.mxu0 %v3529_v23  ;;  %v3548_v23 = vld [vmem:[%s6638_s5 + $0x278] sm:$0xff] }
 0x466   :  { %3998 = vmatpush3.msra.mxu0 %v3513_v50  ;;  %v3547_v50 = vld [vmem:[%s6638_s5 + $0x270] sm:$0xff] }
 0x467   :  { %3999 = vmatprep.subr.mxu0 %v3528_v24  ;;  %v3546_v24 = vld [vmem:[%s6638_s5 + $0x268] sm:$0xff] }
 0x468   :  { %4000 = vmatpush3.msra.mxu0 %v3512_v4  ;;  %v3545_v4 = vld [vmem:[%s6638_s5 + $0x260] sm:$0xff] }
 0x469   :  { %4001 = vmatprep.subr.mxu0 %v3527_v25  ;;  %v3544_v25 = vld [vmem:[%s6638_s5 + $0x258] sm:$0xff] }
 0x46a   :  { %4002 = vmatpush3.msra.mxu0 %v3511_v26  ;;  %v3543_v26 = vld [vmem:[%s6638_s5 + $0x250] sm:$0xff] }
 0x46b   :  { %4003 = vmatprep.subr.mxu0 %v3526_v27  ;;  %v3542_v27 = vld [vmem:[%s6638_s5 + $0x248] sm:$0xff] }
 0x46c   :  { %4004 = vmatpush3.msra.mxu0 %v3510_v29  ;;  %v3541_v29 = vld [vmem:[%s6638_s5 + $0x240] sm:$0xff] }
 0x46d   :  { %4005 = vmatprep.subr.mxu0 %v3525_v17  ;;  %v3540_v17 = vld [vmem:[%s6638_s5 + $0x238] sm:$0xff] }
 0x46e   :  { %4006 = vmatpush3.msra.mxu0 %v3509_v14  ;;  %v3539_v14 = vld [vmem:[%s6638_s5 + $0x230] sm:$0xff] }
 0x46f   :  { %4007 = vmatprep.subr.mxu0 %v3524_v30  ;;  %v3538_v30 = vld [vmem:[%s6638_s5 + $0x228] sm:$0xff] }
 0x470   :  { %4008 = vmatpush3.msra.mxu0 %v3508_v36  ;;  %v3537_v36 = vld [vmem:[%s6638_s5 + $0x220] sm:$0xff] }
 0x471   :  { %4009 = vmatprep.subr.mxu0 %v3523_v37  ;;  %v3536_v37 = vld [vmem:[%s6638_s5 + $0x218] sm:$0xff] }
 0x472   :  { %4010 = vmatpush3.msra.mxu0 %v3507_v38  ;;  %v3535_v38 = vld [vmem:[%s6638_s5 + $0x210] sm:$0xff] }
 0x473   :  { %4011 = vmatprep.subr.mxu0 %v3522_v9  ;;  %v3534_v9 = vld [vmem:[%s6638_s5 + $0x208] sm:$0xff] }
 0x474   :  { %4012 = vmatpush3.msra.mxu0 %v3506_v39 }
 0x475   :  { %4013 = vmatprep.subr.mxu0 %v3521_v40  ;;  %v3533_v40 = vld [vmem:[%s6638_s5 + $0x200] sm:$0xff] }
 0x476   :  { %4014 = vmatpush3.msra.mxu0 %v3505_v41  ;;  %v3532_v41 = vld [vmem:[%s6637_s4 + $0x4] ss:$0 sm:$0xff] }
 0x477   :  { %4015 = vmatprep.subr.mxu0 %v3520_v43 }
 0x478   :  { %4016 = vmatpush3.msra.mxu0 %v3504_v44  ;;  %v3593_v44 = vld [vmem:[%s6636_s3 + $0x5f8] sm:$0xff] }
 0x479   :  { %4017 = vmatprep.subr.mxu0 %v3519_v45 }
 0x47a   :  { %4018 = vmatpush3.msra.mxu0 %v3503_v46 }
 0x47b   :  { %4019 = vmatprep.subr.mxu0 %v3518_v47 }
 0x47c   :  { %4020 = vmatpush3.msra.mxu0 %v3502_v52  ;;  %v778_v52 = vmax.f32 %v5062_v32, 0.0  ;;  %v3575_v32 = vld [vmem:[%s6636_s3 + $0x568] sm:$0xff] }
 0x47d   :  { %4021 = vmatprep.subr.mxu0 %v3517_v22  ;;  %v3592_v22 = vld [vmem:[%s6636_s3 + $0x5f0] sm:$0xff] }
 0x47e   :  { %4022 = vmatpush3.msra.mxu0 %v3501_v53  ;;  %v3576_v53 = vld [vmem:[%s6636_s3 + $0x570] sm:$0xff] }
 0x47f   :  { %4023 = vmatprep.subr.mxu0 %v3516_v49  ;;  %v3591_v49 = vld [vmem:[%s6636_s3 + $0x5e8] sm:$0xff] }
 0x480   :  { %4024 = vmatpush3.msra.mxu0 %v3500_v55  ;;  %v3574_v55 = vld [vmem:[%s6636_s3 + $0x560] sm:$0xff] }
 0x481   :  { %4025 = vmatprep.subr.mxu0 %v3515_v60  ;;  %v3589_v60 = vld [vmem:[%s6636_s3 + $0x5d8] sm:$0xff] }
 0x482   :  { %4026 = vmatpush3.msra.mxu0 %v3499_v57  ;;  %v3573_v57 = vld [vmem:[%s6636_s3 + $0x558] sm:$0xff] }
 0x483   :  { %2121 = vmatmul.mubr.f32.vlgmr.msra.gmra.mxu0 %v775_v58  ;;  %4490 = vmatprep.subr.mxu0 %v4741_v0  ;;  %v3588_v58 = vld [vmem:[%s6636_s3 + $0x5d0] sm:$0xff] }
 0x484   :  { %4506 = vmatprep.mubr.msk.f32.mxu0 %vm4742_vm1, %v4741_v0 }
 0x4ff   :  { %v1691_v12 = vpop.f32.mrf.mxu0 }
 0x500   :  { %v5837_v13 = vadd.f32 %v3434_v11, %v1691_v12  ;;  %v3568_v11 = vld [vmem:[%s6636_s3 + $0x530] sm:$0xff]  ;;  %v3583_v12 = vld [vmem:[%s6636_s3 + $0x5a8] sm:$0xff] }
 0x501   :  { %v4400_v15 = vpop.f32.mrf.mxu0 }
 0x502   :  { %v1695_v18 = vsel %vm1076_vm3, %v5837_v13, -inf  ;;  %v3567_v15 = vld [vmem:[%s6636_s3 + $0x528] sm:$0xff] }
 0x503   :  { %1696 = vmax.xlane.f32.xlu0 %v1695_v18  ;;  %v3582_v18 = vld [vmem:[%s6636_s3 + $0x5a0] sm:$0xff] }
 0x523   :  { %v1909_v62 = vpop.f32.mrf.mxu0 }
 0x524   :  { %v1910_v20 = vadd.f32 %v3487_v19, %v1909_v62  ;;  %v3566_v19 = vld [vmem:[%s6636_s3 + $0x520] sm:$0xff]  ;;  %v3581_v62 = vld [vmem:[%s6636_s3 + $0x598] sm:$0xff] }
 0x525   :  { %v4435_v21 = vpop.f32.mrf.mxu0 }
 0x526   :  { %v1913_v16 = vmax.f32 %v1910_v20, 0.0  ;;  %v3565_v20 = vld [vmem:[%s6636_s3 + $0x518] sm:$0xff]  ;;  %v3580_v21 = vld [vmem:[%s6636_s3 + $0x590] sm:$0xff] }
 0x528   :  { %4453 = vmatmul.mubr.msk.f32.vlgmr.msra.gmra.mxu1 %vm1002_vm2, %v1913_v16  ;;  %v3564_v16 = vld [vmem:[%s6636_s3 + $0x510] sm:$0xff] }
 0x529   :  { %4456 = vmatpush3.msra.mxu1 %v3548_v23  ;;  %4487 = vmatprep.mubr.msk.f32.mxu1 %vm4742_vm1, %v4741_v0  ;;  %v3579_v23 = vld [vmem:[%s6636_s3 + $0x588] sm:$0xff] }
 0x52a   :  { %4457 = vmatprep.subr.mxu1 %v4741_v0 }
 0x52b   :  { %4458 = vmatpush3.msra.mxu1 %v3547_v50  ;;  %v3563_v50 = vld [vmem:[%s6636_s3 + $0x508] sm:$0xff] }
 0x52c   :  { %4459 = vmatprep.subr.mxu1 %v4741_v0 }
 0x52d   :  { %4460 = vmatpush3.msra.mxu1 %v3546_v24  ;;  %v3578_v24 = vld [vmem:[%s6636_s3 + $0x580] sm:$0xff] }
 0x52e   :  { %4461 = vmatprep.subr.mxu1 %v4741_v0 }
 0x52f   :  { %4462 = vmatpush3.msra.mxu1 %v3545_v4  ;;  %v3562_v4 = vld [vmem:[%s6636_s3 + $0x500] sm:$0xff] }
 0x530   :  { %4463 = vmatprep.subr.mxu1 %v4741_v0 }
 0x531   :  { %4464 = vmatpush3.msra.mxu1 %v3544_v25  ;;  %v777_v25 = vmax.f32 %v5054_v28, 0.0  ;;  %v3556_v28 = vld [vmem:[%s6640_s7 + $0x128] sm:$0xff] }
 0x532   :  { %4465 = vmatprep.subr.mxu1 %v4741_v0 }
 0x533   :  { %4466 = vmatpush3.msra.mxu1 %v3543_v26  ;;  %v3558_v26 = vld [vmem:[%s6640_s7 + $0x138] sm:$0xff] }
 0x534   :  { %4467 = vmatprep.subr.mxu1 %v4741_v0  ;;  %4491 = vmatpush3.msra.mxu0 %v3558_v26  ;;  %v3635_v26 = vld [vmem:[%s6636_s3 + $0x650] sm:$0xff] }
 0x535   :  { %4468 = vmatpush3.msra.mxu1 %v3542_v27  ;;  %v3557_v27 = vld [vmem:[%s6640_s7 + $0x130] sm:$0xff]  ;;  %4492 = vmatprep.subr.mxu0 %v4741_v0 }
 0x536   :  { %4469 = vmatprep.subr.mxu1 %v4741_v0  ;;  %4493 = vmatpush3.msra.mxu0 %v3557_v27  ;;  %v3650_v27 = vld [vmem:[%s6636_s3 + $0x6c8] sm:$0xff] }
 0x537   :  { %4470 = vmatpush3.msra.mxu1 %v3541_v29  ;;  %4494 = vmatprep.subr.mxu0 %v4741_v0  ;;  %v3555_v29 = vld [vmem:[%s6640_s7 + $0x120] sm:$0xff] }
 0x538   :  { %4471 = vmatprep.subr.mxu1 %v4741_v0  ;;  %4495 = vmatpush3.msra.mxu0 %v3556_v28  ;;  %v3634_v28 = vld [vmem:[%s6636_s3 + $0x648] sm:$0xff] }
 0x539   :  { %4472 = vmatpush3.msra.mxu1 %v3540_v17  ;;  %4496 = vmatprep.subr.mxu0 %v4741_v0  ;;  %v3554_v17 = vld [vmem:[%s6640_s7 + $0x118] sm:$0xff] }
 0x53a   :  { %4473 = vmatprep.subr.mxu1 %v4741_v0  ;;  %4497 = vmatpush3.msra.mxu0 %v3555_v29  ;;  %v3649_v29 = vld [vmem:[%s6636_s3 + $0x6c0] sm:$0xff] }
 0x53b   :  { %4474 = vmatpush3.msra.mxu1 %v3539_v14  ;;  %4498 = vmatprep.subr.mxu0 %v4741_v0  ;;  %v3553_v14 = vld [vmem:[%s6640_s7 + $0x110] sm:$0xff] }
 0x53c   :  { %4475 = vmatprep.subr.mxu1 %v4741_v0  ;;  %4499 = vmatpush3.msra.mxu0 %v3554_v17  ;;  %v3633_v17 = vld [vmem:[%s6636_s3 + $0x640] sm:$0xff] }
 0x53d   :  { %4476 = vmatpush3.msra.mxu1 %v3538_v30  ;;  %4500 = vmatprep.subr.mxu0 %v4741_v0  ;;  %v3552_v30 = vld [vmem:[%s6640_s7 + $0x108] sm:$0xff] }
 0x53e   :  { %4477 = vmatprep.subr.mxu1 %v4741_v0  ;;  %4501 = vmatpush3.msra.mxu0 %v3553_v14  ;;  %v3648_v14 = vld [vmem:[%s6636_s3 + $0x6b8] sm:$0xff] }
 0x53f   :  { %4478 = vmatpush3.msra.mxu1 %v3537_v36  ;;  %4502 = vmatprep.subr.mxu0 %v4741_v0  ;;  %v3551_v36 = vld [vmem:[%s6640_s7 + $0x100] sm:$0xff] }
 0x540   :  { %4479 = vmatprep.subr.mxu1 %v4741_v0  ;;  %4503 = vmatpush3.msra.mxu0 %v3552_v30  ;;  %v3632_v30 = vld [vmem:[%s6636_s3 + $0x638] sm:$0xff] }
 0x541   :  { %4480 = vmatpush3.msra.mxu1 %v3536_v37  ;;  %4504 = vmatprep.subr.mxu0 %v4741_v0  ;;  %v3497_v37 = vld [vmem:[%s6641_s8 + $0x3] ss:$0 sm:$0xff] }
 0x542   :  { %4481 = vmatprep.subr.mxu1 %v4741_v0  ;;  %4505 = vmatpush3.msra.mxu0 %v3551_v36  ;;  %v3647_v36 = vld [vmem:[%s6636_s3 + $0x6b0] sm:$0xff] }
 0x543   :  { %v4027_v39 = vpop.f32.mrf.mxu0  ;;  %4482 = vmatpush3.msra.mxu1 %v3535_v38  ;;  %4509 = vmatprep.subr.mxu0 %v4741_v0 }
 0x544   :  { %4483 = vmatprep.subr.mxu1 %v4741_v0 }
 0x545   :  { %v4028_v43 = vpop.f32.mrf.mxu0  ;;  %4484 = vmatpush3.msra.mxu1 %v3534_v9 }
 0x546   :  { %v4029_v45 = vadd.f32 %v4028_v43, %v4027_v39  ;;  %4485 = vmatprep.subr.mxu1 %v4741_v0 }
 0x547   :  { %4486 = vmatpush3.msra.mxu1 %v3533_v40 }
 0x548   :  { %v2123_v46 = vadd.f32 %v4029_v45, %v3532_v41  ;;  %4056 = vmatprep.subr.mxu1 %v3593_v44  ;;  %v3550_v41 = vld [vmem:[%s6639_s6 + $0x4] ss:$0 sm:$0xff] }
 0x54a   :  { %v2126_v47 = vmax.f32 %v2123_v46, 0.0 }
 0x54c   :  { %4488 = vmatmul.mubr.f32.vlgmr.msra.gmra.mxu1 %v2126_v47  ;;  %v3611_v47 = vld [vmem:[%s6638_s5 + $0x2f8] sm:$0xff] }
 0x54d   :  { %4057 = vmatpush3.msra.mxu1 %v3577_v51  ;;  %2429 = vmatprep.mubr.f32.mxu1 %v778_v52  ;;  %v3610_v51 = vld [vmem:[%s6638_s5 + $0x2f0] sm:$0xff]  ;;  %v3609_v52 = vld [vmem:[%s6638_s5 + $0x2e8] sm:$0xff] }
 0x54e   :  { %4058 = vmatprep.subr.mxu1 %v3592_v22  ;;  %v3608_v22 = vld [vmem:[%s6638_s5 + $0x2e0] sm:$0xff] }
 0x54f   :  { %4059 = vmatpush3.msra.mxu1 %v3576_v53  ;;  %v3607_v53 = vld [vmem:[%s6638_s5 + $0x2d8] sm:$0xff] }
 0x550   :  { %4060 = vmatprep.subr.mxu1 %v3591_v49  ;;  %v3606_v49 = vld [vmem:[%s6638_s5 + $0x2d0] sm:$0xff] }
 0x551   :  { %4061 = vmatpush3.msra.mxu1 %v3575_v32  ;;  %v3605_v32 = vld [vmem:[%s6638_s5 + $0x2c8] sm:$0xff] }
 0x552   :  { %4062 = vmatprep.subr.mxu1 %v3590_v54  ;;  %v3604_v54 = vld [vmem:[%s6638_s5 + $0x2c0] sm:$0xff] }
 0x553   :  { %4063 = vmatpush3.msra.mxu1 %v3574_v55  ;;  %v3603_v55 = vld [vmem:[%s6638_s5 + $0x2b8] sm:$0xff] }
 0x554   :  { %4064 = vmatprep.subr.mxu1 %v3589_v60  ;;  %v3602_v60 = vld [vmem:[%s6638_s5 + $0x2b0] sm:$0xff] }
 0x555   :  { %4065 = vmatpush3.msra.mxu1 %v3573_v57  ;;  %v3601_v57 = vld [vmem:[%s6638_s5 + $0x2a8] sm:$0xff] }
 0x556   :  { %4066 = vmatprep.subr.mxu1 %v3588_v58  ;;  %v3600_v58 = vld [vmem:[%s6638_s5 + $0x2a0] sm:$0xff] }
 0x557   :  { %4067 = vmatpush3.msra.mxu1 %v3572_v1  ;;  %v3599_v1 = vld [vmem:[%s6638_s5 + $0x298] sm:$0xff] }
 0x558   :  { %4068 = vmatprep.subr.mxu1 %v3587_v59  ;;  %v3598_v59 = vld [vmem:[%s6638_s5 + $0x290] sm:$0xff] }
 0x559   :  { %4069 = vmatpush3.msra.mxu1 %v3571_v61  ;;  %v3597_v61 = vld [vmem:[%s6638_s5 + $0x288] sm:$0xff] }
 0x55a   :  { %4070 = vmatprep.subr.mxu1 %v3586_v63  ;;  %v170_v63 = vrot.slane %v5772_v3, %v137_v56 }
 0x55b   :  { %4071 = vmatpush3.msra.mxu1 %v3570_v2 }
 0x55c   :  { %4072 = vmatprep.subr.mxu1 %v3585_v5  ;;  %v3596_v5 = vld [vmem:[%s6638_s5 + $0x280] sm:$0xff]  ;;  %v694_v56 = vadd.f32 %v5068_v35, %v170_v63  ;;  %v3654_v35 = vld [vmem:[%s6636_s3 + $0x6e8] sm:$0xff] }
 0x55d   :  { %4073 = vmatpush3.msra.mxu1 %v3569_v8  ;;  %v3595_v8 = vld [vmem:[%s6637_s4 + $0x5] ss:$0 sm:$0xff] }
 0x55e   :  { %4074 = vmatprep.subr.mxu1 %v3584_v10 }
 0x55f   :  { %4075 = vmatpush3.msra.mxu1 %v3568_v11  ;;  %v3656_v11 = vld [vmem:[%s6636_s3 + $0x6f8] sm:$0xff] }
 0x560   :  { %4076 = vmatprep.subr.mxu1 %v3583_v12 }
 0x561   :  { %4077 = vmatpush3.msra.mxu1 %v3567_v15 }
 0x562   :  { %4078 = vmatprep.subr.mxu1 %v3582_v18 }
 0x563   :  { %4079 = vmatpush3.msra.mxu1 %v3566_v19  ;;  %v3640_v19 = vld [vmem:[%s6636_s3 + $0x678] sm:$0xff] }
 0x564   :  { %4080 = vmatprep.subr.mxu1 %v3581_v62  ;;  %v780_v62 = vmax.f32 %v694_v56, 0.0  ;;  %v3674_v56 = vld [vmem:[%s6638_s5 + $0x378] sm:$0xff] }
 0x565   :  { %4081 = vmatpush3.msra.mxu1 %v3565_v20  ;;  %v3655_v20 = vld [vmem:[%s6636_s3 + $0x6f0] sm:$0xff] }
 0x566   :  { %4082 = vmatprep.subr.mxu1 %v3580_v21  ;;  %v3639_v21 = vld [vmem:[%s6636_s3 + $0x670] sm:$0xff] }
 0x567   :  { %4083 = vmatpush3.msra.mxu1 %v3564_v16  ;;  %v3638_v16 = vld [vmem:[%s6636_s3 + $0x668] sm:$0xff] }
 0x568   :  { %4084 = vmatprep.subr.mxu1 %v3579_v23  ;;  %v3653_v23 = vld [vmem:[%s6636_s3 + $0x6e0] sm:$0xff] }
 0x569   :  { %4085 = vmatpush3.msra.mxu1 %v3563_v50  ;;  %v3637_v50 = vld [vmem:[%s6636_s3 + $0x660] sm:$0xff] }
 0x56a   :  { %4086 = vmatprep.subr.mxu1 %v3578_v24  ;;  %v3652_v24 = vld [vmem:[%s6636_s3 + $0x6d8] sm:$0xff] }
 0x56b   :  { %4087 = vmatpush3.msra.mxu1 %v3562_v4  ;;  %v3636_v4 = vld [vmem:[%s6636_s3 + $0x658] sm:$0xff] }
 0x56c   :  { %2430 = vmatmul.mubr.f32.vlgmr.msra.gmra.mxu1 %v777_v25  ;;  %4544 = vmatprep.subr.mxu1 %v4741_v0  ;;  %v3651_v25 = vld [vmem:[%s6636_s3 + $0x6d0] sm:$0xff] }
 0x56d   :  { %4560 = vmatprep.mubr.msk.f32.mxu1 %vm4742_vm1, %v4741_v0 }
 0x5e8   :  { %v2000_v38 = vpop.f32.mrf.mxu1 }
 0x5e9   :  { %v6049_v9 = vadd.f32 %v3497_v37, %v2000_v38  ;;  %v3631_v37 = vld [vmem:[%s6636_s3 + $0x630] sm:$0xff]  ;;  %v3646_v38 = vld [vmem:[%s6636_s3 + $0x6a8] sm:$0xff] }
 0x5ea   :  { %v4454_v39 = vpop.f32.mrf.mxu1 }
 0x5eb   :  { %v2004_v40 = vsel %vm1076_vm3, %v6049_v9, -inf  ;;  %v3630_v39 = vld [vmem:[%s6636_s3 + $0x628] sm:$0xff] }
 0x5ec   :  { %2005 = vmax.xlane.f32.xlu1 %v2004_v40  ;;  %v3645_v40 = vld [vmem:[%s6636_s3 + $0x6a0] sm:$0xff] }
 0x60c   :  { %v2218_v43 = vpop.f32.mrf.mxu1 }
 0x60d   :  { %v2219_v44 = vadd.f32 %v3550_v41, %v2218_v43  ;;  %v3629_v41 = vld [vmem:[%s6636_s3 + $0x620] sm:$0xff]  ;;  %v3644_v43 = vld [vmem:[%s6636_s3 + $0x698] sm:$0xff] }
 0x60e   :  { %v4489_v45 = vpop.f32.mrf.mxu1 }
 0x60f   :  { %v2222_v46 = vmax.f32 %v2219_v44, 0.0  ;;  %v3628_v44 = vld [vmem:[%s6636_s3 + $0x618] sm:$0xff]  ;;  %v3643_v45 = vld [vmem:[%s6636_s3 + $0x690] sm:$0xff] }
 0x611   :  { %4507 = vmatmul.mubr.msk.f32.vlgmr.msra.gmra.mxu0 %vm1002_vm2, %v2222_v46  ;;  %v3627_v46 = vld [vmem:[%s6636_s3 + $0x610] sm:$0xff] }
 0x612   :  { %4510 = vmatpush3.msra.mxu0 %v3611_v47  ;;  %4541 = vmatprep.mubr.msk.f32.mxu0 %vm4742_vm1, %v4741_v0  ;;  %v3642_v47 = vld [vmem:[%s6636_s3 + $0x688] sm:$0xff] }
 0x613   :  { %4511 = vmatprep.subr.mxu0 %v4741_v0 }
 0x614   :  { %4512 = vmatpush3.msra.mxu0 %v3610_v51  ;;  %v3626_v51 = vld [vmem:[%s6636_s3 + $0x608] sm:$0xff] }
 0x615   :  { %4513 = vmatprep.subr.mxu0 %v4741_v0 }
 0x616   :  { %4514 = vmatpush3.msra.mxu0 %v3609_v52  ;;  %v3641_v52 = vld [vmem:[%s6636_s3 + $0x680] sm:$0xff] }
 0x617   :  { %4515 = vmatprep.subr.mxu0 %v4741_v0 }
 0x618   :  { %4516 = vmatpush3.msra.mxu0 %v3608_v22  ;;  %v3625_v22 = vld [vmem:[%s6636_s3 + $0x600] sm:$0xff] }
 0x619   :  { %4517 = vmatprep.subr.mxu0 %v4741_v0 }
 0x61a   :  { %4518 = vmatpush3.msra.mxu0 %v3607_v53  ;;  %v779_v53 = vmax.f32 %v5005_v7, 0.0  ;;  %v3619_v7 = vld [vmem:[%s6640_s7 + $0x168] sm:$0xff] }
 0x61b   :  { %4519 = vmatprep.subr.mxu0 %v4741_v0 }
 0x61c   :  { %4520 = vmatpush3.msra.mxu0 %v3606_v49  ;;  %v3621_v49 = vld [vmem:[%s6640_s7 + $0x178] sm:$0xff] }
 0x61d   :  { %4521 = vmatprep.subr.mxu0 %v4741_v0  ;;  %4545 = vmatpush3.msra.mxu1 %v3621_v49  ;;  %v3696_v49 = vld [vmem:[%s6636_s3 + $0x740] sm:$0xff] }
 0x61e   :  { %4522 = vmatpush3.msra.mxu0 %v3605_v32  ;;  %v3620_v32 = vld [vmem:[%s6640_s7 + $0x170] sm:$0xff]  ;;  %4546 = vmatprep.subr.mxu1 %v4741_v0 }
 0x61f   :  { %4523 = vmatprep.subr.mxu0 %v4741_v0  ;;  %4547 = vmatpush3.msra.mxu1 %v3620_v32  ;;  %v3711_v32 = vld [vmem:[%s6636_s3 + $0x7b8] sm:$0xff] }
 0x620   :  { %4524 = vmatpush3.msra.mxu0 %v3604_v54  ;;  %4548 = vmatprep.subr.mxu1 %v4741_v0  ;;  %v3618_v54 = vld [vmem:[%s6640_s7 + $0x160] sm:$0xff] }
 0x621   :  { %4525 = vmatprep.subr.mxu0 %v4741_v0  ;;  %4549 = vmatpush3.msra.mxu1 %v3619_v7  ;;  %v3695_v7 = vld [vmem:[%s6636_s3 + $0x738] sm:$0xff] }
 0x622   :  { %4526 = vmatpush3.msra.mxu0 %v3603_v55  ;;  %4550 = vmatprep.subr.mxu1 %v4741_v0  ;;  %v3617_v55 = vld [vmem:[%s6640_s7 + $0x158] sm:$0xff] }
 0x623   :  { %4527 = vmatprep.subr.mxu0 %v4741_v0  ;;  %4551 = vmatpush3.msra.mxu1 %v3618_v54  ;;  %v3710_v54 = vld [vmem:[%s6636_s3 + $0x7b0] sm:$0xff] }
 0x624   :  { %4528 = vmatpush3.msra.mxu0 %v3602_v60  ;;  %4552 = vmatprep.subr.mxu1 %v4741_v0  ;;  %v3616_v60 = vld [vmem:[%s6640_s7 + $0x150] sm:$0xff] }
 0x625   :  { %4529 = vmatprep.subr.mxu0 %v4741_v0  ;;  %4553 = vmatpush3.msra.mxu1 %v3617_v55  ;;  %v3694_v55 = vld [vmem:[%s6636_s3 + $0x730] sm:$0xff] }
 0x626   :  { %4530 = vmatpush3.msra.mxu0 %v3601_v57  ;;  %4554 = vmatprep.subr.mxu1 %v4741_v0  ;;  %v3615_v57 = vld [vmem:[%s6640_s7 + $0x148] sm:$0xff] }
 0x627   :  { %4531 = vmatprep.subr.mxu0 %v4741_v0  ;;  %4555 = vmatpush3.msra.mxu1 %v3616_v60  ;;  %v3709_v60 = vld [vmem:[%s6636_s3 + $0x7a8] sm:$0xff] }
 0x628   :  { %4532 = vmatpush3.msra.mxu0 %v3600_v58  ;;  %4556 = vmatprep.subr.mxu1 %v4741_v0  ;;  %v3614_v58 = vld [vmem:[%s6640_s7 + $0x140] sm:$0xff] }
 0x629   :  { %4533 = vmatprep.subr.mxu0 %v4741_v0  ;;  %4557 = vmatpush3.msra.mxu1 %v3615_v57  ;;  %v3693_v57 = vld [vmem:[%s6636_s3 + $0x728] sm:$0xff] }
 0x62a   :  { %4534 = vmatpush3.msra.mxu0 %v3599_v1  ;;  %4558 = vmatprep.subr.mxu1 %v4741_v0  ;;  %v3560_v1 = vld [vmem:[%s6641_s8 + $0x4] ss:$0 sm:$0xff] }
 0x62b   :  { %4535 = vmatprep.subr.mxu0 %v4741_v0  ;;  %4559 = vmatpush3.msra.mxu1 %v3614_v58  ;;  %v3708_v58 = vld [vmem:[%s6636_s3 + $0x7a0] sm:$0xff] }
 0x62c   :  { %v4088_v2 = vpop.f32.mrf.mxu1  ;;  %4536 = vmatpush3.msra.mxu0 %v3598_v59  ;;  %4563 = vmatprep.subr.mxu1 %v4741_v0 }
 0x62d   :  { %4537 = vmatprep.subr.mxu0 %v4741_v0 }
 0x62e   :  { %v4089_v10 = vpop.f32.mrf.mxu1  ;;  %4538 = vmatpush3.msra.mxu0 %v3597_v61 }
 0x62f   :  { %v4090_v12 = vadd.f32 %v4089_v10, %v4088_v2  ;;  %4539 = vmatprep.subr.mxu0 %v4741_v0 }
 0x630   :  { %4540 = vmatpush3.msra.mxu0 %v3596_v5  ;;  %v3613_v5 = vld [vmem:[%s6639_s6 + $0x5] ss:$0 sm:$0xff] }
 0x631   :  { %v2432_v15 = vadd.f32 %v4090_v12, %v3595_v8  ;;  %4117 = vmatprep.subr.mxu0 %v3656_v11 }
 0x633   :  { %v2435_v18 = vmax.f32 %v2432_v15, 0.0  ;;  %v3673_v15 = vld [vmem:[%s6638_s5 + $0x370] sm:$0xff] }
 0x635   :  { %4542 = vmatmul.mubr.f32.vlgmr.msra.gmra.mxu0 %v2435_v18  ;;  %v3672_v18 = vld [vmem:[%s6638_s5 + $0x368] sm:$0xff] }
 0x636   :  { %4118 = vmatpush3.msra.mxu0 %v3640_v19  ;;  %2738 = vmatprep.mubr.f32.mxu0 %v780_v62  ;;  %v3671_v19 = vld [vmem:[%s6638_s5 + $0x360] sm:$0xff]  ;;  %v3670_v62 = vld [vmem:[%s6638_s5 + $0x358] sm:$0xff] }
 0x637   :  { %4119 = vmatprep.subr.mxu0 %v3655_v20  ;;  %v3669_v20 = vld [vmem:[%s6638_s5 + $0x350] sm:$0xff] }
 0x638   :  { %4120 = vmatpush3.msra.mxu0 %v3639_v21  ;;  %v3668_v21 = vld [vmem:[%s6638_s5 + $0x348] sm:$0xff] }
 0x639   :  { %4121 = vmatprep.subr.mxu0 %v3654_v35  ;;  %v3667_v35 = vld [vmem:[%s6638_s5 + $0x340] sm:$0xff] }
 0x63a   :  { %4122 = vmatpush3.msra.mxu0 %v3638_v16  ;;  %v3666_v16 = vld [vmem:[%s6638_s5 + $0x338] sm:$0xff] }
 0x63b   :  { %4123 = vmatprep.subr.mxu0 %v3653_v23  ;;  %v3665_v23 = vld [vmem:[%s6638_s5 + $0x330] sm:$0xff] }
 0x63c   :  { %4124 = vmatpush3.msra.mxu0 %v3637_v50  ;;  %v3664_v50 = vld [vmem:[%s6638_s5 + $0x328] sm:$0xff] }
 0x63d   :  { %4125 = vmatprep.subr.mxu0 %v3652_v24  ;;  %v3663_v24 = vld [vmem:[%s6638_s5 + $0x320] sm:$0xff] }
 0x63e   :  { %4126 = vmatpush3.msra.mxu0 %v3636_v4  ;;  %v3662_v4 = vld [vmem:[%s6638_s5 + $0x318] sm:$0xff] }
 0x63f   :  { %4127 = vmatprep.subr.mxu0 %v3651_v25  ;;  %v3661_v25 = vld [vmem:[%s6638_s5 + $0x310] sm:$0xff] }
 0x640   :  { %4128 = vmatpush3.msra.mxu0 %v3635_v26  ;;  %v3660_v26 = vld [vmem:[%s6638_s5 + $0x308] sm:$0xff] }
 0x641   :  { %4129 = vmatprep.subr.mxu0 %v3650_v27  ;;  %v178_v27 = vrot.slane %v5772_v3, %v145_v31 }
 0x642   :  { %4130 = vmatpush3.msra.mxu0 %v3634_v28 }
 0x643   :  { %4131 = vmatprep.subr.mxu0 %v3649_v29  ;;  %v3659_v29 = vld [vmem:[%s6638_s5 + $0x300] sm:$0xff]  ;;  %v765_v31 = vadd.f32 %v5186_v33, %v178_v27  ;;  %v3717_v33 = vld [vmem:[%s6636_s3 + $0x7e8] sm:$0xff] }
 0x644   :  { %4132 = vmatpush3.msra.mxu0 %v3633_v17  ;;  %v3658_v17 = vld [vmem:[%s6637_s4 + $0x6] ss:$0 sm:$0xff] }
 0x645   :  { %4133 = vmatprep.subr.mxu0 %v3648_v14 }
 0x646   :  { %4134 = vmatpush3.msra.mxu0 %v3632_v30 }
 0x647   :  { %4135 = vmatprep.subr.mxu0 %v3647_v36 }
 0x648   :  { %4136 = vmatpush3.msra.mxu0 %v3631_v37  ;;  %v3703_v37 = vld [vmem:[%s6636_s3 + $0x778] sm:$0xff] }
 0x649   :  { %4137 = vmatprep.subr.mxu0 %v3646_v38  ;;  %v782_v38 = vmax.f32 %v765_v31, 0.0  ;;  %v3733_v31 = vld [vmem:[%s6638_s5 + $0x3d8] sm:$0xff] }
 0x64a   :  { %4138 = vmatpush3.msra.mxu0 %v3630_v39  ;;  %v3718_v39 = vld [vmem:[%s6636_s3 + $0x7f0] sm:$0xff] }
 0x64b   :  { %4139 = vmatprep.subr.mxu0 %v3645_v40  ;;  %v3702_v40 = vld [vmem:[%s6636_s3 + $0x770] sm:$0xff] }
 0x64c   :  { %4140 = vmatpush3.msra.mxu0 %v3629_v41  ;;  %v3701_v41 = vld [vmem:[%s6636_s3 + $0x768] sm:$0xff] }
 0x64d   :  { %4141 = vmatprep.subr.mxu0 %v3644_v43  ;;  %v3716_v43 = vld [vmem:[%s6636_s3 + $0x7e0] sm:$0xff] }
 0x64e   :  { %4142 = vmatpush3.msra.mxu0 %v3628_v44  ;;  %v3700_v44 = vld [vmem:[%s6636_s3 + $0x760] sm:$0xff] }
 0x64f   :  { %4143 = vmatprep.subr.mxu0 %v3643_v45  ;;  %v3715_v45 = vld [vmem:[%s6636_s3 + $0x7d8] sm:$0xff] }
 0x650   :  { %4144 = vmatpush3.msra.mxu0 %v3627_v46  ;;  %v3699_v46 = vld [vmem:[%s6636_s3 + $0x758] sm:$0xff] }
 0x651   :  { %4145 = vmatprep.subr.mxu0 %v3642_v47  ;;  %v3714_v47 = vld [vmem:[%s6636_s3 + $0x7d0] sm:$0xff] }
 0x652   :  { %4146 = vmatpush3.msra.mxu0 %v3626_v51  ;;  %v3698_v51 = vld [vmem:[%s6636_s3 + $0x750] sm:$0xff] }
 0x653   :  { %4147 = vmatprep.subr.mxu0 %v3641_v52  ;;  %v3713_v52 = vld [vmem:[%s6636_s3 + $0x7c8] sm:$0xff] }
 0x654   :  { %4148 = vmatpush3.msra.mxu0 %v3625_v22  ;;  %v3697_v22 = vld [vmem:[%s6636_s3 + $0x748] sm:$0xff] }
 0x655   :  { %2739 = vmatmul.mubr.f32.vlgmr.msra.gmra.mxu0 %v779_v53  ;;  %4598 = vmatprep.subr.mxu0 %v4741_v0  ;;  %v3712_v53 = vld [vmem:[%s6636_s3 + $0x7c0] sm:$0xff] }
 0x656   :  { %4614 = vmatprep.mubr.msk.f32.mxu0 %vm4742_vm1, %v4741_v0 }
 0x6d1   :  { %v2309_v59 = vpop.f32.mrf.mxu0 }
 0x6d2   :  { %v6264_v61 = vadd.f32 %v3560_v1, %v2309_v59  ;;  %v3692_v1 = vld [vmem:[%s6636_s3 + $0x720] sm:$0xff]  ;;  %v3707_v59 = vld [vmem:[%s6636_s3 + $0x798] sm:$0xff] }
 0x6d3   :  { %v4508_v63 = vpop.f32.mrf.mxu0 }
 0x6d4   :  { %v2313_v2 = vsel %vm1076_vm3, %v6264_v61, -inf  ;;  %v3691_v63 = vld [vmem:[%s6636_s3 + $0x718] sm:$0xff] }
 0x6d5   :  { %2314 = vmax.xlane.f32.xlu1 %v2313_v2  ;;  %v3706_v2 = vld [vmem:[%s6636_s3 + $0x790] sm:$0xff] }
 0x6f5   :  { %v2527_v8 = vpop.f32.mrf.mxu0 }
 0x6f6   :  { %v2528_v10 = vadd.f32 %v3613_v5, %v2527_v8  ;;  %v3690_v5 = vld [vmem:[%s6636_s3 + $0x710] sm:$0xff]  ;;  %v3705_v8 = vld [vmem:[%s6636_s3 + $0x788] sm:$0xff] }
 0x6f7   :  { %v4543_v11 = vpop.f32.mrf.mxu0 }
 0x6f8   :  { %v2531_v12 = vmax.f32 %v2528_v10, 0.0  ;;  %v3689_v10 = vld [vmem:[%s6636_s3 + $0x708] sm:$0xff]  ;;  %v3704_v11 = vld [vmem:[%s6636_s3 + $0x780] sm:$0xff] }
 0x6fa   :  { %4561 = vmatmul.mubr.msk.f32.vlgmr.msra.gmra.mxu1 %vm1002_vm2, %v2531_v12  ;;  %v3688_v12 = vld [vmem:[%s6636_s3 + $0x700] sm:$0xff]  ;;  %s4749_s3 = smov 28  }
 0x6fb   :  { %4564 = vmatpush3.msra.mxu1 %v3674_v56  ;;  %4595 = vmatprep.mubr.msk.f32.mxu1 %vm4742_vm1, %v4741_v0  ;;  %v781_v56 = vmax.f32 %v5065_v34, 0.0  ;;  %v3682_v34 = vld [vmem:[%s6640_s7 + $0x1a8] sm:$0xff] }
 0x6fc   :  { %4565 = vmatprep.subr.mxu1 %v4741_v0 }
 0x6fd   :  { %4566 = vmatpush3.msra.mxu1 %v3673_v15  ;;  %v3684_v15 = vld [vmem:[%s6640_s7 + $0x1b8] sm:$0xff] }
 0x6fe   :  { %4567 = vmatprep.subr.mxu1 %v4741_v0  ;;  %4599 = vmatpush3.msra.mxu0 %v3684_v15 }
 0x6ff   :  { %4568 = vmatpush3.msra.mxu1 %v3672_v18  ;;  %v3683_v18 = vld [vmem:[%s6640_s7 + $0x1b0] sm:$0xff]  ;;  %4600 = vmatprep.subr.mxu0 %v4741_v0 }
 0x700   :  { %4569 = vmatprep.subr.mxu1 %v4741_v0  ;;  %4601 = vmatpush3.msra.mxu0 %v3683_v18 }
 0x701   :  { %4570 = vmatpush3.msra.mxu1 %v3671_v19  ;;  %4602 = vmatprep.subr.mxu0 %v4741_v0  ;;  %v3681_v19 = vld [vmem:[%s6640_s7 + $0x1a0] sm:$0xff] }
 0x702   :  { %4571 = vmatprep.subr.mxu1 %v4741_v0  ;;  %4603 = vmatpush3.msra.mxu0 %v3682_v34 }
 0x703   :  { %4572 = vmatpush3.msra.mxu1 %v3670_v62  ;;  %4604 = vmatprep.subr.mxu0 %v4741_v0  ;;  %v3680_v62 = vld [vmem:[%s6640_s7 + $0x198] sm:$0xff] }
 0x704   :  { %4573 = vmatprep.subr.mxu1 %v4741_v0  ;;  %4605 = vmatpush3.msra.mxu0 %v3681_v19 }
 0x705   :  { %4574 = vmatpush3.msra.mxu1 %v3669_v20  ;;  %4606 = vmatprep.subr.mxu0 %v4741_v0  ;;  %v3679_v20 = vld [vmem:[%s6640_s7 + $0x190] sm:$0xff] }
 0x706   :  { %4575 = vmatprep.subr.mxu1 %v4741_v0  ;;  %4607 = vmatpush3.msra.mxu0 %v3680_v62 }
 0x707   :  { %4576 = vmatpush3.msra.mxu1 %v3668_v21  ;;  %4608 = vmatprep.subr.mxu0 %v4741_v0  ;;  %v3678_v21 = vld [vmem:[%s6640_s7 + $0x188] sm:$0xff] }
 0x708   :  { %4577 = vmatprep.subr.mxu1 %v4741_v0  ;;  %4609 = vmatpush3.msra.mxu0 %v3679_v20 }
 0x709   :  { %4578 = vmatpush3.msra.mxu1 %v3667_v35  ;;  %4610 = vmatprep.subr.mxu0 %v4741_v0  ;;  %v3677_v35 = vld [vmem:[%s6640_s7 + $0x180] sm:$0xff] }
 0x70a   :  { %4579 = vmatprep.subr.mxu1 %v4741_v0  ;;  %4611 = vmatpush3.msra.mxu0 %v3678_v21 }
 0x70b   :  { %4580 = vmatpush3.msra.mxu1 %v3666_v16  ;;  %4612 = vmatprep.subr.mxu0 %v4741_v0  ;;  %v3623_v16 = vld [vmem:[%s6641_s8 + $0x5] ss:$0 sm:$0xff] }
 0x70c   :  { %4581 = vmatprep.subr.mxu1 %v4741_v0  ;;  %4613 = vmatpush3.msra.mxu0 %v3677_v35 }
 0x70d   :  { %4582 = vmatpush3.msra.mxu1 %v3665_v23  ;;  %4617 = vmatprep.subr.mxu0 %v4741_v0 }
 0x70e   :  { %4583 = vmatprep.subr.mxu1 %v4741_v0 }
 0x70f   :  { %4584 = vmatpush3.msra.mxu1 %v3664_v50 }
 0x710   :  { %4585 = vmatprep.subr.mxu1 %v4741_v0 }
 0x711   :  { %4586 = vmatpush3.msra.mxu1 %v3663_v24 }
 0x712   :  { %4587 = vmatprep.subr.mxu1 %v4741_v0 }
 0x713   :  { %4588 = vmatpush3.msra.mxu1 %v3662_v4 }
 0x714   :  { %4589 = vmatprep.subr.mxu1 %v4741_v0 }
 0x715   :  { %v4149_v28 = vpop.f32.mrf.mxu0  ;;  %4590 = vmatpush3.msra.mxu1 %v3661_v25  ;;  %v3676_v25 = vld [vmem:[%s6639_s6 + $0x6] ss:$0 sm:$0xff] }
 0x716   :  { %4591 = vmatprep.subr.mxu1 %v4741_v0 }
 0x717   :  { %v4150_v14 = vpop.f32.mrf.mxu0  ;;  %4592 = vmatpush3.msra.mxu1 %v3660_v26 }
 0x718   :  { %v4151_v30 = vadd.f32 %v4150_v14, %v4149_v28  ;;  %4593 = vmatprep.subr.mxu1 %v4741_v0  ;;  %v3736_v14 = vld [vmem:[%s6638_s5 + $0x3f0] sm:$0xff] }
 0x719   :  { %4594 = vmatpush3.msra.mxu1 %v3659_v29 }
 0x71a   :  { %v2741_v3 = vadd.f32 %v4151_v30, %v3658_v17  ;;  %4178 = vmatprep.subr.mxu1 %v3719_v48  ;;  %v3737_v17 = vld [vmem:[%s6638_s5 + $0x3f8] sm:$0xff]  ;;  %v3735_v48 = vld [vmem:[%s6638_s5 + $0x3e8] sm:$0xff]  ;;  %v3734_v30 = vld [vmem:[%s6638_s5 + $0x3e0] sm:$0xff] }
 0x71c   :  { %v2744_v36 = vmax.f32 %v2741_v3, 0.0  ;;  %v3732_v3 = vld [vmem:[%s6638_s5 + $0x3d0] sm:$0xff] }
 0x71e   :  { %4596 = vmatmul.mubr.f32.vlgmr.msra.gmra.mxu1 %v2744_v36  ;;  %v3731_v36 = vld [vmem:[%s6638_s5 + $0x3c8] sm:$0xff] }
 0x71f   :  { %4179 = vmatpush3.msra.mxu1 %v3703_v37  ;;  %3047 = vmatprep.mubr.f32.mxu1 %v782_v38  ;;  %v3730_v37 = vld [vmem:[%s6638_s5 + $0x3c0] sm:$0xff]  ;;  %v3729_v38 = vld [vmem:[%s6638_s5 + $0x3b8] sm:$0xff] }
 0x720   :  { %4180 = vmatprep.subr.mxu1 %v3718_v39  ;;  %v3728_v39 = vld [vmem:[%s6638_s5 + $0x3b0] sm:$0xff] }
 0x721   :  { %4181 = vmatpush3.msra.mxu1 %v3702_v40  ;;  %v3727_v40 = vld [vmem:[%s6638_s5 + $0x3a8] sm:$0xff] }
 0x722   :  { %4182 = vmatprep.subr.mxu1 %v3717_v33  ;;  %v3726_v33 = vld [vmem:[%s6638_s5 + $0x3a0] sm:$0xff] }
 0x723   :  { %4183 = vmatpush3.msra.mxu1 %v3701_v41  ;;  %v3725_v41 = vld [vmem:[%s6638_s5 + $0x398] sm:$0xff] }
 0x724   :  { %4184 = vmatprep.subr.mxu1 %v3716_v43  ;;  %v3724_v43 = vld [vmem:[%s6638_s5 + $0x390] sm:$0xff] }
 0x725   :  { %4185 = vmatpush3.msra.mxu1 %v3700_v44  ;;  %v3723_v44 = vld [vmem:[%s6638_s5 + $0x388] sm:$0xff] }
 0x726   :  { %4186 = vmatprep.subr.mxu1 %v3715_v45 }
 0x727   :  { %4187 = vmatpush3.msra.mxu1 %v3699_v46  ;;  %v3722_v46 = vld [vmem:[%s6638_s5 + $0x380] sm:$0xff] }
 0x728   :  { %4188 = vmatprep.subr.mxu1 %v3714_v47  ;;  %v3721_v47 = vld [vmem:[%s6637_s4 + $0x7] ss:$0 sm:$0xff] }
 0x729   :  { %4189 = vmatpush3.msra.mxu1 %v3698_v51 }
 0x72a   :  { %4190 = vmatprep.subr.mxu1 %v3713_v52 }
 0x72b   :  { %4191 = vmatpush3.msra.mxu1 %v3697_v22 }
 0x72c   :  { %4192 = vmatprep.subr.mxu1 %v3712_v53 }
 0x72d   :  { %4193 = vmatpush3.msra.mxu1 %v3696_v49  ;;  %v3747_v49 = vld [vmem:[%s6640_s7 + $0x1f8] sm:$0xff] }
 0x72e   :  { %4194 = vmatprep.subr.mxu1 %v3711_v32  ;;  %v3746_v32 = vld [vmem:[%s6640_s7 + $0x1f0] sm:$0xff] }
 0x72f   :  { %4195 = vmatpush3.msra.mxu1 %v3695_v7  ;;  %v3745_v7 = vld [vmem:[%s6640_s7 + $0x1e8] sm:$0xff] }
 0x730   :  { %4196 = vmatprep.subr.mxu1 %v3710_v54  ;;  %v3744_v54 = vld [vmem:[%s6640_s7 + $0x1e0] sm:$0xff] }
 0x731   :  { %4197 = vmatpush3.msra.mxu1 %v3694_v55  ;;  %v3743_v55 = vld [vmem:[%s6640_s7 + $0x1d8] sm:$0xff] }
 0x732   :  { %4198 = vmatprep.subr.mxu1 %v3709_v60  ;;  %v3742_v60 = vld [vmem:[%s6640_s7 + $0x1d0] sm:$0xff] }
 0x733   :  { %4199 = vmatpush3.msra.mxu1 %v3693_v57  ;;  %v3741_v57 = vld [vmem:[%s6640_s7 + $0x1c8] sm:$0xff] }
 0x734   :  { %4200 = vmatprep.subr.mxu1 %v3708_v58  ;;  %v3740_v58 = vld [vmem:[%s6640_s7 + $0x1c0] sm:$0xff] }
 0x735   :  { %4201 = vmatpush3.msra.mxu1 %v3692_v1  ;;  %v1388_v1 = vpop.xlane.xlu0 %1387 }
 0x736   :  { %4202 = vmatprep.subr.mxu1 %v3707_v59 }
 0x737   :  { %4203 = vmatpush3.msra.mxu1 %v3691_v63  ;;  %v2006_v63 = vpop.xlane.xlu1 %2005 }
 0x738   :  { %4204 = vmatprep.subr.mxu1 %v3706_v2 }
 0x739   :  { %4205 = vmatpush3.msra.mxu1 %v3690_v5  ;;  %v1697_v59 = vpop.xlane.xlu0 %1696 }
 0x73a   :  { %4206 = vmatprep.subr.mxu1 %v3705_v8  ;;  %v1698_v2 = vsub.f32 %v5837_v13, %v1697_v59 }
 0x73b   :  { %4207 = vmatpush3.msra.mxu1 %v3689_v10 }
 0x73c   :  { %4208 = vmatprep.subr.mxu1 %v3704_v11  ;;  %v1699_v8 = vmul.f32 1.442695, %v1698_v2 }
 0x73d   :  { %4209 = vmatpush3.msra.mxu1 %v3688_v12  ;;  %v3308_v12 = vld [vmem:[%s6641_s8] ss:$0 sm:$0xff] }
 0x73e   :  { %3048 = vmatmul.mubr.f32.vlgmr.msra.gmra.mxu1 %v781_v56  ;;  %4652 = vmatprep.subr.mxu1 %v4741_v0  ;;  %4683 = vpow2.f32 %v1699_v8  ;;  %v1073_v13 = vadd.f32 %v3308_v12, %v5400_v6  ;;  %v3739_v6 = vld [vmem:[%s6639_s6 + $0x7] ss:$0 sm:$0xff]  ;;  %s4743_s6 = smov 8  }
 0x73f   :  { %4668 = vmatprep.mubr.msk.f32.mxu1 %vm4742_vm1, %v4741_v0  ;;  %4653 = vmatpush3.msra.mxu1 %v3747_v49 }
 0x740   :  { %4654 = vmatprep.subr.mxu1 %v4741_v0 }
 0x741   :  { %4655 = vmatpush3.msra.mxu1 %v3746_v32 }
 0x742   :  { %4656 = vmatprep.subr.mxu1 %v4741_v0 }
 0x743   :  { %4657 = vmatpush3.msra.mxu1 %v3745_v7 }
 0x744   :  { %4658 = vmatprep.subr.mxu1 %v4741_v0 }
 0x745   :  { %4659 = vmatpush3.msra.mxu1 %v3744_v54 }
 0x746   :  { %4660 = vmatprep.subr.mxu1 %v4741_v0 }
 0x747   :  { %4661 = vmatpush3.msra.mxu1 %v3743_v55 }
 0x748   :  { %4662 = vmatprep.subr.mxu1 %v4741_v0 }
 0x749   :  { %4663 = vmatpush3.msra.mxu1 %v3742_v60 }
 0x74a   :  { %4664 = vmatprep.subr.mxu1 %v4741_v0 }
 0x74b   :  { %4665 = vmatpush3.msra.mxu1 %v3741_v57  ;;  %v4684_v19 = vpop.eup %4683 }
 0x74c   :  { %4666 = vmatprep.subr.mxu1 %v4741_v0  ;;  %v1701_v62 = vsel %vm1076_vm3, %v4684_v19, 0.0 }
 0x74d   :  { %4667 = vmatpush3.msra.mxu1 %v3740_v58 }
 0x75e   :  { %v2315_v5 = vpop.xlane.xlu1 %2314 }
 0x75f   :  { %v2316_v10 = vsub.f32 %v6264_v61, %v2315_v5  ;;  %v1077_v61 = vsel %vm1076_vm3, %v1073_v13, -inf }
 0x761   :  { %v2317_v11 = vmul.f32 1.442695, %v2316_v10 }
 0x763   :  { %4685 = vpow2.f32 %v2317_v11 }
 0x770   :  { %v6598_v20 = vpop.eup %4685 }
 0x771   :  { %v2319_v21 = vsel %vm1076_vm3, %v6598_v20, 0.0 }
 0x7ba   :  { %v2618_v23 = vpop.f32.mrf.mxu1 }
 0x7bb   :  { %v6479_v50 = vadd.f32 %v3623_v16, %v2618_v23 }
 0x7bc   :  { %v4562_v24 = vpop.f32.mrf.mxu1 }
 0x7bd   :  { %v2622_v4 = vsel %vm1076_vm3, %v6479_v50, -inf }
 0x7be   :  { %2623 = vmax.xlane.f32.xlu0 %v2622_v4 }
 0x7de   :  { %v2836_v26 = vpop.f32.mrf.mxu1 }
 0x7df   :  { %v2837_v27 = vadd.f32 %v3676_v25, %v2836_v26 }
 0x7e0   :  { %v4597_v28 = vpop.f32.mrf.mxu1 }
 0x7e1   :  { %v2840_v29 = vmax.f32 %v2837_v27, 0.0 }
 0x7e3   :  { %4615 = vmatmul.mubr.msk.f32.vlgmr.msra.gmra.mxu0 %vm1002_vm2, %v2840_v29 }
 0x7e4   :  { %4618 = vmatpush3.msra.mxu0 %v3737_v17  ;;  %4649 = vmatprep.mubr.msk.f32.mxu0 %vm4742_vm1, %v4741_v0 }
 0x7e5   :  { %4619 = vmatprep.subr.mxu0 %v4741_v0 }
 0x7e6   :  { %4620 = vmatpush3.msra.mxu0 %v3736_v14 }
 0x7e7   :  { %4621 = vmatprep.subr.mxu0 %v4741_v0 }
 0x7e8   :  { %4622 = vmatpush3.msra.mxu0 %v3735_v48 }
 0x7e9   :  { %4623 = vmatprep.subr.mxu0 %v4741_v0 }
 0x7ea   :  { %4624 = vmatpush3.msra.mxu0 %v3734_v30 }
 0x7eb   :  { %4625 = vmatprep.subr.mxu0 %v4741_v0 }
 0x7ec   :  { %4626 = vmatpush3.msra.mxu0 %v3733_v31 }
 0x7ed   :  { %4627 = vmatprep.subr.mxu0 %v4741_v0 }
 0x7ee   :  { %4628 = vmatpush3.msra.mxu0 %v3732_v3 }
 0x7ef   :  { %4629 = vmatprep.subr.mxu0 %v4741_v0 }
 0x7f0   :  { %4630 = vmatpush3.msra.mxu0 %v3731_v36 }
 0x7f1   :  { %4631 = vmatprep.subr.mxu0 %v4741_v0 }
 0x7f2   :  { %4632 = vmatpush3.msra.mxu0 %v3730_v37  ;;  %v1389_v37 = vsub.f32 %v5617_v42, %v1388_v1 }
 0x7f3   :  { %4633 = vmatprep.subr.mxu0 %v4741_v0 }
 0x7f4   :  { %4634 = vmatpush3.msra.mxu0 %v3729_v38  ;;  %v1390_v38 = vmul.f32 1.442695, %v1389_v37 }
 0x7f5   :  { %4635 = vmatprep.subr.mxu0 %v4741_v0 }
 0x7f6   :  { %4636 = vmatpush3.msra.mxu0 %v3728_v39  ;;  %v2007_v39 = vsub.f32 %v6049_v9, %v2006_v63 }
 0x7f7   :  { %4637 = vmatprep.subr.mxu0 %v4741_v0 }
 0x7f8   :  { %4638 = vmatpush3.msra.mxu0 %v3727_v40 }
 0x7f9   :  { %4639 = vmatprep.subr.mxu0 %v4741_v0 }
 0x7fa   :  { %4640 = vmatpush3.msra.mxu0 %v3726_v33  ;;  %v2008_v33 = vmul.f32 1.442695, %v2007_v39 }
 0x7fb   :  { %4641 = vmatprep.subr.mxu0 %v4741_v0 }
 0x7fc   :  { %4642 = vmatpush3.msra.mxu0 %v3725_v41 }
 0x7fd   :  { %4643 = vmatprep.subr.mxu0 %v4741_v0 }
 0x7fe   :  { %v4210_v45 = vpop.f32.mrf.mxu1  ;;  %4644 = vmatpush3.msra.mxu0 %v3724_v43 }
 0x7ff   :  { %4645 = vmatprep.subr.mxu0 %v4741_v0 }
 0x800   :  { %v4211_v51 = vpop.f32.mrf.mxu1  ;;  %4646 = vmatpush3.msra.mxu0 %v3723_v44  ;;  %v3749_v44 = vld [vmem:[%s6641_s8 + $0x7] ss:$0 sm:$0xff] }
 0x801   :  { %v4212_v52 = vadd.f32 %v4211_v51, %v4210_v45  ;;  %4647 = vmatprep.subr.mxu0 %v4741_v0  ;;  %v3686_v0 = vld [vmem:[%s6641_s8 + $0x6] ss:$0 sm:$0xff]  ;;  %s4744_s8 = smov 12  }
 0x802   :  { %4648 = vmatpush3.msra.mxu0 %v3722_v46 }
 0x803   :  { %v3050_v22 = vadd.f32 %v4212_v52, %v3721_v47 }
 0x805   :  { %v3053_v53 = vmax.f32 %v3050_v22, 0.0 }
 0x807   :  { %4650 = vmatmul.mubr.f32.vlgmr.msra.gmra.mxu0 %v3053_v53 }
 0x847   :  { %v2624_v40 = vpop.xlane.xlu0 %2623 }
 0x848   :  { %v2625_v41 = vsub.f32 %v6479_v50, %v2624_v40 }
 0x84a   :  { %v2626_v43 = vmul.f32 1.442695, %v2625_v41 }
 0x8a3   :  { %v2927_v56 = vpop.f32.mrf.mxu0 }
 0x8a4   :  { %v2928_v15 = vadd.f32 %v3686_v0, %v2927_v56 }
 0x8a5   :  { %v4616_v18 = vpop.f32.mrf.mxu0 }
 0x8a6   :  { %v2931_v34 = vsel %vm1076_vm3, %v2928_v15, -inf }
 0x8a7   :  { %2932 = vmax.xlane.f32.xlu1 %v2931_v34 }
 0x8ab   :  { %1078 = vmax.xlane.f32.xlu1 %v1077_v61 }
 0x8af   :  { %1702 = vadd.xlane.f32.xlu1 %v1701_v62 }
 0x8b3   :  { %2320 = vadd.xlane.f32.xlu1 %v2319_v21 }
 0x8c7   :  { %v3145_v35 = vpop.f32.mrf.mxu0 }
 0x8c8   :  { %v3146_v16 = vadd.f32 %v3739_v6, %v3145_v35 }
 0x8c9   :  { %v4651_v23 = vpop.f32.mrf.mxu0 }
 0x8ca   :  { %v3149_v24 = vmax.f32 %v3146_v16, 0.0 }
 0x8cc   :  { %4669 = vmatmul.mubr.msk.f32.vlgmr.msra.gmra.mxu1 %vm1002_vm2, %v3149_v24 }
 0x930   :  { %v2933_v4 = vpop.xlane.xlu1 %2932 }
 0x931   :  { %v2934_v25 = vsub.f32 %v2928_v15, %v2933_v4 }
 0x933   :  { %v2935_v26 = vmul.f32 1.442695, %v2934_v25 }
 0x934   :  { %v1079_v27 = vpop.xlane.xlu1 %1078 }
 0x935   :  { %4687 = vpow2.f32 %v2935_v26  ;;  %v1080_v28 = vsub.f32 %v1073_v13, %v1079_v27 }
 0x937   :  { %v1081_v29 = vmul.f32 1.442695, %v1080_v28 }
 0x938   :  { %v1703_v48 = vpop.xlane.xlu1 %1702 }
 0x939   :  { %4689 = vpow2.f32 %v1081_v29 }
 0x93a   :  { %4691 = vrcp.f32 %v1703_v48 }
 0x93b   :  { %4693 = vpow2.f32 %v1390_v38 }
 0x93c   :  { %4695 = vpow2.f32 %v2008_v33  ;;  %v2321_v55 = vpop.xlane.xlu1 %2320 }
 0x93d   :  { %4697 = vpow2.f32 %v2626_v43 }
 0x942   :  { %v6606_v17 = vpop.eup %4687 }
 0x943   :  { %v2937_v14 = vsel %vm1076_vm3, %v6606_v17, 0.0 }
 0x944   :  { %2938 = vadd.xlane.f32.xlu1 %v2937_v14 }
 0x946   :  { %v6610_v30 = vpop.eup %4689 }
 0x947   :  { %v1083_v31 = vsel %vm1076_vm3, %v6610_v30, 0.0  ;;  %v4692_v3 = vpop.eup %4691 }
 0x948   :  { %1084 = vadd.xlane.f32.xlu1 %v1083_v31  ;;  %v1705_v36 = vmul.f32 %v4692_v3, %v4684_v19  ;;  %v4694_v51 = vpop.eup %4693 }
 0x949   :  { %v1392_v9 = vsel %vm1076_vm3, %v4694_v51, 0.0  ;;  %v4696_v52 = vpop.eup %4695 }
 0x94a   :  { %v2010_v50 = vsel %vm1076_vm3, %v4696_v52, 0.0  ;;  %v4698_v22 = vpop.eup %4697 }
 0x94b   :  { %v2628_v53 = vsel %vm1076_vm3, %v4698_v22, 0.0 }
 0x959   :  { %3256 = vrot.lane.b32.xlu1 %v1705_v36, %s4743_s6 }
 0x98c   :  { %v3236_v45 = vpop.f32.mrf.mxu1 }
 0x98d   :  { %v3237_v46 = vadd.f32 %v3749_v44, %v3236_v45 }
 0x98e   :  { %v4670_v47 = vpop.f32.mrf.mxu1 }
 0x98f   :  { %v3240_v42 = vsel %vm1076_vm3, %v3237_v46, -inf }
 0x990   :  { %3241 = vmax.xlane.f32.xlu0 %v3240_v42 }
 0x994   :  { %1393 = vadd.xlane.f32.xlu0 %v1392_v9 }
 0x998   :  { %2011 = vadd.xlane.f32.xlu0 %v2010_v50 }
 0x99c   :  { %2629 = vadd.xlane.f32.xlu0 %v2628_v53 }
 0x9cd   :  { %v2939_v57 = vpop.xlane.xlu1 %2938 }
 0x9d1   :  { %v1085_v61 = vpop.xlane.xlu1 %1084 }
 0xa19   :  { %v3242_v49 = vpop.xlane.xlu0 %3241 }
 0xa1a   :  { %v3243_v32 = vsub.f32 %v3237_v46, %v3242_v49 }
 0xa1c   :  { %v3244_v7 = vmul.f32 1.442695, %v3243_v32 }
 0xa1d   :  { %v1394_v54 = vpop.xlane.xlu0 %1393 }
 0xa1e   :  { %4699 = vpow2.f32 %v3244_v7 }
 0xa21   :  { %v2012_v60 = vpop.xlane.xlu0 %2011 }
 0xa22   :  { %4701 = vrcp.f32 %v2012_v60 }
 0xa23   :  { %4703 = vrcp.f32 %v2321_v55 }
 0xa24   :  { %4705 = vrcp.f32 %v2939_v57 }
 0xa25   :  { %4707 = vrcp.f32 %v1394_v54  ;;  %v2630_v5 = vpop.xlane.xlu0 %2629 }
 0xa26   :  { %4709 = vrcp.f32 %v2630_v5 }
 0xa2b   :  { %v4700_v58 = vpop.eup %4699 }
 0xa2c   :  { %v3246_v1 = vsel %vm1076_vm3, %v4700_v58, 0.0 }
 0xa2d   :  { %3247 = vadd.xlane.f32.xlu0 %v3246_v1 }
 0xa2f   :  { %v4702_v59 = vpop.eup %4701 }
 0xa30   :  { %v2014_v63 = vmul.f32 %v4702_v59, %v4696_v52  ;;  %v4704_v2 = vpop.eup %4703 }
 0xa31   :  { %v2323_v8 = vmul.f32 %v4704_v2, %v6598_v20  ;;  %v4706_v10 = vpop.eup %4705  ;;  %v3257_v20 = vpop.permute.xlu1 %3256 }
 0xa32   :  { %3260 = vrot.lane.b32.xlu1 %v2014_v63, %s4744_s8  ;;  %v2941_v11 = vmul.f32 %v4706_v10, %v6606_v17  ;;  %v4708_v0 = vpop.eup %4707 }
 0xa33   :  { %v1396_v12 = vmul.f32 %v4708_v0, %v4694_v51  ;;  %v4710_v56 = vpop.eup %4709 }
 0xa34   :  { %v2632_v15 = vmul.f32 %v4710_v56, %v4698_v22 }
 0xa36   :  { %3264 = vrot.lane.b32.xlu1 %v2323_v8, %s4745_s21 }
 0xa3a   :  { %3272 = vrot.lane.b32.xlu1 %v2941_v11, %s4746_s22 }
 0xa43   :  { %3252 = vrot.lane.b32.xlu0 %v1396_v12, %s4747_s23 }
 0xa47   :  { %3268 = vrot.lane.b32.xlu0 %v2632_v15, %s4748_s24 }
 0xaa4   :  { %v3261_v35 = vpop.permute.xlu1 %3260 }
 0xaa8   :  { %v3265_v24 = vpop.permute.xlu1 %3264 }
 0xaac   :  { %v3273_v27 = vpop.permute.xlu1 %3272 }
 0xab6   :  { %v3248_v18 = vpop.xlane.xlu0 %3247 }
 0xab7   :  { %4711 = vrcp.f32 %v3248_v18 }
 0xab8   :  { %4713 = vrcp.f32 %v1085_v61 }
 0xaba   :  { %v3253_v62 = vpop.permute.xlu0 %3252 }
 0xabe   :  { %v3269_v25 = vpop.permute.xlu0 %3268 }
 0xac4   :  { %v4712_v13 = vpop.eup %4711 }
 0xac5   :  { %v3250_v34 = vmul.f32 %v4712_v13, %v4700_v58  ;;  %v4714_v19 = vpop.eup %4713 }
 0xac6   :  { %v1087_v21 = vmul.f32 %v4714_v19, %v6610_v30 }
 0xac7   :  { %3276 = vrot.lane.b32.xlu0 %v3250_v34, %s4749_s3 }
 0xac8   :  { %v3279_v6 = vsel %vm1076_vm3, %v1087_v21, %v3253_v62 }
 0xac9   :  { %v3281_v16 = vsel %vm3280_vm4, %v3279_v6, %v3257_v20 }
 0xaca   :  { %v3283_v23 = vsel %vm3282_vm5, %v3281_v16, %v3261_v35 }
 0xacb   :  { %v3285_v4 = vsel %vm3284_vm6, %v3283_v23, %v3265_v24 }
 0xacc   :  { %v3287_v26 = vsel %vm3286_vm7, %v3285_v4, %v3269_v25 }
 0xacd   :  { %v3289_v28 = vsel %vm3288_vm8, %v3287_v26, %v3273_v27 }
 0xb39   :  { %v3277_v29 = vpop.permute.xlu0 %3276 }
 0xb3a   :  { %v3291_v17 = vsel %vm3290_vm9, %v3289_v28, %v3277_v29 }
 0xb3b   :  { %3292 = vst.msk [vmem:[%s6642_s9] sm:$0xff] %vm195_vm0, %v3291_v17 }
 0xb3c   :  { %3297 = vsyncpa [#allocation3], 1 }

</bundles_post_ra>
